<compile_context>
chip_gen: v7x
topology: tpu7x:2x2x1
jax: 0.10.0
libtpu: 0.0.40
codegen_flags: <defaults>
</compile_context>

<pallas_src>
import functools
import math

import jax
import jax.numpy as jnp
from jax.experimental import pallas as pl
from jax.experimental.pallas import tpu as pltpu


def _full_spec(shape):
    """BlockSpec covering the whole array for every grid step."""
    nd = len(shape)
    return pl.BlockSpec(shape, lambda b: (0,) * nd)


# ------------------------------- fused kernel -------------------------------

def _layer_norm(z, g, b, eps=1e-5):
    mu = jnp.mean(z, axis=-1, keepdims=True)
    var = jnp.mean(jnp.square(z - mu), axis=-1, keepdims=True)
    return (z - mu) * jax.lax.rsqrt(var + eps) * g + b


def _fused_encoder_kernel(xp_ref, cw_ref, cb_ref, pos_ref,
                          wqkv_ref, bqkv_ref, wo_ref, bo_ref,
                          ln1g_ref, ln1b_ref,
                          w1_ref, b1_ref, w2_ref, b2_ref,
                          ln2g_ref, ln2b_ref,
                          o_ref, *, num_layers, num_heads):
    E = cw_ref.shape[-1]
    D = E // num_heads

    # --- patch embedding (Conv PxP stride P == unfold + matmul) + positional enc ---
    # One grid step == one sequence of this batch element: (S, Kp) @ (Kp, E).
    h = jnp.dot(xp_ref[0], cw_ref[...], preferred_element_type=jnp.float32)
    h = h + cb_ref[...] + pos_ref[...]                         # (S, E)

    # --- num_layers x post-norm TransformerEncoderLayer (relu FFN, no final norm) ---
    for l in range(num_layers):
        # Fused Q/K/V projection: one (S, E) @ (E, 3E) matmul (scale pre-folded).
        qkv = jnp.dot(h, wqkv_ref[l],
                      preferred_element_type=jnp.float32) + bqkv_ref[l]   # (S, 3E)

        heads = []
        for hh in range(num_heads):
            q = qkv[:, hh * D:(hh + 1) * D]                    # (S, D) static slices
            k = qkv[:, E + hh * D:E + (hh + 1) * D]
            v = qkv[:, 2 * E + hh * D:2 * E + (hh + 1) * D]
            s = jax.lax.dot_general(                           # (S, S) = q @ k^T
                q, k, (((1,), (1,)), ((), ())),
                preferred_element_type=jnp.float32)
            s = s - jnp.max(s, axis=-1, keepdims=True)
            p = jnp.exp(s)
            p = p * pl.reciprocal(jnp.sum(p, axis=-1, keepdims=True), approx=True)
            heads.append(jnp.dot(p, v, preferred_element_type=jnp.float32))  # (S, D)

        ctx = jnp.concatenate(heads, axis=-1)                  # (S, E) lane concat
        # Fused output projection: one (S, E) @ (E, E) matmul.
        attn = jnp.dot(ctx, wo_ref[l],
                       preferred_element_type=jnp.float32) + bo_ref[l]

        h = _layer_norm(h + attn, ln1g_ref[l], ln1b_ref[l])

        ff = jnp.dot(h, w1_ref[l], preferred_element_type=jnp.float32) + b1_ref[l]
        ff = jnp.maximum(ff, 0.0)
        ff = jnp.dot(ff, w2_ref[l], preferred_element_type=jnp.float32) + b2_ref[l]
        h = _layer_norm(h + ff, ln2g_ref[l], ln2b_ref[l])

    o_ref[0] = h.astype(o_ref.dtype)


# ------------------------- parameters & forward pass ------------------------

def init_params(key, in_channels, patch_size, embedding_dim, num_heads,
                dim_ff, num_layers, max_seq=2048):
    """Canonical params (weights already in (K, N) matmul layout, stacked over layers)."""
    E, F, L = embedding_dim, dim_ff, num_layers
    Kp = in_channels * patch_size * patch_size
    ks = jax.random.split(key, 16)

    def nrm(k, shape, s=0.05):
        return jax.random.normal(k, shape, jnp.float32) * s

    return dict(
        conv_w=nrm(ks[0], (Kp, E)),
        conv_b=nrm(ks[1], (1, E), 0.02),
        # PyTorch: nn.Parameter(torch.rand(2048, E)) -- uniform [0, 1)
        pos=jax.random.uniform(ks[2], (max_seq, E), jnp.float32),
        wq=nrm(ks[3], (L, E, E)), bq=nrm(ks[4], (L, 1, E), 0.02),
        wk=nrm(ks[5], (L, E, E)), bk=nrm(ks[6], (L, 1, E), 0.02),
        wv=nrm(ks[7], (L, E, E)), bv=nrm(ks[8], (L, 1, E), 0.02),
        wo=nrm(ks[9], (L, E, E)), bo=nrm(ks[10], (L, 1, E), 0.02),
        ln1_g=jnp.ones((L, 1, E), jnp.float32),
        ln1_b=jnp.zeros((L, 1, E), jnp.float32),
        w1=nrm(ks[11], (L, E, F)), b1=nrm(ks[12], (L, 1, F), 0.02),
        w2=nrm(ks[13], (L, F, E)), b2=nrm(ks[14], (L, 1, E), 0.02),
        ln2_g=jnp.ones((L, 1, E), jnp.float32),
        ln2_b=jnp.zeros((L, 1, E), jnp.float32),
    )


def prepare_kernel_params(params, num_heads):
    """One-time layout plumbing: fuse q/k/v weights and fold in the attention scale."""
    E = params["conv_w"].shape[1]
    D = E // num_heads
    scale = 1.0 / math.sqrt(D)
    kp = {k: v for k, v in params.items()
          if k not in ("wq", "wk", "wv", "bq", "bk", "bv")}
    kp["wqkv"] = jnp.concatenate(
        [params["wq"] * scale, params["wk"], params["wv"]], axis=-1)   # (L, E, 3E)
    kp["bqkv"] = jnp.concatenate(
        [params["bq"] * scale, params["bk"], params["bv"]], axis=-1)   # (L, 1, 3E)
    return kp


def patch_transformer_encoder(x, kparams, *, patch_size, num_heads):
    """x: (N, C, H, W) NCHW -> (S, N, E), matching the PyTorch module."""
    N, C, H, W = x.shape
    P = patch_size
    Hp, Wp = H // P, W // P
    S = Hp * Wp
    Kp = C * P * P
    E = kparams["conv_w"].shape[1]
    L = kparams["wqkv"].shape[0]

    # Conv2d(kernel=stride=P, padding=0) == patch-unfold + matmul (matmul in Pallas).
    xp = (x.reshape(N, C, Hp, P, Wp, P)
            .transpose(0, 2, 4, 1, 3, 5)          # (N, Hp, Wp, C, P, P)
            .reshape(N, S, Kp))
    pos = kparams["pos"][:S]

    args = (xp, kparams["conv_w"], kparams["conv_b"], pos,
            kparams["wqkv"], kparams["bqkv"], kparams["wo"], kparams["bo"],
            kparams["ln1_g"], kparams["ln1_b"],
            kparams["w1"], kparams["b1"], kparams["w2"], kparams["b2"],
            kparams["ln2_g"], kparams["ln2_b"])

    in_specs = [pl.BlockSpec((1, S, Kp), lambda b: (b, 0, 0))]        # per-batch xp
    in_specs += [_full_spec(a.shape) for a in args[1:]]               # weights / pos

    kernel = functools.partial(_fused_encoder_kernel, num_layers=L,
                               num_heads=num_heads)

    h = pl.pallas_call(
        kernel,
        grid=(N,),
        in_specs=in_specs,
        out_specs=pl.BlockSpec((1, S, E), lambda b: (b, 0, 0)),
        out_shape=jax.ShapeDtypeStruct((N, S, E), x.dtype),
        compiler_params=pltpu.CompilerParams(
            dimension_semantics=("parallel",)),      # one sequence per TC on v7x
    )(*args)

    # (N, S, E) -> (S, N, E) : nn.TransformerEncoder with batch_first=False.
    return h.transpose(1, 0, 2)


# ----------------------------- pure-JAX reference ---------------------------

def reference(x, params, *, patch_size, num_heads):
    with jax.default_matmul_precision("highest"):
        N, C, H, W = x.shape
        P = patch_size
        Hp, Wp = H // P, W // P
        S = Hp * Wp
        E = params["conv_w"].shape[1]
        L = params["wq"].shape[0]
        Hn = num_heads
        D = E // Hn
        scale = 1.0 / math.sqrt(D)

        xp = (x.reshape(N, C, Hp, P, Wp, P)
                .transpose(0, 2, 4, 1, 3, 5)
                .reshape(N, S, C * P * P))
        h = xp @ params["conv_w"] + params["conv_b"]           # (N, S, E)
        h = h + params["pos"][:S][None]

        def ln(z, g, b):
            mu = z.mean(-1, keepdims=True)
            var = ((z - mu) ** 2).mean(-1, keepdims=True)
            return (z - mu) * jax.lax.rsqrt(var + 1e-5) * g + b

        for l in range(L):
            q = (h @ params["wq"][l] + params["bq"][l]).reshape(N, S, Hn, D)
            k = (h @ params["wk"][l] + params["bk"][l]).reshape(N, S, Hn, D)
            v = (h @ params["wv"][l] + params["bv"][l]).reshape(N, S, Hn, D)
            s = jnp.einsum("nqhd,nkhd->nhqk", q * scale, k)
            p = jax.nn.softmax(s, axis=-1)
            o = jnp.einsum("nhqk,nkhd->nqhd", p, v).reshape(N, S, E)
            ctx = o @ params["wo"][l] + params["bo"][l]
            h = ln(h + ctx, params["ln1_g"][l], params["ln1_b"][l])
            f = jnp.maximum(h @ params["w1"][l] + params["b1"][l], 0.0)
            f = f @ params["w2"][l] + params["b2"][l]
            h = ln(h + f, params["ln2_g"][l], params["ln2_b"][l])

        return h.transpose(1, 0, 2)                            # (S, N, E)


if __name__ == "__main__":
    in_channels, patch_size, embedding_dim, num_heads = 4, 4, 32, 4
    dim_ff, num_layers = 64, 4

    key = jax.random.PRNGKey(0)
    kp, kx = jax.random.split(key)
    params = init_params(kp, in_channels, patch_size, embedding_dim,
                         num_heads, dim_ff, num_layers)
    kparams = prepare_kernel_params(params, num_heads)
    x = jax.random.normal(kx, (2, in_channels, 16, 16), jnp.float32)

    fwd = jax.jit(functools.partial(patch_transformer_encoder,
                                    patch_size=patch_size, num_heads=num_heads))
    out = jax.block_until_ready(fwd(x, kparams))

    S = (16 // patch_size) * (16 // patch_size)
    assert out.shape == (S, 2, embedding_dim), out.shape
    assert bool(jnp.all(jnp.isfinite(out)))

    ref = reference(x, params, patch_size=patch_size, num_heads=num_heads)
    max_err = float(jnp.max(jnp.abs(out - ref)))
    assert max_err < 1e-2, f"mismatch vs reference: max abs err = {max_err}"

    print("KERNEL_OK")
</pallas_src>

<mosaic_0001>
module attributes {stable_mosaic.version = 11 : i64} {
  func.func @_fused_encoder_kernel(%arg0: i32, %arg1: memref<1x16x64xf32, #tpu.memory_space<vmem>>, %arg2: memref<64x32xf32, #tpu.memory_space<vmem>>, %arg3: memref<1x32xf32, #tpu.memory_space<vmem>>, %arg4: memref<16x32xf32, #tpu.memory_space<vmem>>, %arg5: memref<4x32x96xf32, #tpu.memory_space<vmem>>, %arg6: memref<4x1x96xf32, #tpu.memory_space<vmem>>, %arg7: memref<4x32x32xf32, #tpu.memory_space<vmem>>, %arg8: memref<4x1x32xf32, #tpu.memory_space<vmem>>, %arg9: memref<4x1x32xf32, #tpu.memory_space<vmem>>, %arg10: memref<4x1x32xf32, #tpu.memory_space<vmem>>, %arg11: memref<4x32x64xf32, #tpu.memory_space<vmem>>, %arg12: memref<4x1x64xf32, #tpu.memory_space<vmem>>, %arg13: memref<4x64x32xf32, #tpu.memory_space<vmem>>, %arg14: memref<4x1x32xf32, #tpu.memory_space<vmem>>, %arg15: memref<4x1x32xf32, #tpu.memory_space<vmem>>, %arg16: memref<4x1x32xf32, #tpu.memory_space<vmem>>, %arg17: memref<1x16x32xf32, #tpu.memory_space<vmem>>) attributes {dimension_semantics = [#tpu.dimension_semantics<parallel>], iteration_bounds = array<i64: 2>, scalar_prefetch = 0 : i64, scratch_operands = 0 : i64, tpu.core_type = #tpu.core_type<tc>, window_params = [{transform_indices = @transform_0, window_bounds = array<i64: 1, 16, 64>}, {pipeline_mode = #tpu.pipeline_mode<synchronous>, transform_indices = @transform_1, window_bounds = array<i64: 64, 32>}, {pipeline_mode = #tpu.pipeline_mode<synchronous>, transform_indices = @transform_2, window_bounds = array<i64: 1, 32>}, {pipeline_mode = #tpu.pipeline_mode<synchronous>, transform_indices = @transform_3, window_bounds = array<i64: 16, 32>}, {pipeline_mode = #tpu.pipeline_mode<synchronous>, transform_indices = @transform_4, window_bounds = array<i64: 4, 32, 96>}, {pipeline_mode = #tpu.pipeline_mode<synchronous>, transform_indices = @transform_5, window_bounds = array<i64: 4, 1, 96>}, {pipeline_mode = #tpu.pipeline_mode<synchronous>, transform_indices = @transform_6, window_bounds = array<i64: 4, 32, 32>}, {pipeline_mode = #tpu.pipeline_mode<synchronous>, transform_indices = @transform_7, window_bounds = array<i64: 4, 1, 32>}, {pipeline_mode = #tpu.pipeline_mode<synchronous>, transform_indices = @transform_8, window_bounds = array<i64: 4, 1, 32>}, {pipeline_mode = #tpu.pipeline_mode<synchronous>, transform_indices = @transform_9, window_bounds = array<i64: 4, 1, 32>}, {pipeline_mode = #tpu.pipeline_mode<synchronous>, transform_indices = @transform_10, window_bounds = array<i64: 4, 32, 64>}, {pipeline_mode = #tpu.pipeline_mode<synchronous>, transform_indices = @transform_11, window_bounds = array<i64: 4, 1, 64>}, {pipeline_mode = #tpu.pipeline_mode<synchronous>, transform_indices = @transform_12, window_bounds = array<i64: 4, 64, 32>}, {pipeline_mode = #tpu.pipeline_mode<synchronous>, transform_indices = @transform_13, window_bounds = array<i64: 4, 1, 32>}, {pipeline_mode = #tpu.pipeline_mode<synchronous>, transform_indices = @transform_14, window_bounds = array<i64: 4, 1, 32>}, {pipeline_mode = #tpu.pipeline_mode<synchronous>, transform_indices = @transform_15, window_bounds = array<i64: 4, 1, 32>}, {transform_indices = @transform_16, window_bounds = array<i64: 1, 16, 32>}]} {
    %c0 = arith.constant 0 : index
    %c0_0 = arith.constant 0 : index
    %c0_1 = arith.constant 0 : index
    %0 = vector.load %arg1[%c0, %c0_0, %c0_1] : memref<1x16x64xf32, #tpu.memory_space<vmem>>, vector<1x16x64xf32>
    %1 = vector.shape_cast %0 : vector<1x16x64xf32> to vector<16x64xf32>
    %c0_2 = arith.constant 0 : index
    %c0_3 = arith.constant 0 : index
    %2 = vector.load %arg2[%c0_2, %c0_3] : memref<64x32xf32, #tpu.memory_space<vmem>>, vector<64x32xf32>
    %cst = arith.constant dense<0.000000e+00> : vector<16x32xf32>
    %3 = tpu.matmul %1, %2, %cst {dimension_numbers = #tpu.dot_dimension_numbers<[1], [0], [0], [1], [0, 0, 1, 1], [], []>} : vector<16x64xf32>, vector<64x32xf32>, vector<16x32xf32> -> vector<16x32xf32>
    %c0_4 = arith.constant 0 : index
    %c0_5 = arith.constant 0 : index
    %4 = vector.load %arg3[%c0_4, %c0_5] : memref<1x32xf32, #tpu.memory_space<vmem>>, vector<1x32xf32>
    %5 = vector.broadcast %4 : vector<1x32xf32> to vector<16x32xf32>
    %6 = arith.addf %3, %5 : vector<16x32xf32>
    %c0_6 = arith.constant 0 : index
    %c0_7 = arith.constant 0 : index
    %7 = vector.load %arg4[%c0_6, %c0_7] : memref<16x32xf32, #tpu.memory_space<vmem>>, vector<16x32xf32>
    %8 = arith.addf %6, %7 : vector<16x32xf32>
    %c0_8 = arith.constant 0 : index
    %c0_9 = arith.constant 0 : index
    %c0_10 = arith.constant 0 : index
    %9 = vector.load %arg5[%c0_8, %c0_9, %c0_10] : memref<4x32x96xf32, #tpu.memory_space<vmem>>, vector<1x32x96xf32>
    %10 = vector.shape_cast %9 : vector<1x32x96xf32> to vector<32x96xf32>
    %cst_11 = arith.constant dense<0.000000e+00> : vector<16x96xf32>
    %11 = tpu.matmul %8, %10, %cst_11 {dimension_numbers = #tpu.dot_dimension_numbers<[1], [0], [0], [1], [0, 0, 1, 1], [], []>} : vector<16x32xf32>, vector<32x96xf32>, vector<16x96xf32> -> vector<16x96xf32>
    %c0_12 = arith.constant 0 : index
    %c0_13 = arith.constant 0 : index
    %c0_14 = arith.constant 0 : index
    %12 = vector.load %arg6[%c0_12, %c0_13, %c0_14] : memref<4x1x96xf32, #tpu.memory_space<vmem>>, vector<1x1x96xf32>
    %13 = vector.shape_cast %12 : vector<1x1x96xf32> to vector<1x96xf32>
    %14 = vector.broadcast %13 : vector<1x96xf32> to vector<16x96xf32>
    %15 = arith.addf %11, %14 : vector<16x96xf32>
    %16 = vector.extract_strided_slice %15 {offsets = [0, 0], sizes = [16, 8], strides = [1, 1]} : vector<16x96xf32> to vector<16x8xf32>
    %17 = vector.extract_strided_slice %15 {offsets = [0, 32], sizes = [16, 8], strides = [1, 1]} : vector<16x96xf32> to vector<16x8xf32>
    %18 = vector.extract_strided_slice %15 {offsets = [0, 64], sizes = [16, 8], strides = [1, 1]} : vector<16x96xf32> to vector<16x8xf32>
    %cst_15 = arith.constant dense<0.000000e+00> : vector<16x16xf32>
    %19 = tpu.matmul %16, %17, %cst_15 {dimension_numbers = #tpu.dot_dimension_numbers<[1], [1], [0], [0], [0, 0, 1, 0], [], []>} : vector<16x8xf32>, vector<16x8xf32>, vector<16x16xf32> -> vector<16x16xf32>
    %cst_16 = arith.constant dense<0xFF800000> : vector<16xf32>
    %20 = vector.multi_reduction <maximumf>, %19, %cst_16 [1] : vector<16x16xf32> to vector<16xf32>
    %21 = vector.shape_cast %20 : vector<16xf32> to vector<16x1xf32>
    %22 = vector.broadcast %21 : vector<16x1xf32> to vector<16x16xf32>
    %23 = arith.subf %19, %22 : vector<16x16xf32>
    %24 = math.exp %23 : vector<16x16xf32>
    %cst_17 = arith.constant dense<0.000000e+00> : vector<16xf32>
    %25 = vector.multi_reduction <add>, %24, %cst_17 [1] : vector<16x16xf32> to vector<16xf32>
    %26 = vector.shape_cast %25 : vector<16xf32> to vector<16x1xf32>
    %27 = tpu.reciprocal %26 {approx = true} : vector<16x1xf32> -> vector<16x1xf32>
    %28 = vector.broadcast %27 : vector<16x1xf32> to vector<16x16xf32>
    %29 = arith.mulf %24, %28 : vector<16x16xf32>
    %cst_18 = arith.constant dense<0.000000e+00> : vector<16x8xf32>
    %30 = tpu.matmul %29, %18, %cst_18 {dimension_numbers = #tpu.dot_dimension_numbers<[1], [0], [0], [1], [0, 0, 1, 1], [], []>} : vector<16x16xf32>, vector<16x8xf32>, vector<16x8xf32> -> vector<16x8xf32>
    %31 = vector.extract_strided_slice %15 {offsets = [0, 8], sizes = [16, 8], strides = [1, 1]} : vector<16x96xf32> to vector<16x8xf32>
    %32 = vector.extract_strided_slice %15 {offsets = [0, 40], sizes = [16, 8], strides = [1, 1]} : vector<16x96xf32> to vector<16x8xf32>
    %33 = vector.extract_strided_slice %15 {offsets = [0, 72], sizes = [16, 8], strides = [1, 1]} : vector<16x96xf32> to vector<16x8xf32>
    %cst_19 = arith.constant dense<0.000000e+00> : vector<16x16xf32>
    %34 = tpu.matmul %31, %32, %cst_19 {dimension_numbers = #tpu.dot_dimension_numbers<[1], [1], [0], [0], [0, 0, 1, 0], [], []>} : vector<16x8xf32>, vector<16x8xf32>, vector<16x16xf32> -> vector<16x16xf32>
    %cst_20 = arith.constant dense<0xFF800000> : vector<16xf32>
    %35 = vector.multi_reduction <maximumf>, %34, %cst_20 [1] : vector<16x16xf32> to vector<16xf32>
    %36 = vector.shape_cast %35 : vector<16xf32> to vector<16x1xf32>
    %37 = vector.broadcast %36 : vector<16x1xf32> to vector<16x16xf32>
    %38 = arith.subf %34, %37 : vector<16x16xf32>
    %39 = math.exp %38 : vector<16x16xf32>
    %cst_21 = arith.constant dense<0.000000e+00> : vector<16xf32>
    %40 = vector.multi_reduction <add>, %39, %cst_21 [1] : vector<16x16xf32> to vector<16xf32>
    %41 = vector.shape_cast %40 : vector<16xf32> to vector<16x1xf32>
    %42 = tpu.reciprocal %41 {approx = true} : vector<16x1xf32> -> vector<16x1xf32>
    %43 = vector.broadcast %42 : vector<16x1xf32> to vector<16x16xf32>
    %44 = arith.mulf %39, %43 : vector<16x16xf32>
    %cst_22 = arith.constant dense<0.000000e+00> : vector<16x8xf32>
    %45 = tpu.matmul %44, %33, %cst_22 {dimension_numbers = #tpu.dot_dimension_numbers<[1], [0], [0], [1], [0, 0, 1, 1], [], []>} : vector<16x16xf32>, vector<16x8xf32>, vector<16x8xf32> -> vector<16x8xf32>
    %46 = vector.extract_strided_slice %15 {offsets = [0, 16], sizes = [16, 8], strides = [1, 1]} : vector<16x96xf32> to vector<16x8xf32>
    %47 = vector.extract_strided_slice %15 {offsets = [0, 48], sizes = [16, 8], strides = [1, 1]} : vector<16x96xf32> to vector<16x8xf32>
    %48 = vector.extract_strided_slice %15 {offsets = [0, 80], sizes = [16, 8], strides = [1, 1]} : vector<16x96xf32> to vector<16x8xf32>
    %cst_23 = arith.constant dense<0.000000e+00> : vector<16x16xf32>
    %49 = tpu.matmul %46, %47, %cst_23 {dimension_numbers = #tpu.dot_dimension_numbers<[1], [1], [0], [0], [0, 0, 1, 0], [], []>} : vector<16x8xf32>, vector<16x8xf32>, vector<16x16xf32> -> vector<16x16xf32>
    %cst_24 = arith.constant dense<0xFF800000> : vector<16xf32>
    %50 = vector.multi_reduction <maximumf>, %49, %cst_24 [1] : vector<16x16xf32> to vector<16xf32>
    %51 = vector.shape_cast %50 : vector<16xf32> to vector<16x1xf32>
    %52 = vector.broadcast %51 : vector<16x1xf32> to vector<16x16xf32>
    %53 = arith.subf %49, %52 : vector<16x16xf32>
    %54 = math.exp %53 : vector<16x16xf32>
    %cst_25 = arith.constant dense<0.000000e+00> : vector<16xf32>
    %55 = vector.multi_reduction <add>, %54, %cst_25 [1] : vector<16x16xf32> to vector<16xf32>
    %56 = vector.shape_cast %55 : vector<16xf32> to vector<16x1xf32>
    %57 = tpu.reciprocal %56 {approx = true} : vector<16x1xf32> -> vector<16x1xf32>
    %58 = vector.broadcast %57 : vector<16x1xf32> to vector<16x16xf32>
    %59 = arith.mulf %54, %58 : vector<16x16xf32>
    %cst_26 = arith.constant dense<0.000000e+00> : vector<16x8xf32>
    %60 = tpu.matmul %59, %48, %cst_26 {dimension_numbers = #tpu.dot_dimension_numbers<[1], [0], [0], [1], [0, 0, 1, 1], [], []>} : vector<16x16xf32>, vector<16x8xf32>, vector<16x8xf32> -> vector<16x8xf32>
    %61 = vector.extract_strided_slice %15 {offsets = [0, 24], sizes = [16, 8], strides = [1, 1]} : vector<16x96xf32> to vector<16x8xf32>
    %62 = vector.extract_strided_slice %15 {offsets = [0, 56], sizes = [16, 8], strides = [1, 1]} : vector<16x96xf32> to vector<16x8xf32>
    %63 = vector.extract_strided_slice %15 {offsets = [0, 88], sizes = [16, 8], strides = [1, 1]} : vector<16x96xf32> to vector<16x8xf32>
    %cst_27 = arith.constant dense<0.000000e+00> : vector<16x16xf32>
    %64 = tpu.matmul %61, %62, %cst_27 {dimension_numbers = #tpu.dot_dimension_numbers<[1], [1], [0], [0], [0, 0, 1, 0], [], []>} : vector<16x8xf32>, vector<16x8xf32>, vector<16x16xf32> -> vector<16x16xf32>
    %cst_28 = arith.constant dense<0xFF800000> : vector<16xf32>
    %65 = vector.multi_reduction <maximumf>, %64, %cst_28 [1] : vector<16x16xf32> to vector<16xf32>
    %66 = vector.shape_cast %65 : vector<16xf32> to vector<16x1xf32>
    %67 = vector.broadcast %66 : vector<16x1xf32> to vector<16x16xf32>
    %68 = arith.subf %64, %67 : vector<16x16xf32>
    %69 = math.exp %68 : vector<16x16xf32>
    %cst_29 = arith.constant dense<0.000000e+00> : vector<16xf32>
    %70 = vector.multi_reduction <add>, %69, %cst_29 [1] : vector<16x16xf32> to vector<16xf32>
    %71 = vector.shape_cast %70 : vector<16xf32> to vector<16x1xf32>
    %72 = tpu.reciprocal %71 {approx = true} : vector<16x1xf32> -> vector<16x1xf32>
    %73 = vector.broadcast %72 : vector<16x1xf32> to vector<16x16xf32>
    %74 = arith.mulf %69, %73 : vector<16x16xf32>
    %cst_30 = arith.constant dense<0.000000e+00> : vector<16x8xf32>
    %75 = tpu.matmul %74, %63, %cst_30 {dimension_numbers = #tpu.dot_dimension_numbers<[1], [0], [0], [1], [0, 0, 1, 1], [], []>} : vector<16x16xf32>, vector<16x8xf32>, vector<16x8xf32> -> vector<16x8xf32>
    %76 = tpu.concatenate %30, %45, %60, %75 in 1 : vector<16x8xf32>, vector<16x8xf32>, vector<16x8xf32>, vector<16x8xf32> -> vector<16x32xf32>
    %c0_31 = arith.constant 0 : index
    %c0_32 = arith.constant 0 : index
    %c0_33 = arith.constant 0 : index
    %77 = vector.load %arg7[%c0_31, %c0_32, %c0_33] : memref<4x32x32xf32, #tpu.memory_space<vmem>>, vector<1x32x32xf32>
    %78 = vector.shape_cast %77 : vector<1x32x32xf32> to vector<32x32xf32>
    %cst_34 = arith.constant dense<0.000000e+00> : vector<16x32xf32>
    %79 = tpu.matmul %76, %78, %cst_34 {dimension_numbers = #tpu.dot_dimension_numbers<[1], [0], [0], [1], [0, 0, 1, 1], [], []>} : vector<16x32xf32>, vector<32x32xf32>, vector<16x32xf32> -> vector<16x32xf32>
    %c0_35 = arith.constant 0 : index
    %c0_36 = arith.constant 0 : index
    %c0_37 = arith.constant 0 : index
    %80 = vector.load %arg8[%c0_35, %c0_36, %c0_37] : memref<4x1x32xf32, #tpu.memory_space<vmem>>, vector<1x1x32xf32>
    %81 = vector.shape_cast %80 : vector<1x1x32xf32> to vector<1x32xf32>
    %82 = vector.broadcast %81 : vector<1x32xf32> to vector<16x32xf32>
    %83 = arith.addf %79, %82 : vector<16x32xf32>
    %84 = arith.addf %8, %83 : vector<16x32xf32>
    %c0_38 = arith.constant 0 : index
    %c0_39 = arith.constant 0 : index
    %c0_40 = arith.constant 0 : index
    %85 = vector.load %arg9[%c0_38, %c0_39, %c0_40] : memref<4x1x32xf32, #tpu.memory_space<vmem>>, vector<1x1x32xf32>
    %86 = vector.shape_cast %85 : vector<1x1x32xf32> to vector<1x32xf32>
    %c0_41 = arith.constant 0 : index
    %c0_42 = arith.constant 0 : index
    %c0_43 = arith.constant 0 : index
    %87 = vector.load %arg10[%c0_41, %c0_42, %c0_43] : memref<4x1x32xf32, #tpu.memory_space<vmem>>, vector<1x1x32xf32>
    %88 = vector.shape_cast %87 : vector<1x1x32xf32> to vector<1x32xf32>
    %cst_44 = arith.constant dense<0.000000e+00> : vector<16xf32>
    %89 = vector.multi_reduction <add>, %84, %cst_44 [1] : vector<16x32xf32> to vector<16xf32>
    %90 = vector.shape_cast %89 : vector<16xf32> to vector<16x1xf32>
    %cst_45 = arith.constant 3.200000e+01 : f32
    %91 = vector.broadcast %cst_45 : f32 to vector<16x1xf32>
    %92 = arith.divf %90, %91 : vector<16x1xf32>
    %93 = vector.broadcast %92 : vector<16x1xf32> to vector<16x32xf32>
    %94 = arith.subf %84, %93 : vector<16x32xf32>
    %95 = arith.mulf %94, %94 : vector<16x32xf32>
    %cst_46 = arith.constant dense<0.000000e+00> : vector<16xf32>
    %96 = vector.multi_reduction <add>, %95, %cst_46 [1] : vector<16x32xf32> to vector<16xf32>
    %97 = vector.shape_cast %96 : vector<16xf32> to vector<16x1xf32>
    %cst_47 = arith.constant 3.200000e+01 : f32
    %98 = vector.broadcast %cst_47 : f32 to vector<16x1xf32>
    %99 = arith.divf %97, %98 : vector<16x1xf32>
    %100 = vector.broadcast %92 : vector<16x1xf32> to vector<16x32xf32>
    %101 = arith.subf %84, %100 : vector<16x32xf32>
    %cst_48 = arith.constant 9.99999974E-6 : f32
    %102 = vector.broadcast %cst_48 : f32 to vector<16x1xf32>
    %103 = arith.addf %99, %102 : vector<16x1xf32>
    %104 = math.rsqrt %103 : vector<16x1xf32>
    %105 = vector.broadcast %104 : vector<16x1xf32> to vector<16x32xf32>
    %106 = arith.mulf %101, %105 : vector<16x32xf32>
    %107 = vector.broadcast %86 : vector<1x32xf32> to vector<16x32xf32>
    %108 = arith.mulf %106, %107 : vector<16x32xf32>
    %109 = vector.broadcast %88 : vector<1x32xf32> to vector<16x32xf32>
    %110 = arith.addf %108, %109 : vector<16x32xf32>
    %c0_49 = arith.constant 0 : index
    %c0_50 = arith.constant 0 : index
    %c0_51 = arith.constant 0 : index
    %111 = vector.load %arg11[%c0_49, %c0_50, %c0_51] : memref<4x32x64xf32, #tpu.memory_space<vmem>>, vector<1x32x64xf32>
    %112 = vector.shape_cast %111 : vector<1x32x64xf32> to vector<32x64xf32>
    %cst_52 = arith.constant dense<0.000000e+00> : vector<16x64xf32>
    %113 = tpu.matmul %110, %112, %cst_52 {dimension_numbers = #tpu.dot_dimension_numbers<[1], [0], [0], [1], [0, 0, 1, 1], [], []>} : vector<16x32xf32>, vector<32x64xf32>, vector<16x64xf32> -> vector<16x64xf32>
    %c0_53 = arith.constant 0 : index
    %c0_54 = arith.constant 0 : index
    %c0_55 = arith.constant 0 : index
    %114 = vector.load %arg12[%c0_53, %c0_54, %c0_55] : memref<4x1x64xf32, #tpu.memory_space<vmem>>, vector<1x1x64xf32>
    %115 = vector.shape_cast %114 : vector<1x1x64xf32> to vector<1x64xf32>
    %116 = vector.broadcast %115 : vector<1x64xf32> to vector<16x64xf32>
    %117 = arith.addf %113, %116 : vector<16x64xf32>
    %cst_56 = arith.constant 0.000000e+00 : f32
    %118 = vector.broadcast %cst_56 : f32 to vector<16x64xf32>
    %119 = arith.maximumf %117, %118 : vector<16x64xf32>
    %c0_57 = arith.constant 0 : index
    %c0_58 = arith.constant 0 : index
    %c0_59 = arith.constant 0 : index
    %120 = vector.load %arg13[%c0_57, %c0_58, %c0_59] : memref<4x64x32xf32, #tpu.memory_space<vmem>>, vector<1x64x32xf32>
    %121 = vector.shape_cast %120 : vector<1x64x32xf32> to vector<64x32xf32>
    %cst_60 = arith.constant dense<0.000000e+00> : vector<16x32xf32>
    %122 = tpu.matmul %119, %121, %cst_60 {dimension_numbers = #tpu.dot_dimension_numbers<[1], [0], [0], [1], [0, 0, 1, 1], [], []>} : vector<16x64xf32>, vector<64x32xf32>, vector<16x32xf32> -> vector<16x32xf32>
    %c0_61 = arith.constant 0 : index
    %c0_62 = arith.constant 0 : index
    %c0_63 = arith.constant 0 : index
    %123 = vector.load %arg14[%c0_61, %c0_62, %c0_63] : memref<4x1x32xf32, #tpu.memory_space<vmem>>, vector<1x1x32xf32>
    %124 = vector.shape_cast %123 : vector<1x1x32xf32> to vector<1x32xf32>
    %125 = vector.broadcast %124 : vector<1x32xf32> to vector<16x32xf32>
    %126 = arith.addf %122, %125 : vector<16x32xf32>
    %127 = arith.addf %110, %126 : vector<16x32xf32>
    %c0_64 = arith.constant 0 : index
    %c0_65 = arith.constant 0 : index
    %c0_66 = arith.constant 0 : index
    %128 = vector.load %arg15[%c0_64, %c0_65, %c0_66] : memref<4x1x32xf32, #tpu.memory_space<vmem>>, vector<1x1x32xf32>
    %129 = vector.shape_cast %128 : vector<1x1x32xf32> to vector<1x32xf32>
    %c0_67 = arith.constant 0 : index
    %c0_68 = arith.constant 0 : index
    %c0_69 = arith.constant 0 : index
    %130 = vector.load %arg16[%c0_67, %c0_68, %c0_69] : memref<4x1x32xf32, #tpu.memory_space<vmem>>, vector<1x1x32xf32>
    %131 = vector.shape_cast %130 : vector<1x1x32xf32> to vector<1x32xf32>
    %cst_70 = arith.constant dense<0.000000e+00> : vector<16xf32>
    %132 = vector.multi_reduction <add>, %127, %cst_70 [1] : vector<16x32xf32> to vector<16xf32>
    %133 = vector.shape_cast %132 : vector<16xf32> to vector<16x1xf32>
    %cst_71 = arith.constant 3.200000e+01 : f32
    %134 = vector.broadcast %cst_71 : f32 to vector<16x1xf32>
    %135 = arith.divf %133, %134 : vector<16x1xf32>
    %136 = vector.broadcast %135 : vector<16x1xf32> to vector<16x32xf32>
    %137 = arith.subf %127, %136 : vector<16x32xf32>
    %138 = arith.mulf %137, %137 : vector<16x32xf32>
    %cst_72 = arith.constant dense<0.000000e+00> : vector<16xf32>
    %139 = vector.multi_reduction <add>, %138, %cst_72 [1] : vector<16x32xf32> to vector<16xf32>
    %140 = vector.shape_cast %139 : vector<16xf32> to vector<16x1xf32>
    %cst_73 = arith.constant 3.200000e+01 : f32
    %141 = vector.broadcast %cst_73 : f32 to vector<16x1xf32>
    %142 = arith.divf %140, %141 : vector<16x1xf32>
    %143 = vector.broadcast %135 : vector<16x1xf32> to vector<16x32xf32>
    %144 = arith.subf %127, %143 : vector<16x32xf32>
    %cst_74 = arith.constant 9.99999974E-6 : f32
    %145 = vector.broadcast %cst_74 : f32 to vector<16x1xf32>
    %146 = arith.addf %142, %145 : vector<16x1xf32>
    %147 = math.rsqrt %146 : vector<16x1xf32>
    %148 = vector.broadcast %147 : vector<16x1xf32> to vector<16x32xf32>
    %149 = arith.mulf %144, %148 : vector<16x32xf32>
    %150 = vector.broadcast %129 : vector<1x32xf32> to vector<16x32xf32>
    %151 = arith.mulf %149, %150 : vector<16x32xf32>
    %152 = vector.broadcast %131 : vector<1x32xf32> to vector<16x32xf32>
    %153 = arith.addf %151, %152 : vector<16x32xf32>
    %c1 = arith.constant 1 : index
    %c0_75 = arith.constant 0 : index
    %c0_76 = arith.constant 0 : index
    %154 = vector.load %arg5[%c1, %c0_75, %c0_76] : memref<4x32x96xf32, #tpu.memory_space<vmem>>, vector<1x32x96xf32>
    %155 = vector.shape_cast %154 : vector<1x32x96xf32> to vector<32x96xf32>
    %cst_77 = arith.constant dense<0.000000e+00> : vector<16x96xf32>
    %156 = tpu.matmul %153, %155, %cst_77 {dimension_numbers = #tpu.dot_dimension_numbers<[1], [0], [0], [1], [0, 0, 1, 1], [], []>} : vector<16x32xf32>, vector<32x96xf32>, vector<16x96xf32> -> vector<16x96xf32>
    %c1_78 = arith.constant 1 : index
    %c0_79 = arith.constant 0 : index
    %c0_80 = arith.constant 0 : index
    %157 = vector.load %arg6[%c1_78, %c0_79, %c0_80] : memref<4x1x96xf32, #tpu.memory_space<vmem>>, vector<1x1x96xf32>
    %158 = vector.shape_cast %157 : vector<1x1x96xf32> to vector<1x96xf32>
    %159 = vector.broadcast %158 : vector<1x96xf32> to vector<16x96xf32>
    %160 = arith.addf %156, %159 : vector<16x96xf32>
    %161 = vector.extract_strided_slice %160 {offsets = [0, 0], sizes = [16, 8], strides = [1, 1]} : vector<16x96xf32> to vector<16x8xf32>
    %162 = vector.extract_strided_slice %160 {offsets = [0, 32], sizes = [16, 8], strides = [1, 1]} : vector<16x96xf32> to vector<16x8xf32>
    %163 = vector.extract_strided_slice %160 {offsets = [0, 64], sizes = [16, 8], strides = [1, 1]} : vector<16x96xf32> to vector<16x8xf32>
    %cst_81 = arith.constant dense<0.000000e+00> : vector<16x16xf32>
    %164 = tpu.matmul %161, %162, %cst_81 {dimension_numbers = #tpu.dot_dimension_numbers<[1], [1], [0], [0], [0, 0, 1, 0], [], []>} : vector<16x8xf32>, vector<16x8xf32>, vector<16x16xf32> -> vector<16x16xf32>
    %cst_82 = arith.constant dense<0xFF800000> : vector<16xf32>
    %165 = vector.multi_reduction <maximumf>, %164, %cst_82 [1] : vector<16x16xf32> to vector<16xf32>
    %166 = vector.shape_cast %165 : vector<16xf32> to vector<16x1xf32>
    %167 = vector.broadcast %166 : vector<16x1xf32> to vector<16x16xf32>
    %168 = arith.subf %164, %167 : vector<16x16xf32>
    %169 = math.exp %168 : vector<16x16xf32>
    %cst_83 = arith.constant dense<0.000000e+00> : vector<16xf32>
    %170 = vector.multi_reduction <add>, %169, %cst_83 [1] : vector<16x16xf32> to vector<16xf32>
    %171 = vector.shape_cast %170 : vector<16xf32> to vector<16x1xf32>
    %172 = tpu.reciprocal %171 {approx = true} : vector<16x1xf32> -> vector<16x1xf32>
    %173 = vector.broadcast %172 : vector<16x1xf32> to vector<16x16xf32>
    %174 = arith.mulf %169, %173 : vector<16x16xf32>
    %cst_84 = arith.constant dense<0.000000e+00> : vector<16x8xf32>
    %175 = tpu.matmul %174, %163, %cst_84 {dimension_numbers = #tpu.dot_dimension_numbers<[1], [0], [0], [1], [0, 0, 1, 1], [], []>} : vector<16x16xf32>, vector<16x8xf32>, vector<16x8xf32> -> vector<16x8xf32>
    %176 = vector.extract_strided_slice %160 {offsets = [0, 8], sizes = [16, 8], strides = [1, 1]} : vector<16x96xf32> to vector<16x8xf32>
    %177 = vector.extract_strided_slice %160 {offsets = [0, 40], sizes = [16, 8], strides = [1, 1]} : vector<16x96xf32> to vector<16x8xf32>
    %178 = vector.extract_strided_slice %160 {offsets = [0, 72], sizes = [16, 8], strides = [1, 1]} : vector<16x96xf32> to vector<16x8xf32>
    %cst_85 = arith.constant dense<0.000000e+00> : vector<16x16xf32>
    %179 = tpu.matmul %176, %177, %cst_85 {dimension_numbers = #tpu.dot_dimension_numbers<[1], [1], [0], [0], [0, 0, 1, 0], [], []>} : vector<16x8xf32>, vector<16x8xf32>, vector<16x16xf32> -> vector<16x16xf32>
    %cst_86 = arith.constant dense<0xFF800000> : vector<16xf32>
    %180 = vector.multi_reduction <maximumf>, %179, %cst_86 [1] : vector<16x16xf32> to vector<16xf32>
    %181 = vector.shape_cast %180 : vector<16xf32> to vector<16x1xf32>
    %182 = vector.broadcast %181 : vector<16x1xf32> to vector<16x16xf32>
    %183 = arith.subf %179, %182 : vector<16x16xf32>
    %184 = math.exp %183 : vector<16x16xf32>
    %cst_87 = arith.constant dense<0.000000e+00> : vector<16xf32>
    %185 = vector.multi_reduction <add>, %184, %cst_87 [1] : vector<16x16xf32> to vector<16xf32>
    %186 = vector.shape_cast %185 : vector<16xf32> to vector<16x1xf32>
    %187 = tpu.reciprocal %186 {approx = true} : vector<16x1xf32> -> vector<16x1xf32>
    %188 = vector.broadcast %187 : vector<16x1xf32> to vector<16x16xf32>
    %189 = arith.mulf %184, %188 : vector<16x16xf32>
    %cst_88 = arith.constant dense<0.000000e+00> : vector<16x8xf32>
    %190 = tpu.matmul %189, %178, %cst_88 {dimension_numbers = #tpu.dot_dimension_numbers<[1], [0], [0], [1], [0, 0, 1, 1], [], []>} : vector<16x16xf32>, vector<16x8xf32>, vector<16x8xf32> -> vector<16x8xf32>
    %191 = vector.extract_strided_slice %160 {offsets = [0, 16], sizes = [16, 8], strides = [1, 1]} : vector<16x96xf32> to vector<16x8xf32>
    %192 = vector.extract_strided_slice %160 {offsets = [0, 48], sizes = [16, 8], strides = [1, 1]} : vector<16x96xf32> to vector<16x8xf32>
    %193 = vector.extract_strided_slice %160 {offsets = [0, 80], sizes = [16, 8], strides = [1, 1]} : vector<16x96xf32> to vector<16x8xf32>
    %cst_89 = arith.constant dense<0.000000e+00> : vector<16x16xf32>
    %194 = tpu.matmul %191, %192, %cst_89 {dimension_numbers = #tpu.dot_dimension_numbers<[1], [1], [0], [0], [0, 0, 1, 0], [], []>} : vector<16x8xf32>, vector<16x8xf32>, vector<16x16xf32> -> vector<16x16xf32>
    %cst_90 = arith.constant dense<0xFF800000> : vector<16xf32>
    %195 = vector.multi_reduction <maximumf>, %194, %cst_90 [1] : vector<16x16xf32> to vector<16xf32>
    %196 = vector.shape_cast %195 : vector<16xf32> to vector<16x1xf32>
    %197 = vector.broadcast %196 : vector<16x1xf32> to vector<16x16xf32>
    %198 = arith.subf %194, %197 : vector<16x16xf32>
    %199 = math.exp %198 : vector<16x16xf32>
    %cst_91 = arith.constant dense<0.000000e+00> : vector<16xf32>
    %200 = vector.multi_reduction <add>, %199, %cst_91 [1] : vector<16x16xf32> to vector<16xf32>
    %201 = vector.shape_cast %200 : vector<16xf32> to vector<16x1xf32>
    %202 = tpu.reciprocal %201 {approx = true} : vector<16x1xf32> -> vector<16x1xf32>
    %203 = vector.broadcast %202 : vector<16x1xf32> to vector<16x16xf32>
    %204 = arith.mulf %199, %203 : vector<16x16xf32>
    %cst_92 = arith.constant dense<0.000000e+00> : vector<16x8xf32>
    %205 = tpu.matmul %204, %193, %cst_92 {dimension_numbers = #tpu.dot_dimension_numbers<[1], [0], [0], [1], [0, 0, 1, 1], [], []>} : vector<16x16xf32>, vector<16x8xf32>, vector<16x8xf32> -> vector<16x8xf32>
    %206 = vector.extract_strided_slice %160 {offsets = [0, 24], sizes = [16, 8], strides = [1, 1]} : vector<16x96xf32> to vector<16x8xf32>
    %207 = vector.extract_strided_slice %160 {offsets = [0, 56], sizes = [16, 8], strides = [1, 1]} : vector<16x96xf32> to vector<16x8xf32>
    %208 = vector.extract_strided_slice %160 {offsets = [0, 88], sizes = [16, 8], strides = [1, 1]} : vector<16x96xf32> to vector<16x8xf32>
    %cst_93 = arith.constant dense<0.000000e+00> : vector<16x16xf32>
    %209 = tpu.matmul %206, %207, %cst_93 {dimension_numbers = #tpu.dot_dimension_numbers<[1], [1], [0], [0], [0, 0, 1, 0], [], []>} : vector<16x8xf32>, vector<16x8xf32>, vector<16x16xf32> -> vector<16x16xf32>
    %cst_94 = arith.constant dense<0xFF800000> : vector<16xf32>
    %210 = vector.multi_reduction <maximumf>, %209, %cst_94 [1] : vector<16x16xf32> to vector<16xf32>
    %211 = vector.shape_cast %210 : vector<16xf32> to vector<16x1xf32>
    %212 = vector.broadcast %211 : vector<16x1xf32> to vector<16x16xf32>
    %213 = arith.subf %209, %212 : vector<16x16xf32>
    %214 = math.exp %213 : vector<16x16xf32>
    %cst_95 = arith.constant dense<0.000000e+00> : vector<16xf32>
    %215 = vector.multi_reduction <add>, %214, %cst_95 [1] : vector<16x16xf32> to vector<16xf32>
    %216 = vector.shape_cast %215 : vector<16xf32> to vector<16x1xf32>
    %217 = tpu.reciprocal %216 {approx = true} : vector<16x1xf32> -> vector<16x1xf32>
    %218 = vector.broadcast %217 : vector<16x1xf32> to vector<16x16xf32>
    %219 = arith.mulf %214, %218 : vector<16x16xf32>
    %cst_96 = arith.constant dense<0.000000e+00> : vector<16x8xf32>
    %220 = tpu.matmul %219, %208, %cst_96 {dimension_numbers = #tpu.dot_dimension_numbers<[1], [0], [0], [1], [0, 0, 1, 1], [], []>} : vector<16x16xf32>, vector<16x8xf32>, vector<16x8xf32> -> vector<16x8xf32>
    %221 = tpu.concatenate %175, %190, %205, %220 in 1 : vector<16x8xf32>, vector<16x8xf32>, vector<16x8xf32>, vector<16x8xf32> -> vector<16x32xf32>
    %c1_97 = arith.constant 1 : index
    %c0_98 = arith.constant 0 : index
    %c0_99 = arith.constant 0 : index
    %222 = vector.load %arg7[%c1_97, %c0_98, %c0_99] : memref<4x32x32xf32, #tpu.memory_space<vmem>>, vector<1x32x32xf32>
    %223 = vector.shape_cast %222 : vector<1x32x32xf32> to vector<32x32xf32>
    %cst_100 = arith.constant dense<0.000000e+00> : vector<16x32xf32>
    %224 = tpu.matmul %221, %223, %cst_100 {dimension_numbers = #tpu.dot_dimension_numbers<[1], [0], [0], [1], [0, 0, 1, 1], [], []>} : vector<16x32xf32>, vector<32x32xf32>, vector<16x32xf32> -> vector<16x32xf32>
    %c1_101 = arith.constant 1 : index
    %c0_102 = arith.constant 0 : index
    %c0_103 = arith.constant 0 : index
    %225 = vector.load %arg8[%c1_101, %c0_102, %c0_103] : memref<4x1x32xf32, #tpu.memory_space<vmem>>, vector<1x1x32xf32>
    %226 = vector.shape_cast %225 : vector<1x1x32xf32> to vector<1x32xf32>
    %227 = vector.broadcast %226 : vector<1x32xf32> to vector<16x32xf32>
    %228 = arith.addf %224, %227 : vector<16x32xf32>
    %229 = arith.addf %153, %228 : vector<16x32xf32>
    %c1_104 = arith.constant 1 : index
    %c0_105 = arith.constant 0 : index
    %c0_106 = arith.constant 0 : index
    %230 = vector.load %arg9[%c1_104, %c0_105, %c0_106] : memref<4x1x32xf32, #tpu.memory_space<vmem>>, vector<1x1x32xf32>
    %231 = vector.shape_cast %230 : vector<1x1x32xf32> to vector<1x32xf32>
    %c1_107 = arith.constant 1 : index
    %c0_108 = arith.constant 0 : index
    %c0_109 = arith.constant 0 : index
    %232 = vector.load %arg10[%c1_107, %c0_108, %c0_109] : memref<4x1x32xf32, #tpu.memory_space<vmem>>, vector<1x1x32xf32>
    %233 = vector.shape_cast %232 : vector<1x1x32xf32> to vector<1x32xf32>
    %cst_110 = arith.constant dense<0.000000e+00> : vector<16xf32>
    %234 = vector.multi_reduction <add>, %229, %cst_110 [1] : vector<16x32xf32> to vector<16xf32>
    %235 = vector.shape_cast %234 : vector<16xf32> to vector<16x1xf32>
    %cst_111 = arith.constant 3.200000e+01 : f32
    %236 = vector.broadcast %cst_111 : f32 to vector<16x1xf32>
    %237 = arith.divf %235, %236 : vector<16x1xf32>
    %238 = vector.broadcast %237 : vector<16x1xf32> to vector<16x32xf32>
    %239 = arith.subf %229, %238 : vector<16x32xf32>
    %240 = arith.mulf %239, %239 : vector<16x32xf32>
    %cst_112 = arith.constant dense<0.000000e+00> : vector<16xf32>
    %241 = vector.multi_reduction <add>, %240, %cst_112 [1] : vector<16x32xf32> to vector<16xf32>
    %242 = vector.shape_cast %241 : vector<16xf32> to vector<16x1xf32>
    %cst_113 = arith.constant 3.200000e+01 : f32
    %243 = vector.broadcast %cst_113 : f32 to vector<16x1xf32>
    %244 = arith.divf %242, %243 : vector<16x1xf32>
    %245 = vector.broadcast %237 : vector<16x1xf32> to vector<16x32xf32>
    %246 = arith.subf %229, %245 : vector<16x32xf32>
    %cst_114 = arith.constant 9.99999974E-6 : f32
    %247 = vector.broadcast %cst_114 : f32 to vector<16x1xf32>
    %248 = arith.addf %244, %247 : vector<16x1xf32>
    %249 = math.rsqrt %248 : vector<16x1xf32>
    %250 = vector.broadcast %249 : vector<16x1xf32> to vector<16x32xf32>
    %251 = arith.mulf %246, %250 : vector<16x32xf32>
    %252 = vector.broadcast %231 : vector<1x32xf32> to vector<16x32xf32>
    %253 = arith.mulf %251, %252 : vector<16x32xf32>
    %254 = vector.broadcast %233 : vector<1x32xf32> to vector<16x32xf32>
    %255 = arith.addf %253, %254 : vector<16x32xf32>
    %c1_115 = arith.constant 1 : index
    %c0_116 = arith.constant 0 : index
    %c0_117 = arith.constant 0 : index
    %256 = vector.load %arg11[%c1_115, %c0_116, %c0_117] : memref<4x32x64xf32, #tpu.memory_space<vmem>>, vector<1x32x64xf32>
    %257 = vector.shape_cast %256 : vector<1x32x64xf32> to vector<32x64xf32>
    %cst_118 = arith.constant dense<0.000000e+00> : vector<16x64xf32>
    %258 = tpu.matmul %255, %257, %cst_118 {dimension_numbers = #tpu.dot_dimension_numbers<[1], [0], [0], [1], [0, 0, 1, 1], [], []>} : vector<16x32xf32>, vector<32x64xf32>, vector<16x64xf32> -> vector<16x64xf32>
    %c1_119 = arith.constant 1 : index
    %c0_120 = arith.constant 0 : index
    %c0_121 = arith.constant 0 : index
    %259 = vector.load %arg12[%c1_119, %c0_120, %c0_121] : memref<4x1x64xf32, #tpu.memory_space<vmem>>, vector<1x1x64xf32>
    %260 = vector.shape_cast %259 : vector<1x1x64xf32> to vector<1x64xf32>
    %261 = vector.broadcast %260 : vector<1x64xf32> to vector<16x64xf32>
    %262 = arith.addf %258, %261 : vector<16x64xf32>
    %cst_122 = arith.constant 0.000000e+00 : f32
    %263 = vector.broadcast %cst_122 : f32 to vector<16x64xf32>
    %264 = arith.maximumf %262, %263 : vector<16x64xf32>
    %c1_123 = arith.constant 1 : index
    %c0_124 = arith.constant 0 : index
    %c0_125 = arith.constant 0 : index
    %265 = vector.load %arg13[%c1_123, %c0_124, %c0_125] : memref<4x64x32xf32, #tpu.memory_space<vmem>>, vector<1x64x32xf32>
    %266 = vector.shape_cast %265 : vector<1x64x32xf32> to vector<64x32xf32>
    %cst_126 = arith.constant dense<0.000000e+00> : vector<16x32xf32>
    %267 = tpu.matmul %264, %266, %cst_126 {dimension_numbers = #tpu.dot_dimension_numbers<[1], [0], [0], [1], [0, 0, 1, 1], [], []>} : vector<16x64xf32>, vector<64x32xf32>, vector<16x32xf32> -> vector<16x32xf32>
    %c1_127 = arith.constant 1 : index
    %c0_128 = arith.constant 0 : index
    %c0_129 = arith.constant 0 : index
    %268 = vector.load %arg14[%c1_127, %c0_128, %c0_129] : memref<4x1x32xf32, #tpu.memory_space<vmem>>, vector<1x1x32xf32>
    %269 = vector.shape_cast %268 : vector<1x1x32xf32> to vector<1x32xf32>
    %270 = vector.broadcast %269 : vector<1x32xf32> to vector<16x32xf32>
    %271 = arith.addf %267, %270 : vector<16x32xf32>
    %272 = arith.addf %255, %271 : vector<16x32xf32>
    %c1_130 = arith.constant 1 : index
    %c0_131 = arith.constant 0 : index
    %c0_132 = arith.constant 0 : index
    %273 = vector.load %arg15[%c1_130, %c0_131, %c0_132] : memref<4x1x32xf32, #tpu.memory_space<vmem>>, vector<1x1x32xf32>
    %274 = vector.shape_cast %273 : vector<1x1x32xf32> to vector<1x32xf32>
    %c1_133 = arith.constant 1 : index
    %c0_134 = arith.constant 0 : index
    %c0_135 = arith.constant 0 : index
    %275 = vector.load %arg16[%c1_133, %c0_134, %c0_135] : memref<4x1x32xf32, #tpu.memory_space<vmem>>, vector<1x1x32xf32>
    %276 = vector.shape_cast %275 : vector<1x1x32xf32> to vector<1x32xf32>
    %cst_136 = arith.constant dense<0.000000e+00> : vector<16xf32>
    %277 = vector.multi_reduction <add>, %272, %cst_136 [1] : vector<16x32xf32> to vector<16xf32>
    %278 = vector.shape_cast %277 : vector<16xf32> to vector<16x1xf32>
    %cst_137 = arith.constant 3.200000e+01 : f32
    %279 = vector.broadcast %cst_137 : f32 to vector<16x1xf32>
    %280 = arith.divf %278, %279 : vector<16x1xf32>
    %281 = vector.broadcast %280 : vector<16x1xf32> to vector<16x32xf32>
    %282 = arith.subf %272, %281 : vector<16x32xf32>
    %283 = arith.mulf %282, %282 : vector<16x32xf32>
    %cst_138 = arith.constant dense<0.000000e+00> : vector<16xf32>
    %284 = vector.multi_reduction <add>, %283, %cst_138 [1] : vector<16x32xf32> to vector<16xf32>
    %285 = vector.shape_cast %284 : vector<16xf32> to vector<16x1xf32>
    %cst_139 = arith.constant 3.200000e+01 : f32
    %286 = vector.broadcast %cst_139 : f32 to vector<16x1xf32>
    %287 = arith.divf %285, %286 : vector<16x1xf32>
    %288 = vector.broadcast %280 : vector<16x1xf32> to vector<16x32xf32>
    %289 = arith.subf %272, %288 : vector<16x32xf32>
    %cst_140 = arith.constant 9.99999974E-6 : f32
    %290 = vector.broadcast %cst_140 : f32 to vector<16x1xf32>
    %291 = arith.addf %287, %290 : vector<16x1xf32>
    %292 = math.rsqrt %291 : vector<16x1xf32>
    %293 = vector.broadcast %292 : vector<16x1xf32> to vector<16x32xf32>
    %294 = arith.mulf %289, %293 : vector<16x32xf32>
    %295 = vector.broadcast %274 : vector<1x32xf32> to vector<16x32xf32>
    %296 = arith.mulf %294, %295 : vector<16x32xf32>
    %297 = vector.broadcast %276 : vector<1x32xf32> to vector<16x32xf32>
    %298 = arith.addf %296, %297 : vector<16x32xf32>
    %c2 = arith.constant 2 : index
    %c0_141 = arith.constant 0 : index
    %c0_142 = arith.constant 0 : index
    %299 = vector.load %arg5[%c2, %c0_141, %c0_142] : memref<4x32x96xf32, #tpu.memory_space<vmem>>, vector<1x32x96xf32>
    %300 = vector.shape_cast %299 : vector<1x32x96xf32> to vector<32x96xf32>
    %cst_143 = arith.constant dense<0.000000e+00> : vector<16x96xf32>
    %301 = tpu.matmul %298, %300, %cst_143 {dimension_numbers = #tpu.dot_dimension_numbers<[1], [0], [0], [1], [0, 0, 1, 1], [], []>} : vector<16x32xf32>, vector<32x96xf32>, vector<16x96xf32> -> vector<16x96xf32>
    %c2_144 = arith.constant 2 : index
    %c0_145 = arith.constant 0 : index
    %c0_146 = arith.constant 0 : index
    %302 = vector.load %arg6[%c2_144, %c0_145, %c0_146] : memref<4x1x96xf32, #tpu.memory_space<vmem>>, vector<1x1x96xf32>
    %303 = vector.shape_cast %302 : vector<1x1x96xf32> to vector<1x96xf32>
    %304 = vector.broadcast %303 : vector<1x96xf32> to vector<16x96xf32>
    %305 = arith.addf %301, %304 : vector<16x96xf32>
    %306 = vector.extract_strided_slice %305 {offsets = [0, 0], sizes = [16, 8], strides = [1, 1]} : vector<16x96xf32> to vector<16x8xf32>
    %307 = vector.extract_strided_slice %305 {offsets = [0, 32], sizes = [16, 8], strides = [1, 1]} : vector<16x96xf32> to vector<16x8xf32>
    %308 = vector.extract_strided_slice %305 {offsets = [0, 64], sizes = [16, 8], strides = [1, 1]} : vector<16x96xf32> to vector<16x8xf32>
    %cst_147 = arith.constant dense<0.000000e+00> : vector<16x16xf32>
    %309 = tpu.matmul %306, %307, %cst_147 {dimension_numbers = #tpu.dot_dimension_numbers<[1], [1], [0], [0], [0, 0, 1, 0], [], []>} : vector<16x8xf32>, vector<16x8xf32>, vector<16x16xf32> -> vector<16x16xf32>
    %cst_148 = arith.constant dense<0xFF800000> : vector<16xf32>
    %310 = vector.multi_reduction <maximumf>, %309, %cst_148 [1] : vector<16x16xf32> to vector<16xf32>
    %311 = vector.shape_cast %310 : vector<16xf32> to vector<16x1xf32>
    %312 = vector.broadcast %311 : vector<16x1xf32> to vector<16x16xf32>
    %313 = arith.subf %309, %312 : vector<16x16xf32>
    %314 = math.exp %313 : vector<16x16xf32>
    %cst_149 = arith.constant dense<0.000000e+00> : vector<16xf32>
    %315 = vector.multi_reduction <add>, %314, %cst_149 [1] : vector<16x16xf32> to vector<16xf32>
    %316 = vector.shape_cast %315 : vector<16xf32> to vector<16x1xf32>
    %317 = tpu.reciprocal %316 {approx = true} : vector<16x1xf32> -> vector<16x1xf32>
    %318 = vector.broadcast %317 : vector<16x1xf32> to vector<16x16xf32>
    %319 = arith.mulf %314, %318 : vector<16x16xf32>
    %cst_150 = arith.constant dense<0.000000e+00> : vector<16x8xf32>
    %320 = tpu.matmul %319, %308, %cst_150 {dimension_numbers = #tpu.dot_dimension_numbers<[1], [0], [0], [1], [0, 0, 1, 1], [], []>} : vector<16x16xf32>, vector<16x8xf32>, vector<16x8xf32> -> vector<16x8xf32>
    %321 = vector.extract_strided_slice %305 {offsets = [0, 8], sizes = [16, 8], strides = [1, 1]} : vector<16x96xf32> to vector<16x8xf32>
    %322 = vector.extract_strided_slice %305 {offsets = [0, 40], sizes = [16, 8], strides = [1, 1]} : vector<16x96xf32> to vector<16x8xf32>
    %323 = vector.extract_strided_slice %305 {offsets = [0, 72], sizes = [16, 8], strides = [1, 1]} : vector<16x96xf32> to vector<16x8xf32>
    %cst_151 = arith.constant dense<0.000000e+00> : vector<16x16xf32>
    %324 = tpu.matmul %321, %322, %cst_151 {dimension_numbers = #tpu.dot_dimension_numbers<[1], [1], [0], [0], [0, 0, 1, 0], [], []>} : vector<16x8xf32>, vector<16x8xf32>, vector<16x16xf32> -> vector<16x16xf32>
    %cst_152 = arith.constant dense<0xFF800000> : vector<16xf32>
    %325 = vector.multi_reduction <maximumf>, %324, %cst_152 [1] : vector<16x16xf32> to vector<16xf32>
    %326 = vector.shape_cast %325 : vector<16xf32> to vector<16x1xf32>
    %327 = vector.broadcast %326 : vector<16x1xf32> to vector<16x16xf32>
    %328 = arith.subf %324, %327 : vector<16x16xf32>
    %329 = math.exp %328 : vector<16x16xf32>
    %cst_153 = arith.constant dense<0.000000e+00> : vector<16xf32>
    %330 = vector.multi_reduction <add>, %329, %cst_153 [1] : vector<16x16xf32> to vector<16xf32>
    %331 = vector.shape_cast %330 : vector<16xf32> to vector<16x1xf32>
    %332 = tpu.reciprocal %331 {approx = true} : vector<16x1xf32> -> vector<16x1xf32>
    %333 = vector.broadcast %332 : vector<16x1xf32> to vector<16x16xf32>
    %334 = arith.mulf %329, %333 : vector<16x16xf32>
    %cst_154 = arith.constant dense<0.000000e+00> : vector<16x8xf32>
    %335 = tpu.matmul %334, %323, %cst_154 {dimension_numbers = #tpu.dot_dimension_numbers<[1], [0], [0], [1], [0, 0, 1, 1], [], []>} : vector<16x16xf32>, vector<16x8xf32>, vector<16x8xf32> -> vector<16x8xf32>
    %336 = vector.extract_strided_slice %305 {offsets = [0, 16], sizes = [16, 8], strides = [1, 1]} : vector<16x96xf32> to vector<16x8xf32>
    %337 = vector.extract_strided_slice %305 {offsets = [0, 48], sizes = [16, 8], strides = [1, 1]} : vector<16x96xf32> to vector<16x8xf32>
    %338 = vector.extract_strided_slice %305 {offsets = [0, 80], sizes = [16, 8], strides = [1, 1]} : vector<16x96xf32> to vector<16x8xf32>
    %cst_155 = arith.constant dense<0.000000e+00> : vector<16x16xf32>
    %339 = tpu.matmul %336, %337, %cst_155 {dimension_numbers = #tpu.dot_dimension_numbers<[1], [1], [0], [0], [0, 0, 1, 0], [], []>} : vector<16x8xf32>, vector<16x8xf32>, vector<16x16xf32> -> vector<16x16xf32>
    %cst_156 = arith.constant dense<0xFF800000> : vector<16xf32>
    %340 = vector.multi_reduction <maximumf>, %339, %cst_156 [1] : vector<16x16xf32> to vector<16xf32>
    %341 = vector.shape_cast %340 : vector<16xf32> to vector<16x1xf32>
    %342 = vector.broadcast %341 : vector<16x1xf32> to vector<16x16xf32>
    %343 = arith.subf %339, %342 : vector<16x16xf32>
    %344 = math.exp %343 : vector<16x16xf32>
    %cst_157 = arith.constant dense<0.000000e+00> : vector<16xf32>
    %345 = vector.multi_reduction <add>, %344, %cst_157 [1] : vector<16x16xf32> to vector<16xf32>
    %346 = vector.shape_cast %345 : vector<16xf32> to vector<16x1xf32>
    %347 = tpu.reciprocal %346 {approx = true} : vector<16x1xf32> -> vector<16x1xf32>
    %348 = vector.broadcast %347 : vector<16x1xf32> to vector<16x16xf32>
    %349 = arith.mulf %344, %348 : vector<16x16xf32>
    %cst_158 = arith.constant dense<0.000000e+00> : vector<16x8xf32>
    %350 = tpu.matmul %349, %338, %cst_158 {dimension_numbers = #tpu.dot_dimension_numbers<[1], [0], [0], [1], [0, 0, 1, 1], [], []>} : vector<16x16xf32>, vector<16x8xf32>, vector<16x8xf32> -> vector<16x8xf32>
    %351 = vector.extract_strided_slice %305 {offsets = [0, 24], sizes = [16, 8], strides = [1, 1]} : vector<16x96xf32> to vector<16x8xf32>
    %352 = vector.extract_strided_slice %305 {offsets = [0, 56], sizes = [16, 8], strides = [1, 1]} : vector<16x96xf32> to vector<16x8xf32>
    %353 = vector.extract_strided_slice %305 {offsets = [0, 88], sizes = [16, 8], strides = [1, 1]} : vector<16x96xf32> to vector<16x8xf32>
    %cst_159 = arith.constant dense<0.000000e+00> : vector<16x16xf32>
    %354 = tpu.matmul %351, %352, %cst_159 {dimension_numbers = #tpu.dot_dimension_numbers<[1], [1], [0], [0], [0, 0, 1, 0], [], []>} : vector<16x8xf32>, vector<16x8xf32>, vector<16x16xf32> -> vector<16x16xf32>
    %cst_160 = arith.constant dense<0xFF800000> : vector<16xf32>
    %355 = vector.multi_reduction <maximumf>, %354, %cst_160 [1] : vector<16x16xf32> to vector<16xf32>
    %356 = vector.shape_cast %355 : vector<16xf32> to vector<16x1xf32>
    %357 = vector.broadcast %356 : vector<16x1xf32> to vector<16x16xf32>
    %358 = arith.subf %354, %357 : vector<16x16xf32>
    %359 = math.exp %358 : vector<16x16xf32>
    %cst_161 = arith.constant dense<0.000000e+00> : vector<16xf32>
    %360 = vector.multi_reduction <add>, %359, %cst_161 [1] : vector<16x16xf32> to vector<16xf32>
    %361 = vector.shape_cast %360 : vector<16xf32> to vector<16x1xf32>
    %362 = tpu.reciprocal %361 {approx = true} : vector<16x1xf32> -> vector<16x1xf32>
    %363 = vector.broadcast %362 : vector<16x1xf32> to vector<16x16xf32>
    %364 = arith.mulf %359, %363 : vector<16x16xf32>
    %cst_162 = arith.constant dense<0.000000e+00> : vector<16x8xf32>
    %365 = tpu.matmul %364, %353, %cst_162 {dimension_numbers = #tpu.dot_dimension_numbers<[1], [0], [0], [1], [0, 0, 1, 1], [], []>} : vector<16x16xf32>, vector<16x8xf32>, vector<16x8xf32> -> vector<16x8xf32>
    %366 = tpu.concatenate %320, %335, %350, %365 in 1 : vector<16x8xf32>, vector<16x8xf32>, vector<16x8xf32>, vector<16x8xf32> -> vector<16x32xf32>
    %c2_163 = arith.constant 2 : index
    %c0_164 = arith.constant 0 : index
    %c0_165 = arith.constant 0 : index
    %367 = vector.load %arg7[%c2_163, %c0_164, %c0_165] : memref<4x32x32xf32, #tpu.memory_space<vmem>>, vector<1x32x32xf32>
    %368 = vector.shape_cast %367 : vector<1x32x32xf32> to vector<32x32xf32>
    %cst_166 = arith.constant dense<0.000000e+00> : vector<16x32xf32>
    %369 = tpu.matmul %366, %368, %cst_166 {dimension_numbers = #tpu.dot_dimension_numbers<[1], [0], [0], [1], [0, 0, 1, 1], [], []>} : vector<16x32xf32>, vector<32x32xf32>, vector<16x32xf32> -> vector<16x32xf32>
    %c2_167 = arith.constant 2 : index
    %c0_168 = arith.constant 0 : index
    %c0_169 = arith.constant 0 : index
    %370 = vector.load %arg8[%c2_167, %c0_168, %c0_169] : memref<4x1x32xf32, #tpu.memory_space<vmem>>, vector<1x1x32xf32>
    %371 = vector.shape_cast %370 : vector<1x1x32xf32> to vector<1x32xf32>
    %372 = vector.broadcast %371 : vector<1x32xf32> to vector<16x32xf32>
    %373 = arith.addf %369, %372 : vector<16x32xf32>
    %374 = arith.addf %298, %373 : vector<16x32xf32>
    %c2_170 = arith.constant 2 : index
    %c0_171 = arith.constant 0 : index
    %c0_172 = arith.constant 0 : index
    %375 = vector.load %arg9[%c2_170, %c0_171, %c0_172] : memref<4x1x32xf32, #tpu.memory_space<vmem>>, vector<1x1x32xf32>
    %376 = vector.shape_cast %375 : vector<1x1x32xf32> to vector<1x32xf32>
    %c2_173 = arith.constant 2 : index
    %c0_174 = arith.constant 0 : index
    %c0_175 = arith.constant 0 : index
    %377 = vector.load %arg10[%c2_173, %c0_174, %c0_175] : memref<4x1x32xf32, #tpu.memory_space<vmem>>, vector<1x1x32xf32>
    %378 = vector.shape_cast %377 : vector<1x1x32xf32> to vector<1x32xf32>
    %cst_176 = arith.constant dense<0.000000e+00> : vector<16xf32>
    %379 = vector.multi_reduction <add>, %374, %cst_176 [1] : vector<16x32xf32> to vector<16xf32>
    %380 = vector.shape_cast %379 : vector<16xf32> to vector<16x1xf32>
    %cst_177 = arith.constant 3.200000e+01 : f32
    %381 = vector.broadcast %cst_177 : f32 to vector<16x1xf32>
    %382 = arith.divf %380, %381 : vector<16x1xf32>
    %383 = vector.broadcast %382 : vector<16x1xf32> to vector<16x32xf32>
    %384 = arith.subf %374, %383 : vector<16x32xf32>
    %385 = arith.mulf %384, %384 : vector<16x32xf32>
    %cst_178 = arith.constant dense<0.000000e+00> : vector<16xf32>
    %386 = vector.multi_reduction <add>, %385, %cst_178 [1] : vector<16x32xf32> to vector<16xf32>
    %387 = vector.shape_cast %386 : vector<16xf32> to vector<16x1xf32>
    %cst_179 = arith.constant 3.200000e+01 : f32
    %388 = vector.broadcast %cst_179 : f32 to vector<16x1xf32>
    %389 = arith.divf %387, %388 : vector<16x1xf32>
    %390 = vector.broadcast %382 : vector<16x1xf32> to vector<16x32xf32>
    %391 = arith.subf %374, %390 : vector<16x32xf32>
    %cst_180 = arith.constant 9.99999974E-6 : f32
    %392 = vector.broadcast %cst_180 : f32 to vector<16x1xf32>
    %393 = arith.addf %389, %392 : vector<16x1xf32>
    %394 = math.rsqrt %393 : vector<16x1xf32>
    %395 = vector.broadcast %394 : vector<16x1xf32> to vector<16x32xf32>
    %396 = arith.mulf %391, %395 : vector<16x32xf32>
    %397 = vector.broadcast %376 : vector<1x32xf32> to vector<16x32xf32>
    %398 = arith.mulf %396, %397 : vector<16x32xf32>
    %399 = vector.broadcast %378 : vector<1x32xf32> to vector<16x32xf32>
    %400 = arith.addf %398, %399 : vector<16x32xf32>
    %c2_181 = arith.constant 2 : index
    %c0_182 = arith.constant 0 : index
    %c0_183 = arith.constant 0 : index
    %401 = vector.load %arg11[%c2_181, %c0_182, %c0_183] : memref<4x32x64xf32, #tpu.memory_space<vmem>>, vector<1x32x64xf32>
    %402 = vector.shape_cast %401 : vector<1x32x64xf32> to vector<32x64xf32>
    %cst_184 = arith.constant dense<0.000000e+00> : vector<16x64xf32>
    %403 = tpu.matmul %400, %402, %cst_184 {dimension_numbers = #tpu.dot_dimension_numbers<[1], [0], [0], [1], [0, 0, 1, 1], [], []>} : vector<16x32xf32>, vector<32x64xf32>, vector<16x64xf32> -> vector<16x64xf32>
    %c2_185 = arith.constant 2 : index
    %c0_186 = arith.constant 0 : index
    %c0_187 = arith.constant 0 : index
    %404 = vector.load %arg12[%c2_185, %c0_186, %c0_187] : memref<4x1x64xf32, #tpu.memory_space<vmem>>, vector<1x1x64xf32>
    %405 = vector.shape_cast %404 : vector<1x1x64xf32> to vector<1x64xf32>
    %406 = vector.broadcast %405 : vector<1x64xf32> to vector<16x64xf32>
    %407 = arith.addf %403, %406 : vector<16x64xf32>
    %cst_188 = arith.constant 0.000000e+00 : f32
    %408 = vector.broadcast %cst_188 : f32 to vector<16x64xf32>
    %409 = arith.maximumf %407, %408 : vector<16x64xf32>
    %c2_189 = arith.constant 2 : index
    %c0_190 = arith.constant 0 : index
    %c0_191 = arith.constant 0 : index
    %410 = vector.load %arg13[%c2_189, %c0_190, %c0_191] : memref<4x64x32xf32, #tpu.memory_space<vmem>>, vector<1x64x32xf32>
    %411 = vector.shape_cast %410 : vector<1x64x32xf32> to vector<64x32xf32>
    %cst_192 = arith.constant dense<0.000000e+00> : vector<16x32xf32>
    %412 = tpu.matmul %409, %411, %cst_192 {dimension_numbers = #tpu.dot_dimension_numbers<[1], [0], [0], [1], [0, 0, 1, 1], [], []>} : vector<16x64xf32>, vector<64x32xf32>, vector<16x32xf32> -> vector<16x32xf32>
    %c2_193 = arith.constant 2 : index
    %c0_194 = arith.constant 0 : index
    %c0_195 = arith.constant 0 : index
    %413 = vector.load %arg14[%c2_193, %c0_194, %c0_195] : memref<4x1x32xf32, #tpu.memory_space<vmem>>, vector<1x1x32xf32>
    %414 = vector.shape_cast %413 : vector<1x1x32xf32> to vector<1x32xf32>
    %415 = vector.broadcast %414 : vector<1x32xf32> to vector<16x32xf32>
    %416 = arith.addf %412, %415 : vector<16x32xf32>
    %417 = arith.addf %400, %416 : vector<16x32xf32>
    %c2_196 = arith.constant 2 : index
    %c0_197 = arith.constant 0 : index
    %c0_198 = arith.constant 0 : index
    %418 = vector.load %arg15[%c2_196, %c0_197, %c0_198] : memref<4x1x32xf32, #tpu.memory_space<vmem>>, vector<1x1x32xf32>
    %419 = vector.shape_cast %418 : vector<1x1x32xf32> to vector<1x32xf32>
    %c2_199 = arith.constant 2 : index
    %c0_200 = arith.constant 0 : index
    %c0_201 = arith.constant 0 : index
    %420 = vector.load %arg16[%c2_199, %c0_200, %c0_201] : memref<4x1x32xf32, #tpu.memory_space<vmem>>, vector<1x1x32xf32>
    %421 = vector.shape_cast %420 : vector<1x1x32xf32> to vector<1x32xf32>
    %cst_202 = arith.constant dense<0.000000e+00> : vector<16xf32>
    %422 = vector.multi_reduction <add>, %417, %cst_202 [1] : vector<16x32xf32> to vector<16xf32>
    %423 = vector.shape_cast %422 : vector<16xf32> to vector<16x1xf32>
    %cst_203 = arith.constant 3.200000e+01 : f32
    %424 = vector.broadcast %cst_203 : f32 to vector<16x1xf32>
    %425 = arith.divf %423, %424 : vector<16x1xf32>
    %426 = vector.broadcast %425 : vector<16x1xf32> to vector<16x32xf32>
    %427 = arith.subf %417, %426 : vector<16x32xf32>
    %428 = arith.mulf %427, %427 : vector<16x32xf32>
    %cst_204 = arith.constant dense<0.000000e+00> : vector<16xf32>
    %429 = vector.multi_reduction <add>, %428, %cst_204 [1] : vector<16x32xf32> to vector<16xf32>
    %430 = vector.shape_cast %429 : vector<16xf32> to vector<16x1xf32>
    %cst_205 = arith.constant 3.200000e+01 : f32
    %431 = vector.broadcast %cst_205 : f32 to vector<16x1xf32>
    %432 = arith.divf %430, %431 : vector<16x1xf32>
    %433 = vector.broadcast %425 : vector<16x1xf32> to vector<16x32xf32>
    %434 = arith.subf %417, %433 : vector<16x32xf32>
    %cst_206 = arith.constant 9.99999974E-6 : f32
    %435 = vector.broadcast %cst_206 : f32 to vector<16x1xf32>
    %436 = arith.addf %432, %435 : vector<16x1xf32>
    %437 = math.rsqrt %436 : vector<16x1xf32>
    %438 = vector.broadcast %437 : vector<16x1xf32> to vector<16x32xf32>
    %439 = arith.mulf %434, %438 : vector<16x32xf32>
    %440 = vector.broadcast %419 : vector<1x32xf32> to vector<16x32xf32>
    %441 = arith.mulf %439, %440 : vector<16x32xf32>
    %442 = vector.broadcast %421 : vector<1x32xf32> to vector<16x32xf32>
    %443 = arith.addf %441, %442 : vector<16x32xf32>
    %c3 = arith.constant 3 : index
    %c0_207 = arith.constant 0 : index
    %c0_208 = arith.constant 0 : index
    %444 = vector.load %arg5[%c3, %c0_207, %c0_208] : memref<4x32x96xf32, #tpu.memory_space<vmem>>, vector<1x32x96xf32>
    %445 = vector.shape_cast %444 : vector<1x32x96xf32> to vector<32x96xf32>
    %cst_209 = arith.constant dense<0.000000e+00> : vector<16x96xf32>
    %446 = tpu.matmul %443, %445, %cst_209 {dimension_numbers = #tpu.dot_dimension_numbers<[1], [0], [0], [1], [0, 0, 1, 1], [], []>} : vector<16x32xf32>, vector<32x96xf32>, vector<16x96xf32> -> vector<16x96xf32>
    %c3_210 = arith.constant 3 : index
    %c0_211 = arith.constant 0 : index
    %c0_212 = arith.constant 0 : index
    %447 = vector.load %arg6[%c3_210, %c0_211, %c0_212] : memref<4x1x96xf32, #tpu.memory_space<vmem>>, vector<1x1x96xf32>
    %448 = vector.shape_cast %447 : vector<1x1x96xf32> to vector<1x96xf32>
    %449 = vector.broadcast %448 : vector<1x96xf32> to vector<16x96xf32>
    %450 = arith.addf %446, %449 : vector<16x96xf32>
    %451 = vector.extract_strided_slice %450 {offsets = [0, 0], sizes = [16, 8], strides = [1, 1]} : vector<16x96xf32> to vector<16x8xf32>
    %452 = vector.extract_strided_slice %450 {offsets = [0, 32], sizes = [16, 8], strides = [1, 1]} : vector<16x96xf32> to vector<16x8xf32>
    %453 = vector.extract_strided_slice %450 {offsets = [0, 64], sizes = [16, 8], strides = [1, 1]} : vector<16x96xf32> to vector<16x8xf32>
    %cst_213 = arith.constant dense<0.000000e+00> : vector<16x16xf32>
    %454 = tpu.matmul %451, %452, %cst_213 {dimension_numbers = #tpu.dot_dimension_numbers<[1], [1], [0], [0], [0, 0, 1, 0], [], []>} : vector<16x8xf32>, vector<16x8xf32>, vector<16x16xf32> -> vector<16x16xf32>
    %cst_214 = arith.constant dense<0xFF800000> : vector<16xf32>
    %455 = vector.multi_reduction <maximumf>, %454, %cst_214 [1] : vector<16x16xf32> to vector<16xf32>
    %456 = vector.shape_cast %455 : vector<16xf32> to vector<16x1xf32>
    %457 = vector.broadcast %456 : vector<16x1xf32> to vector<16x16xf32>
    %458 = arith.subf %454, %457 : vector<16x16xf32>
    %459 = math.exp %458 : vector<16x16xf32>
    %cst_215 = arith.constant dense<0.000000e+00> : vector<16xf32>
    %460 = vector.multi_reduction <add>, %459, %cst_215 [1] : vector<16x16xf32> to vector<16xf32>
    %461 = vector.shape_cast %460 : vector<16xf32> to vector<16x1xf32>
    %462 = tpu.reciprocal %461 {approx = true} : vector<16x1xf32> -> vector<16x1xf32>
    %463 = vector.broadcast %462 : vector<16x1xf32> to vector<16x16xf32>
    %464 = arith.mulf %459, %463 : vector<16x16xf32>
    %cst_216 = arith.constant dense<0.000000e+00> : vector<16x8xf32>
    %465 = tpu.matmul %464, %453, %cst_216 {dimension_numbers = #tpu.dot_dimension_numbers<[1], [0], [0], [1], [0, 0, 1, 1], [], []>} : vector<16x16xf32>, vector<16x8xf32>, vector<16x8xf32> -> vector<16x8xf32>
    %466 = vector.extract_strided_slice %450 {offsets = [0, 8], sizes = [16, 8], strides = [1, 1]} : vector<16x96xf32> to vector<16x8xf32>
    %467 = vector.extract_strided_slice %450 {offsets = [0, 40], sizes = [16, 8], strides = [1, 1]} : vector<16x96xf32> to vector<16x8xf32>
    %468 = vector.extract_strided_slice %450 {offsets = [0, 72], sizes = [16, 8], strides = [1, 1]} : vector<16x96xf32> to vector<16x8xf32>
    %cst_217 = arith.constant dense<0.000000e+00> : vector<16x16xf32>
    %469 = tpu.matmul %466, %467, %cst_217 {dimension_numbers = #tpu.dot_dimension_numbers<[1], [1], [0], [0], [0, 0, 1, 0], [], []>} : vector<16x8xf32>, vector<16x8xf32>, vector<16x16xf32> -> vector<16x16xf32>
    %cst_218 = arith.constant dense<0xFF800000> : vector<16xf32>
    %470 = vector.multi_reduction <maximumf>, %469, %cst_218 [1] : vector<16x16xf32> to vector<16xf32>
    %471 = vector.shape_cast %470 : vector<16xf32> to vector<16x1xf32>
    %472 = vector.broadcast %471 : vector<16x1xf32> to vector<16x16xf32>
    %473 = arith.subf %469, %472 : vector<16x16xf32>
    %474 = math.exp %473 : vector<16x16xf32>
    %cst_219 = arith.constant dense<0.000000e+00> : vector<16xf32>
    %475 = vector.multi_reduction <add>, %474, %cst_219 [1] : vector<16x16xf32> to vector<16xf32>
    %476 = vector.shape_cast %475 : vector<16xf32> to vector<16x1xf32>
    %477 = tpu.reciprocal %476 {approx = true} : vector<16x1xf32> -> vector<16x1xf32>
    %478 = vector.broadcast %477 : vector<16x1xf32> to vector<16x16xf32>
    %479 = arith.mulf %474, %478 : vector<16x16xf32>
    %cst_220 = arith.constant dense<0.000000e+00> : vector<16x8xf32>
    %480 = tpu.matmul %479, %468, %cst_220 {dimension_numbers = #tpu.dot_dimension_numbers<[1], [0], [0], [1], [0, 0, 1, 1], [], []>} : vector<16x16xf32>, vector<16x8xf32>, vector<16x8xf32> -> vector<16x8xf32>
    %481 = vector.extract_strided_slice %450 {offsets = [0, 16], sizes = [16, 8], strides = [1, 1]} : vector<16x96xf32> to vector<16x8xf32>
    %482 = vector.extract_strided_slice %450 {offsets = [0, 48], sizes = [16, 8], strides = [1, 1]} : vector<16x96xf32> to vector<16x8xf32>
    %483 = vector.extract_strided_slice %450 {offsets = [0, 80], sizes = [16, 8], strides = [1, 1]} : vector<16x96xf32> to vector<16x8xf32>
    %cst_221 = arith.constant dense<0.000000e+00> : vector<16x16xf32>
    %484 = tpu.matmul %481, %482, %cst_221 {dimension_numbers = #tpu.dot_dimension_numbers<[1], [1], [0], [0], [0, 0, 1, 0], [], []>} : vector<16x8xf32>, vector<16x8xf32>, vector<16x16xf32> -> vector<16x16xf32>
    %cst_222 = arith.constant dense<0xFF800000> : vector<16xf32>
    %485 = vector.multi_reduction <maximumf>, %484, %cst_222 [1] : vector<16x16xf32> to vector<16xf32>
    %486 = vector.shape_cast %485 : vector<16xf32> to vector<16x1xf32>
    %487 = vector.broadcast %486 : vector<16x1xf32> to vector<16x16xf32>
    %488 = arith.subf %484, %487 : vector<16x16xf32>
    %489 = math.exp %488 : vector<16x16xf32>
    %cst_223 = arith.constant dense<0.000000e+00> : vector<16xf32>
    %490 = vector.multi_reduction <add>, %489, %cst_223 [1] : vector<16x16xf32> to vector<16xf32>
    %491 = vector.shape_cast %490 : vector<16xf32> to vector<16x1xf32>
    %492 = tpu.reciprocal %491 {approx = true} : vector<16x1xf32> -> vector<16x1xf32>
    %493 = vector.broadcast %492 : vector<16x1xf32> to vector<16x16xf32>
    %494 = arith.mulf %489, %493 : vector<16x16xf32>
    %cst_224 = arith.constant dense<0.000000e+00> : vector<16x8xf32>
    %495 = tpu.matmul %494, %483, %cst_224 {dimension_numbers = #tpu.dot_dimension_numbers<[1], [0], [0], [1], [0, 0, 1, 1], [], []>} : vector<16x16xf32>, vector<16x8xf32>, vector<16x8xf32> -> vector<16x8xf32>
    %496 = vector.extract_strided_slice %450 {offsets = [0, 24], sizes = [16, 8], strides = [1, 1]} : vector<16x96xf32> to vector<16x8xf32>
    %497 = vector.extract_strided_slice %450 {offsets = [0, 56], sizes = [16, 8], strides = [1, 1]} : vector<16x96xf32> to vector<16x8xf32>
    %498 = vector.extract_strided_slice %450 {offsets = [0, 88], sizes = [16, 8], strides = [1, 1]} : vector<16x96xf32> to vector<16x8xf32>
    %cst_225 = arith.constant dense<0.000000e+00> : vector<16x16xf32>
    %499 = tpu.matmul %496, %497, %cst_225 {dimension_numbers = #tpu.dot_dimension_numbers<[1], [1], [0], [0], [0, 0, 1, 0], [], []>} : vector<16x8xf32>, vector<16x8xf32>, vector<16x16xf32> -> vector<16x16xf32>
    %cst_226 = arith.constant dense<0xFF800000> : vector<16xf32>
    %500 = vector.multi_reduction <maximumf>, %499, %cst_226 [1] : vector<16x16xf32> to vector<16xf32>
    %501 = vector.shape_cast %500 : vector<16xf32> to vector<16x1xf32>
    %502 = vector.broadcast %501 : vector<16x1xf32> to vector<16x16xf32>
    %503 = arith.subf %499, %502 : vector<16x16xf32>
    %504 = math.exp %503 : vector<16x16xf32>
    %cst_227 = arith.constant dense<0.000000e+00> : vector<16xf32>
    %505 = vector.multi_reduction <add>, %504, %cst_227 [1] : vector<16x16xf32> to vector<16xf32>
    %506 = vector.shape_cast %505 : vector<16xf32> to vector<16x1xf32>
    %507 = tpu.reciprocal %506 {approx = true} : vector<16x1xf32> -> vector<16x1xf32>
    %508 = vector.broadcast %507 : vector<16x1xf32> to vector<16x16xf32>
    %509 = arith.mulf %504, %508 : vector<16x16xf32>
    %cst_228 = arith.constant dense<0.000000e+00> : vector<16x8xf32>
    %510 = tpu.matmul %509, %498, %cst_228 {dimension_numbers = #tpu.dot_dimension_numbers<[1], [0], [0], [1], [0, 0, 1, 1], [], []>} : vector<16x16xf32>, vector<16x8xf32>, vector<16x8xf32> -> vector<16x8xf32>
    %511 = tpu.concatenate %465, %480, %495, %510 in 1 : vector<16x8xf32>, vector<16x8xf32>, vector<16x8xf32>, vector<16x8xf32> -> vector<16x32xf32>
    %c3_229 = arith.constant 3 : index
    %c0_230 = arith.constant 0 : index
    %c0_231 = arith.constant 0 : index
    %512 = vector.load %arg7[%c3_229, %c0_230, %c0_231] : memref<4x32x32xf32, #tpu.memory_space<vmem>>, vector<1x32x32xf32>
    %513 = vector.shape_cast %512 : vector<1x32x32xf32> to vector<32x32xf32>
    %cst_232 = arith.constant dense<0.000000e+00> : vector<16x32xf32>
    %514 = tpu.matmul %511, %513, %cst_232 {dimension_numbers = #tpu.dot_dimension_numbers<[1], [0], [0], [1], [0, 0, 1, 1], [], []>} : vector<16x32xf32>, vector<32x32xf32>, vector<16x32xf32> -> vector<16x32xf32>
    %c3_233 = arith.constant 3 : index
    %c0_234 = arith.constant 0 : index
    %c0_235 = arith.constant 0 : index
    %515 = vector.load %arg8[%c3_233, %c0_234, %c0_235] : memref<4x1x32xf32, #tpu.memory_space<vmem>>, vector<1x1x32xf32>
    %516 = vector.shape_cast %515 : vector<1x1x32xf32> to vector<1x32xf32>
    %517 = vector.broadcast %516 : vector<1x32xf32> to vector<16x32xf32>
    %518 = arith.addf %514, %517 : vector<16x32xf32>
    %519 = arith.addf %443, %518 : vector<16x32xf32>
    %c3_236 = arith.constant 3 : index
    %c0_237 = arith.constant 0 : index
    %c0_238 = arith.constant 0 : index
    %520 = vector.load %arg9[%c3_236, %c0_237, %c0_238] : memref<4x1x32xf32, #tpu.memory_space<vmem>>, vector<1x1x32xf32>
    %521 = vector.shape_cast %520 : vector<1x1x32xf32> to vector<1x32xf32>
    %c3_239 = arith.constant 3 : index
    %c0_240 = arith.constant 0 : index
    %c0_241 = arith.constant 0 : index
    %522 = vector.load %arg10[%c3_239, %c0_240, %c0_241] : memref<4x1x32xf32, #tpu.memory_space<vmem>>, vector<1x1x32xf32>
    %523 = vector.shape_cast %522 : vector<1x1x32xf32> to vector<1x32xf32>
    %cst_242 = arith.constant dense<0.000000e+00> : vector<16xf32>
    %524 = vector.multi_reduction <add>, %519, %cst_242 [1] : vector<16x32xf32> to vector<16xf32>
    %525 = vector.shape_cast %524 : vector<16xf32> to vector<16x1xf32>
    %cst_243 = arith.constant 3.200000e+01 : f32
    %526 = vector.broadcast %cst_243 : f32 to vector<16x1xf32>
    %527 = arith.divf %525, %526 : vector<16x1xf32>
    %528 = vector.broadcast %527 : vector<16x1xf32> to vector<16x32xf32>
    %529 = arith.subf %519, %528 : vector<16x32xf32>
    %530 = arith.mulf %529, %529 : vector<16x32xf32>
    %cst_244 = arith.constant dense<0.000000e+00> : vector<16xf32>
    %531 = vector.multi_reduction <add>, %530, %cst_244 [1] : vector<16x32xf32> to vector<16xf32>
    %532 = vector.shape_cast %531 : vector<16xf32> to vector<16x1xf32>
    %cst_245 = arith.constant 3.200000e+01 : f32
    %533 = vector.broadcast %cst_245 : f32 to vector<16x1xf32>
    %534 = arith.divf %532, %533 : vector<16x1xf32>
    %535 = vector.broadcast %527 : vector<16x1xf32> to vector<16x32xf32>
    %536 = arith.subf %519, %535 : vector<16x32xf32>
    %cst_246 = arith.constant 9.99999974E-6 : f32
    %537 = vector.broadcast %cst_246 : f32 to vector<16x1xf32>
    %538 = arith.addf %534, %537 : vector<16x1xf32>
    %539 = math.rsqrt %538 : vector<16x1xf32>
    %540 = vector.broadcast %539 : vector<16x1xf32> to vector<16x32xf32>
    %541 = arith.mulf %536, %540 : vector<16x32xf32>
    %542 = vector.broadcast %521 : vector<1x32xf32> to vector<16x32xf32>
    %543 = arith.mulf %541, %542 : vector<16x32xf32>
    %544 = vector.broadcast %523 : vector<1x32xf32> to vector<16x32xf32>
    %545 = arith.addf %543, %544 : vector<16x32xf32>
    %c3_247 = arith.constant 3 : index
    %c0_248 = arith.constant 0 : index
    %c0_249 = arith.constant 0 : index
    %546 = vector.load %arg11[%c3_247, %c0_248, %c0_249] : memref<4x32x64xf32, #tpu.memory_space<vmem>>, vector<1x32x64xf32>
    %547 = vector.shape_cast %546 : vector<1x32x64xf32> to vector<32x64xf32>
    %cst_250 = arith.constant dense<0.000000e+00> : vector<16x64xf32>
    %548 = tpu.matmul %545, %547, %cst_250 {dimension_numbers = #tpu.dot_dimension_numbers<[1], [0], [0], [1], [0, 0, 1, 1], [], []>} : vector<16x32xf32>, vector<32x64xf32>, vector<16x64xf32> -> vector<16x64xf32>
    %c3_251 = arith.constant 3 : index
    %c0_252 = arith.constant 0 : index
    %c0_253 = arith.constant 0 : index
    %549 = vector.load %arg12[%c3_251, %c0_252, %c0_253] : memref<4x1x64xf32, #tpu.memory_space<vmem>>, vector<1x1x64xf32>
    %550 = vector.shape_cast %549 : vector<1x1x64xf32> to vector<1x64xf32>
    %551 = vector.broadcast %550 : vector<1x64xf32> to vector<16x64xf32>
    %552 = arith.addf %548, %551 : vector<16x64xf32>
    %cst_254 = arith.constant 0.000000e+00 : f32
    %553 = vector.broadcast %cst_254 : f32 to vector<16x64xf32>
    %554 = arith.maximumf %552, %553 : vector<16x64xf32>
    %c3_255 = arith.constant 3 : index
    %c0_256 = arith.constant 0 : index
    %c0_257 = arith.constant 0 : index
    %555 = vector.load %arg13[%c3_255, %c0_256, %c0_257] : memref<4x64x32xf32, #tpu.memory_space<vmem>>, vector<1x64x32xf32>
    %556 = vector.shape_cast %555 : vector<1x64x32xf32> to vector<64x32xf32>
    %cst_258 = arith.constant dense<0.000000e+00> : vector<16x32xf32>
    %557 = tpu.matmul %554, %556, %cst_258 {dimension_numbers = #tpu.dot_dimension_numbers<[1], [0], [0], [1], [0, 0, 1, 1], [], []>} : vector<16x64xf32>, vector<64x32xf32>, vector<16x32xf32> -> vector<16x32xf32>
    %c3_259 = arith.constant 3 : index
    %c0_260 = arith.constant 0 : index
    %c0_261 = arith.constant 0 : index
    %558 = vector.load %arg14[%c3_259, %c0_260, %c0_261] : memref<4x1x32xf32, #tpu.memory_space<vmem>>, vector<1x1x32xf32>
    %559 = vector.shape_cast %558 : vector<1x1x32xf32> to vector<1x32xf32>
    %560 = vector.broadcast %559 : vector<1x32xf32> to vector<16x32xf32>
    %561 = arith.addf %557, %560 : vector<16x32xf32>
    %562 = arith.addf %545, %561 : vector<16x32xf32>
    %c3_262 = arith.constant 3 : index
    %c0_263 = arith.constant 0 : index
    %c0_264 = arith.constant 0 : index
    %563 = vector.load %arg15[%c3_262, %c0_263, %c0_264] : memref<4x1x32xf32, #tpu.memory_space<vmem>>, vector<1x1x32xf32>
    %564 = vector.shape_cast %563 : vector<1x1x32xf32> to vector<1x32xf32>
    %c3_265 = arith.constant 3 : index
    %c0_266 = arith.constant 0 : index
    %c0_267 = arith.constant 0 : index
    %565 = vector.load %arg16[%c3_265, %c0_266, %c0_267] : memref<4x1x32xf32, #tpu.memory_space<vmem>>, vector<1x1x32xf32>
    %566 = vector.shape_cast %565 : vector<1x1x32xf32> to vector<1x32xf32>
    %cst_268 = arith.constant dense<0.000000e+00> : vector<16xf32>
    %567 = vector.multi_reduction <add>, %562, %cst_268 [1] : vector<16x32xf32> to vector<16xf32>
    %568 = vector.shape_cast %567 : vector<16xf32> to vector<16x1xf32>
    %cst_269 = arith.constant 3.200000e+01 : f32
    %569 = vector.broadcast %cst_269 : f32 to vector<16x1xf32>
    %570 = arith.divf %568, %569 : vector<16x1xf32>
    %571 = vector.broadcast %570 : vector<16x1xf32> to vector<16x32xf32>
    %572 = arith.subf %562, %571 : vector<16x32xf32>
    %573 = arith.mulf %572, %572 : vector<16x32xf32>
    %cst_270 = arith.constant dense<0.000000e+00> : vector<16xf32>
    %574 = vector.multi_reduction <add>, %573, %cst_270 [1] : vector<16x32xf32> to vector<16xf32>
    %575 = vector.shape_cast %574 : vector<16xf32> to vector<16x1xf32>
    %cst_271 = arith.constant 3.200000e+01 : f32
    %576 = vector.broadcast %cst_271 : f32 to vector<16x1xf32>
    %577 = arith.divf %575, %576 : vector<16x1xf32>
    %578 = vector.broadcast %570 : vector<16x1xf32> to vector<16x32xf32>
    %579 = arith.subf %562, %578 : vector<16x32xf32>
    %cst_272 = arith.constant 9.99999974E-6 : f32
    %580 = vector.broadcast %cst_272 : f32 to vector<16x1xf32>
    %581 = arith.addf %577, %580 : vector<16x1xf32>
    %582 = math.rsqrt %581 : vector<16x1xf32>
    %583 = vector.broadcast %582 : vector<16x1xf32> to vector<16x32xf32>
    %584 = arith.mulf %579, %583 : vector<16x32xf32>
    %585 = vector.broadcast %564 : vector<1x32xf32> to vector<16x32xf32>
    %586 = arith.mulf %584, %585 : vector<16x32xf32>
    %587 = vector.broadcast %566 : vector<1x32xf32> to vector<16x32xf32>
    %588 = arith.addf %586, %587 : vector<16x32xf32>
    %c0_273 = arith.constant 0 : index
    %c0_274 = arith.constant 0 : index
    %c0_275 = arith.constant 0 : index
    %589 = vector.load %arg17[%c0_273, %c0_274, %c0_275] : memref<1x16x32xf32, #tpu.memory_space<vmem>>, vector<1x16x32xf32>
    %590 = vector.shape_cast %589 : vector<1x16x32xf32> to vector<16x32xf32>
    %591 = vector.shape_cast %588 : vector<16x32xf32> to vector<1x16x32xf32>
    tpu.vector_store %arg17[%c0_273, %c0_274, %c0_275], %591 {strides = array<i32>} : memref<1x16x32xf32, #tpu.memory_space<vmem>>, vector<1x16x32xf32>,
    return
  }
  func.func @transform_0(%arg0: i32) -> (i32, i32, i32) {
    %c0_i32 = arith.constant 0 : i32
    %c0_i32_0 = arith.constant 0 : i32
    %c0_i32_1 = arith.constant 0 : i32
    return %arg0, %c0_i32, %c0_i32_0 : i32, i32, i32
  }
  func.func @transform_1(%arg0: i32) -> (i32, i32) {
    %c0_i32 = arith.constant 0 : i32
    %c0_i32_0 = arith.constant 0 : i32
    %c0_i32_1 = arith.constant 0 : i32
    return %c0_i32, %c0_i32_0 : i32, i32
  }
  func.func @transform_2(%arg0: i32) -> (i32, i32) {
    %c0_i32 = arith.constant 0 : i32
    %c0_i32_0 = arith.constant 0 : i32
    %c0_i32_1 = arith.constant 0 : i32
    return %c0_i32, %c0_i32_0 : i32, i32
  }
  func.func @transform_3(%arg0: i32) -> (i32, i32) {
    %c0_i32 = arith.constant 0 : i32
    %c0_i32_0 = arith.constant 0 : i32
    %c0_i32_1 = arith.constant 0 : i32
    return %c0_i32, %c0_i32_0 : i32, i32
  }
  func.func @transform_4(%arg0: i32) -> (i32, i32, i32) {
    %c0_i32 = arith.constant 0 : i32
    %c0_i32_0 = arith.constant 0 : i32
    %c0_i32_1 = arith.constant 0 : i32
    %c0_i32_2 = arith.constant 0 : i32
    return %c0_i32, %c0_i32_0, %c0_i32_1 : i32, i32, i32
  }
  func.func @transform_5(%arg0: i32) -> (i32, i32, i32) {
    %c0_i32 = arith.constant 0 : i32
    %c0_i32_0 = arith.constant 0 : i32
    %c0_i32_1 = arith.constant 0 : i32
    %c0_i32_2 = arith.constant 0 : i32
    return %c0_i32, %c0_i32_0, %c0_i32_1 : i32, i32, i32
  }
  func.func @transform_6(%arg0: i32) -> (i32, i32, i32) {
    %c0_i32 = arith.constant 0 : i32
    %c0_i32_0 = arith.constant 0 : i32
    %c0_i32_1 = arith.constant 0 : i32
    %c0_i32_2 = arith.constant 0 : i32
    return %c0_i32, %c0_i32_0, %c0_i32_1 : i32, i32, i32
  }
  func.func @transform_7(%arg0: i32) -> (i32, i32, i32) {
    %c0_i32 = arith.constant 0 : i32
    %c0_i32_0 = arith.constant 0 : i32
    %c0_i32_1 = arith.constant 0 : i32
    %c0_i32_2 = arith.constant 0 : i32
    return %c0_i32, %c0_i32_0, %c0_i32_1 : i32, i32, i32
  }
  func.func @transform_8(%arg0: i32) -> (i32, i32, i32) {
    %c0_i32 = arith.constant 0 : i32
    %c0_i32_0 = arith.constant 0 : i32
    %c0_i32_1 = arith.constant 0 : i32
    %c0_i32_2 = arith.constant 0 : i32
    return %c0_i32, %c0_i32_0, %c0_i32_1 : i32, i32, i32
  }
  func.func @transform_9(%arg0: i32) -> (i32, i32, i32) {
    %c0_i32 = arith.constant 0 : i32
    %c0_i32_0 = arith.constant 0 : i32
    %c0_i32_1 = arith.constant 0 : i32
    %c0_i32_2 = arith.constant 0 : i32
    return %c0_i32, %c0_i32_0, %c0_i32_1 : i32, i32, i32
  }
  func.func @transform_10(%arg0: i32) -> (i32, i32, i32) {
    %c0_i32 = arith.constant 0 : i32
    %c0_i32_0 = arith.constant 0 : i32
    %c0_i32_1 = arith.constant 0 : i32
    %c0_i32_2 = arith.constant 0 : i32
    return %c0_i32, %c0_i32_0, %c0_i32_1 : i32, i32, i32
  }
  func.func @transform_11(%arg0: i32) -> (i32, i32, i32) {
    %c0_i32 = arith.constant 0 : i32
    %c0_i32_0 = arith.constant 0 : i32
    %c0_i32_1 = arith.constant 0 : i32
    %c0_i32_2 = arith.constant 0 : i32
    return %c0_i32, %c0_i32_0, %c0_i32_1 : i32, i32, i32
  }
  func.func @transform_12(%arg0: i32) -> (i32, i32, i32) {
    %c0_i32 = arith.constant 0 : i32
    %c0_i32_0 = arith.constant 0 : i32
    %c0_i32_1 = arith.constant 0 : i32
    %c0_i32_2 = arith.constant 0 : i32
    return %c0_i32, %c0_i32_0, %c0_i32_1 : i32, i32, i32
  }
  func.func @transform_13(%arg0: i32) -> (i32, i32, i32) {
    %c0_i32 = arith.constant 0 : i32
    %c0_i32_0 = arith.constant 0 : i32
    %c0_i32_1 = arith.constant 0 : i32
    %c0_i32_2 = arith.constant 0 : i32
    return %c0_i32, %c0_i32_0, %c0_i32_1 : i32, i32, i32
  }
  func.func @transform_14(%arg0: i32) -> (i32, i32, i32) {
    %c0_i32 = arith.constant 0 : i32
    %c0_i32_0 = arith.constant 0 : i32
    %c0_i32_1 = arith.constant 0 : i32
    %c0_i32_2 = arith.constant 0 : i32
    return %c0_i32, %c0_i32_0, %c0_i32_1 : i32, i32, i32
  }
  func.func @transform_15(%arg0: i32) -> (i32, i32, i32) {
    %c0_i32 = arith.constant 0 : i32
    %c0_i32_0 = arith.constant 0 : i32
    %c0_i32_1 = arith.constant 0 : i32
    %c0_i32_2 = arith.constant 0 : i32
    return %c0_i32, %c0_i32_0, %c0_i32_1 : i32, i32, i32
  }
  func.func @transform_16(%arg0: i32) -> (i32, i32, i32) {
    %c0_i32 = arith.constant 0 : i32
    %c0_i32_0 = arith.constant 0 : i32
    %c0_i32_1 = arith.constant 0 : i32
    return %arg0, %c0_i32, %c0_i32_0 : i32, i32, i32
  }
}

</mosaic_0001>

<bundles_post_ra>
// kernel: patch_transformer_encoder.1
= control target key start
LH: loop header
LB: loop body
LE: loop exit
PB: predicated region body
PF: predicated region fallthrough
CT: control target
= control target key end

     0   :  { %s7645_s21 = smov 0   ;;  %s8602_s0 = inlined_call_operand.vmem [shape: f32[2,16,64], index: 0, kind: input, shape index: {}]   ;;  %s8603_s1 = inlined_call_operand.vmem [shape: f32[64,32], index: 1, kind: input, shape index: {}]   ;;  %s8604_s2 = inlined_call_operand.vmem [shape: f32[1,32], index: 2, kind: input, shape index: {}]   ;;  %s8605_s3 = inlined_call_operand.vmem [shape: f32[16,32], index: 3, kind: input, shape index: {}]   ;;  %s8606_s4 = inlined_call_operand.vmem [shape: f32[4,32,96], index: 4, kind: input, shape index: {}]   ;;  %s8607_s5 = inlined_call_operand.vmem [shape: f32[4,1,96], index: 5, kind: input, shape index: {}]   ;;  %s8608_s6 = inlined_call_operand.vmem [shape: f32[4,32,32], index: 6, kind: input, shape index: {}]   ;;  %s8609_s7 = inlined_call_operand.vmem [shape: f32[4,1,32], index: 7, kind: input, shape index: {}]   ;;  %s8610_s8 = inlined_call_operand.vmem [shape: f32[4,1,32], index: 8, kind: input, shape index: {}]   ;;  %s8611_s9 = inlined_call_operand.vmem [shape: f32[4,1,32], index: 9, kind: input, shape index: {}]   ;;  %s8612_s10 = inlined_call_operand.vmem [shape: f32[4,32,64], index: 10, kind: input, shape index: {}]   ;;  %s8613_s11 = inlined_call_operand.vmem [shape: f32[4,1,64], index: 11, kind: input, shape index: {}]   ;;  %s8614_s12 = inlined_call_operand.vmem [shape: f32[4,64,32], index: 12, kind: input, shape index: {}]   ;;  %s8615_s13 = inlined_call_operand.vmem [shape: f32[4,1,32], index: 13, kind: input, shape index: {}]   ;;  %s8616_s14 = inlined_call_operand.vmem [shape: f32[4,1,32], index: 14, kind: input, shape index: {}]   ;;  %s8617_s15 = inlined_call_operand.vmem [shape: f32[4,1,32], index: 15, kind: input, shape index: {}]   ;;  %s8618_s16 = inlined_call_operand.vmem [shape: f32[2,16,32], index: 16, kind: output, shape index: {}]  }
   0x1   :  { %8656 = sst [smem:[#allocation4_spill]] %s8602_s0 }
   0x2   :  { %8657 = sst [smem:[#allocation5_spill]] %s8603_s1 }
   0x3   :  { %8658 = sst [smem:[#allocation6_spill]] %s8604_s2 }
   0x4   :  { %8659 = sst [smem:[#allocation7_spill]] %s8605_s3 }
   0x5   :  { %8660 = sst [smem:[#allocation8_spill]] %s8608_s6 }
   0x6   :  { %8661 = sst [smem:[#allocation9_spill]] %s8609_s7 }
   0x7   :  { %8662 = sst [smem:[#allocation10_spill]] %s8618_s16 }
   0x8 LB: > { %8663 = sst [smem:[#allocation2_spill]] %s7544_s21  ;;  %s5899_s22 = sadd.s32 4294967295, %s7544_s21   ;;  %s7544_s21 = sphi %s7645_s21, %s26_s21  }
   0x9   : > { %p5903_p0 = scmp.ge.s32.totalorder %s7544_s21, 1  ;;  %p462_p1 = scmp.lt.s32.totalorder %s7544_s21, 3 }
   0xb   : > { %p463_p2 = pnand %p5903_p0, %p462_p1 }
   0xd   : > { %466 = sbr.rel (%p463_p2) target bundleno = 14152 (0x3748), region = 84 }
  0x14   : > { %s8664_s1 = sld [smem:[#allocation5_spill]]  ;;  %p512_p3 = scmp.lt.s32.totalorder %s5899_s22, 1  ;;  %v625_v8 = vld [vmem:[%s8606_s4] sm:$0xff]  ;;  %v626_v9 = vld [vmem:[%s8606_s4 + $0x8] sm:$0xff]  ;;  %vm539_vm0 = vcmask 523264   ;;  %v627_v17 = vld [vmem:[%s8606_s4 + $0x10] sm:$0xff] }
  0x15   : > { %v6876_v10 = vpack.c.bf16 %v626_v9, %v625_v8  ;;  %s8666_s29 = sld [smem:[#allocation4_spill]]  ;;  %v628_v18 = vld [vmem:[%s8606_s4 + $0x18] sm:$0xff]  ;;  %s8667_s2 = sld [smem:[#allocation6_spill]]  ;;  %vm636_vm1 = vcmask 261120   ;;  %v5911_v29 = vld [vmem:[%s8607_s5] ss:$0 sm:$0xff] }
  0x16   : > { %s8699_s22 = smov (!%p512_p3, %s5899_s22), 1  ;;  %v6880_v19 = vpack.c.bf16 %v628_v18, %v627_v17  ;;  %s8668_s3 = sld [smem:[#allocation7_spill]]  ;;  %vm724_vm2 = vcmask 64512   ;;  %vm808_vm4 = vcmask 130048   ;;  %vm1546_vm5 = vcmask 195584  }
  0x17   : > { %8665 = sst [smem:[#allocation3_spill]] %s8699_s22  ;;  %s8619_s26 = sshll.u32 %s8699_s22, 4  ;;  %6877 = vmatprep.subr.bf16.mxu1 %v6876_v10  ;;  %vm7745_vm3 = vmpackc.low %vm724_vm2, %vm724_vm2 }
  0x18   : > { %6879 = vmatpush3.bf16.msra.mxu1 %v6876_v10  ;;  %s8638_s20 = smov 80   ;;  %s8644_s23 = smov 96  }
  0x19   : > { %6881 = vmatprep.subr.bf16.mxu1 %v6880_v19  ;;  %s8642_s24 = smov 120   ;;  %s8646_s25 = smov 88  }
  0x1a   : > { %v524_v0 = vld [vmem:[%s8664_s1] sm:$0xff]  ;;  %v525_v1 = vld [vmem:[%s8664_s1 + $0x8] sm:$0xff]  ;;  %v526_v2 = vld [vmem:[%s8664_s1 + $0x10] sm:$0xff]  ;;  %s8628_s27 = smov 112   ;;  %s8626_s28 = smov 72  }
  0x1b   : > { %v6860_v3 = vpack.c.bf16 %v525_v1, %v524_v0  ;;  %v527_v4 = vld [vmem:[%s8664_s1 + $0x18] sm:$0xff]  ;;  %v528_v6 = vld [vmem:[%s8664_s1 + $0x20] sm:$0xff]  ;;  %v529_v7 = vld [vmem:[%s8664_s1 + $0x28] sm:$0xff]  ;;  %s516_s30 = scalar_lea.vmem %s8666_s29, %s8619_s26  ;;  %s8624_s29 = smov 104  }
  0x1c   : > { %v6864_v5 = vpack.c.bf16 %v527_v4, %v526_v2  ;;  %v6868_v11 = vpack.c.bf16 %v529_v7, %v528_v6  ;;  %v530_v12 = vld [vmem:[%s8664_s1 + $0x30] sm:$0xff]  ;;  %v531_v13 = vld [vmem:[%s8664_s1 + $0x38] sm:$0xff]  ;;  %v522_v14 = vld [vmem:[%s516_s30] sm:$0xff]  ;;  %6883 = vmatpush3.bf16.msra.mxu1 %v6880_v19  ;;  %s8630_s0 = smov 56   ;;  %s8620_s17 = smov 40  }
  0x1d   : > { %6861 = vmatprep.subr.bf16.mxu0 %v6860_v3  ;;  %6425 = vmatprep.mubr.msk.f32.mxu0 %vm539_vm0, %v522_v14  ;;  %v6872_v15 = vpack.c.bf16 %v531_v13, %v530_v12  ;;  %v523_v16 = vld [vmem:[%s516_s30 + $0x8] sm:$0xff]  ;;  %v5908_v20 = vld [vmem:[%s8667_s2] ss:$0 sm:$0xff]  ;;  %s8622_s30 = smov 48   ;;  %s8640_s18 = smov 64  }
  0x1e   : > { %6863 = vmatpush3.bf16.msra.mxu0 %v6860_v3  ;;  %v621_v24 = vld [vmem:[%s8668_s3] sm:$0xff]  ;;  %v622_v25 = vld [vmem:[%s8668_s3 + $0x8] sm:$0xff]  ;;  %s8671_s6 = sld [smem:[#allocation8_spill]]  ;;  %s8636_s26 = smov 8  }
  0x1f   : > { %6865 = vmatprep.subr.bf16.mxu0 %v6864_v5  ;;  %s8672_s7 = sld [smem:[#allocation9_spill]]  ;;  %s8679_s19 = smov 48  }
  0x20   : > { %s8684_s22 = smov 88   ;;  %s8685_s2 = smov 96  }
  0x21   : > { %s8686_s3 = smov 120   ;;  %s8687_s16 = smov 24  }
  0x22   : > { %6867 = vmatpush3.bf16.msra.mxu0 %v6864_v5  ;;  %s8696_s21 = sld [smem:[#allocation10_spill]] }
  0x23   : > { %6869 = vmatprep.subr.bf16.mxu0 %v6868_v11 }
  0x26   : > { %6871 = vmatpush3.bf16.msra.mxu0 %v6868_v11 }
  0x27   : > { %6873 = vmatprep.subr.bf16.mxu0 %v6872_v15 }
  0x2a   : > { %6875 = vmatpush3.bf16.msra.mxu0 %v6872_v15 }
  0x2d   : > { %6426 = vmatmul.mubr.msk.f32.vlgmr.msra.gmra.mrb[0].mxu0 %vm539_vm0, %v523_v16 }
 0x100   : > { %v6427_v21 = vpop.f32.mrb[0].mxu0 }
 0x101   : > { %v618_v22 = vadd.f32 %v6427_v21, %v5908_v20  ;;  %v612_v23 = vpop.f32.mrb[1].mxu0 }
 0x102   : > { %v613_v26 = vadd.f32 %v5908_v20, %v612_v23 }
 0x103   : > { %v7710_v28 = vadd.f32 %v622_v25, %v618_v22 }
 0x104   : > { %v7708_v27 = vadd.f32 %v621_v24, %v613_v26 }
 0x106   : > { %6436 = vmatprep.mubr.msk.f32.mxu1 %vm636_vm1, %v7708_v27 }
 0x107   : > { %6437 = vmatmul.mubr.msk.f32.vlgmr.msra.gmra.mrb[0].mxu1 %vm636_vm1, %v7710_v28 }
 0x1da   : > { %v6438_v30 = vpop.f32.mrb[0].mxu1 }
 0x1db   : > { %v7719_v31 = vadd.f32 %v6438_v30, %v5911_v29  ;;  %v709_v32 = vpop.f32.mrb[1].mxu1 }
 0x1dc   : > { %v7721_v33 = vadd.f32 %v5911_v29, %v709_v32 }
 0x1de   : > { %6443 = vmatprep.mubr.msk.f32.mxu1 %vm724_vm2, %v7721_v33  ;;  %v7727_v34 = vpack.i.bf16 %v7719_v31, %v7721_v33 }
 0x1e0   : > { %7229 = vrot.lane.b32.xlu1 %v7727_v34, %s8638_s20  ;;  %7219 = vrot.lane.b32.xlu0 %v7727_v34, %s8644_s23  ;;  %s8677_s20 = smov 72  }
 0x1e4   : > { %918 = vrot.lane.b32.xlu1 %v7721_v33, %s8642_s24  ;;  %7224 = vrot.lane.b32.xlu0 %v7727_v34, %s8646_s25 }
 0x1e8   : > { %1118 = vrot.lane.b32.xlu1 %v7721_v33, %s8628_s27  ;;  %920 = vrot.lane.b32.xlu0 %v7719_v31, %s8642_s24 }
 0x1ec   : > { %1120 = vrot.lane.b32.xlu0 %v7719_v31, %s8628_s27  ;;  %s8632_s27 = smov 24  }
 0x252   : > { %v7220_v35 = vpop.permute.xlu0 %7219  ;;  %v7230_v43 = vpop.permute.xlu1 %7229 }
 0x253   : > { %v7222_v36 = vunpack.i.h.bf16 %v7220_v35  ;;  %v7221_v37 = vunpack.i.l.bf16 %v7220_v35  ;;  %v7232_v45 = vunpack.i.h.bf16 %v7230_v43  ;;  %v7231_v46 = vunpack.i.l.bf16 %v7230_v43 }
 0x255   : > { %v6884_v39 = vpack.c.bf16 %v7222_v36, %v7221_v37  ;;  %v6904_v47 = vpack.c.bf16 %v7232_v45, %v7231_v46 }
 0x256   : > { %v7225_v40 = vpop.permute.xlu0 %7224  ;;  %v919_v48 = vpop.permute.xlu1 %918 }
 0x257   : > { %v7227_v41 = vunpack.i.h.bf16 %v7225_v40  ;;  %v7226_v42 = vunpack.i.l.bf16 %v7225_v40  ;;  %6886 = vmatprep.subr.msk.bf16.mxu1 %vm7745_vm3, %v6884_v39 }
 0x258   : > { %6889 = vmatpush3.bf16.xpose.msk.msra.mxu1 %vm7745_vm3, %v6884_v39 }
 0x259   : > { %v6894_v44 = vpack.c.bf16 %v7227_v41, %v7226_v42 }
 0x25a   : > { %v921_v49 = vpop.permute.xlu0 %920  ;;  %v1119_v50 = vpop.permute.xlu1 %1118 }
 0x25b   : > { %6896 = vmatprep.subr.msk.bf16.mxu1 %vm7745_vm3, %v6894_v44 }
 0x25e   : > { %v1121_v51 = vpop.permute.xlu0 %1120 }
 0x25f   : > { %6444 = vmatmul.mubr.msk.f32.vlgmr.msra.gmra.mrb[2].mxu1 %vm724_vm2, %v7719_v31 }
 0x260   : > { %6899 = vmatpush3.bf16.xpose.msk.msra.mxu1 %vm7745_vm3, %v6894_v44  ;;  %6457 = vmatprep.mubr.msk.f32.mxu1 %vm724_vm2, %v919_v48 }
 0x261   : > { %6906 = vmatprep.subr.msk.bf16.mxu1 %vm7745_vm3, %v6904_v47 }
 0x267   : > { %6458 = vmatmul.mubr.msk.f32.vlgmr.msra.gmra.mrb[4].mxu1 %vm724_vm2, %v921_v49 }
 0x268   : > { %6909 = vmatpush3.bf16.xpose.msk.msra.mxu1 %vm7745_vm3, %v6904_v47  ;;  %6471 = vmatprep.mubr.msk.f32.mxu1 %vm724_vm2, %v1119_v50 }
 0x26f   : > { %6472 = vmatmul.mubr.msk.f32.vlgmr.msra.gmra.mrb[6].mxu1 %vm724_vm2, %v1121_v51 }
 0x332   : > { %v7767_v52 = vpop.f32.mrb[2].mxu1 }
 0x333   : > { %v7769_v53 = vpop.f32.mrb[3].mxu1  ;;  %v812_v7 = vsel %vm808_vm4, %v7767_v52, -inf }
 0x334   : > { %v809_v6 = vsel %vm808_vm4, %v7769_v53, -inf }
 0x33a   : > { %v7771_v54 = vpop.f32.mrb[4].mxu1 }
 0x33b   : > { %v7773_v55 = vpop.f32.mrb[5].mxu1  ;;  %v1012_v8 = vsel %vm808_vm4, %v7771_v54, -inf }
 0x33c   : > { %v1009_v9 = vsel %vm808_vm4, %v7773_v55, -inf }
 0x342   : > { %v6473_v56 = vpop.f32.mrb[6].mxu1 }
 0x343   : > { %v1200_v57 = vpop.f32.mrb[7].mxu1  ;;  %v1212_v58 = vsel %vm808_vm4, %v6473_v56, -inf }
 0x344   : > { %1213 = vmax.xlane.f32.xlu0 %v1212_v58  ;;  %v1209_v59 = vsel %vm808_vm4, %v1200_v57, -inf }
 0x345   : > { %1210 = vmax.xlane.f32.xlu1 %v1209_v59 }
 0x3d1   : > { %v1214_v60 = vpop.xlane.xlu0 %1213 }
 0x3d2   : > { %v1216_v61 = vsub.f32 %v6473_v56, %v1214_v60  ;;  %v1211_v62 = vpop.xlane.xlu1 %1210 }
 0x3d3   : > { %v1215_v63 = vsub.f32 %v1200_v57, %v1211_v62 }
 0x3d4   : > { %v1219_v0 = vmul.f32 1.442695, %v1216_v61 }
 0x3d5   : > { %v1217_v1 = vmul.f32 1.442695, %v1215_v63 }
 0x3d6   : > { %7378 = vpow2.f32 %v1219_v0 }
 0x3d7   : > { %7380 = vpow2.f32 %v1217_v1 }
 0x3e0   : > { %v7379_v2 = vpop.eup %7378 }
 0x3e1   : > { %v7381_v3 = vpop.eup %7380  ;;  %v1224_v4 = vsel %vm808_vm4, %v7379_v2, 0.0 }
 0x3e2   : > { %1225 = vadd.xlane.f32.xlu1 %v1224_v4  ;;  %v1221_v5 = vsel %vm808_vm4, %v7381_v3, 0.0 }
 0x3e3   : > { %1222 = vadd.xlane.f32.xlu0 %v1221_v5 }
 0x3f3   : > { %7239 = vrot.lane.b32.xlu1 %v7727_v34, %s8626_s28  ;;  %s8680_s28 = smov 8  }
 0x3f7   : > { %1318 = vrot.lane.b32.xlu1 %v7721_v33, %s8624_s29 }
 0x3f9   : > { %7234 = vrot.lane.b32.xlu0 %v7727_v34, %s8622_s30  ;;  %s8634_s30 = smov 16  }
 0x3fd   : > { %1320 = vrot.lane.b32.xlu0 %v7719_v31, %s8624_s29  ;;  %s8682_s29 = smov 16  }
 0x41b   : > { %810 = vmax.xlane.f32.xlu1 %v809_v6 }
 0x41c   : > { %813 = vmax.xlane.f32.xlu0 %v812_v7 }
 0x41f   : > { %1013 = vmax.xlane.f32.xlu1 %v1012_v8 }
 0x420   : > { %1010 = vmax.xlane.f32.xlu0 %v1009_v9 }
 0x46f   : > { %v1226_v10 = vpop.xlane.xlu1 %1225 }
 0x470   : > { %7382 = vrcp.f32 %v1226_v10  ;;  %v1223_v11 = vpop.xlane.xlu0 %1222 }
 0x471   : > { %7384 = vrcp.f32 %v1223_v11 }
 0x473   : > { %v7240_v12 = vpop.permute.xlu1 %7239 }
 0x474   : > { %v7235_v13 = vpop.permute.xlu0 %7234  ;;  %v7242_v14 = vunpack.i.h.bf16 %v7240_v12  ;;  %v7241_v15 = vunpack.i.l.bf16 %v7240_v12 }
 0x475   : > { %v7237_v16 = vunpack.i.h.bf16 %v7235_v13  ;;  %v7236_v17 = vunpack.i.l.bf16 %v7235_v13 }
 0x476   : > { %v6914_v19 = vpack.c.bf16 %v7242_v14, %v7241_v15 }
 0x477   : > { %v6910_v18 = vpack.c.bf16 %v7237_v16, %v7236_v17  ;;  %v1319_v24 = vpop.permute.xlu1 %1318 }
 0x478   : > { %v1321_v25 = vpop.permute.xlu0 %1320 }
 0x479   : > { %6911 = vmatprep.subr.bf16.mxu1 %v6910_v18 }
 0x47a   : > { %v7383_v20 = vpop.eup %7382  ;;  %6913 = vmatpush3.bf16.msra.mxu1 %v6910_v18 }
 0x47b   : > { %v7385_v21 = vpop.eup %7384  ;;  %6916 = vmatprep.subr.msk.bf16.mxu1 %vm7745_vm3, %v6914_v19  ;;  %v1230_v23 = vmul.f32 %v7383_v20, %v7379_v2 }
 0x47c   : > { %v1229_v22 = vmul.f32 %v7385_v21, %v7381_v3 }
 0x47e   : > { %6478 = vmatprep.mubr.msk.f32.mxu1 %vm808_vm4, %v1229_v22 }
 0x47f   : > { %6479 = vmatmul.mubr.msk.f32.vlgmr.msra.gmra.mrb[8].mxu1 %vm808_vm4, %v1230_v23 }
 0x480   : > { %6485 = vmatprep.mubr.msk.f32.mxu1 %vm724_vm2, %v1319_v24 }
 0x483   : > { %6919 = vmatpush3.bf16.xpose.msk.msra.mxu1 %vm7745_vm3, %v6914_v19 }
 0x48a   : > { %6486 = vmatmul.mubr.msk.f32.vlgmr.msra.gmra.mrb[10].mxu1 %vm724_vm2, %v1321_v25 }
 0x4a8   : > { %v811_v26 = vpop.xlane.xlu1 %810 }
 0x4a9   : > { %v814_v29 = vpop.xlane.xlu0 %813  ;;  %v815_v31 = vsub.f32 %v7769_v53, %v811_v26 }
 0x4aa   : > { %v816_v30 = vsub.f32 %v7767_v52, %v814_v29 }
 0x4ab   : > { %v817_v37 = vmul.f32 1.442695, %v815_v31 }
 0x4ac   : > { %v1014_v32 = vpop.xlane.xlu1 %1013  ;;  %v819_v35 = vmul.f32 1.442695, %v816_v30 }
 0x4ad   : > { %v1011_v33 = vpop.xlane.xlu0 %1010  ;;  %v1016_v36 = vsub.f32 %v7771_v54, %v1014_v32 }
 0x4ae   : > { %v1015_v39 = vsub.f32 %v7773_v55, %v1011_v33  ;;  %7386 = vpow2.f32 %v819_v35  ;;  %v1549_v33 = vld [vmem:[%s8671_s6] sm:$0xff]  ;;  %v1550_v35 = vld [vmem:[%s8671_s6 + $0x8] sm:$0xff] }
 0x4af   : > { %v1019_v42 = vmul.f32 1.442695, %v1016_v36  ;;  %7388 = vpow2.f32 %v817_v37  ;;  %v6924_v36 = vpack.c.bf16 %v1550_v35, %v1549_v33  ;;  %v1551_v37 = vld [vmem:[%s8671_s6 + $0x10] sm:$0xff] }
 0x4b0   : > { %v1017_v43 = vmul.f32 1.442695, %v1015_v39  ;;  %v1552_v39 = vld [vmem:[%s8671_s6 + $0x18] sm:$0xff] }
 0x4b1   : > { %7390 = vpow2.f32 %v1019_v42  ;;  %v6928_v42 = vpack.c.bf16 %v1552_v39, %v1551_v37  ;;  %v5942_v39 = vld [vmem:[%s8611_s9] ss:$0 sm:$0xff] }
 0x4b2   : > { %7392 = vpow2.f32 %v1017_v43 }
 0x4b8   : > { %v7812_v47 = vpop.eup %7386 }
 0x4b9   : > { %v7389_v49 = vpop.eup %7388  ;;  %v824_v50 = vsel %vm808_vm4, %v7812_v47, 0.0 }
 0x4ba   : > { %v821_v52 = vsel %vm808_vm4, %v7389_v49, 0.0 }
 0x4bb   : > { %v7817_v51 = vpop.eup %7390 }
 0x4bc   : > { %v7393_v53 = vpop.eup %7392  ;;  %v1024_v54 = vsel %vm808_vm4, %v7817_v51, 0.0 }
 0x4bd   : > { %v1021_v55 = vsel %vm808_vm4, %v7393_v53, 0.0 }
 0x552   : > { %v7807_v40 = vpop.f32.mrb[8].mxu1 }
 0x553   : > { %v7809_v41 = vpop.f32.mrb[9].mxu1 }
 0x55d   : > { %v6487_v44 = vpop.f32.mrb[10].mxu1 }
 0x55e   : > { %v1400_v45 = vpop.f32.mrb[11].mxu1  ;;  %v1412_v46 = vsel %vm808_vm4, %v6487_v44, -inf }
 0x55f   : > { %1413 = vmax.xlane.f32.xlu1 %v1412_v46  ;;  %v1409_v48 = vsel %vm808_vm4, %v1400_v45, -inf }
 0x560   : > { %1410 = vmax.xlane.f32.xlu0 %v1409_v48 }
 0x563   : > { %825 = vadd.xlane.f32.xlu1 %v824_v50 }
 0x564   : > { %822 = vadd.xlane.f32.xlu0 %v821_v52 }
 0x567   : > { %1025 = vadd.xlane.f32.xlu1 %v1024_v54 }
 0x568   : > { %1022 = vadd.xlane.f32.xlu0 %v1021_v55 }
 0x5ec   : > { %v1414_v56 = vpop.xlane.xlu1 %1413 }
 0x5ed   : > { %v1416_v57 = vsub.f32 %v6487_v44, %v1414_v56  ;;  %v1411_v58 = vpop.xlane.xlu0 %1410 }
 0x5ee   : > { %v1415_v59 = vsub.f32 %v1400_v45, %v1411_v58 }
 0x5ef   : > { %v1419_v60 = vmul.f32 1.442695, %v1416_v57 }
 0x5f0   : > { %v1417_v61 = vmul.f32 1.442695, %v1415_v59  ;;  %v826_v5 = vpop.xlane.xlu1 %825  ;;  %v5938_v59 = vld [vmem:[%s8672_s7] ss:$0 sm:$0xff] }
 0x5f1   : > { %7394 = vpow2.f32 %v1419_v60  ;;  %v823_v62 = vpop.xlane.xlu0 %822 }
 0x5f2   : > { %7396 = vpow2.f32 %v1417_v61 }
 0x5f3   : > { %7398 = vrcp.f32 %v823_v62 }
 0x5f4   : > { %v1026_v6 = vpop.xlane.xlu1 %1025  ;;  %7400 = vrcp.f32 %v826_v5 }
 0x5f5   : > { %v1023_v7 = vpop.xlane.xlu0 %1022 }
 0x5f6   : > { %7402 = vrcp.f32 %v1023_v7 }
 0x5f7   : > { %7404 = vrcp.f32 %v1026_v6 }
 0x5fb   : > { %v7395_v63 = vpop.eup %7394 }
 0x5fc   : > { %v7397_v0 = vpop.eup %7396  ;;  %v1424_v1 = vsel %vm808_vm4, %v7395_v63, 0.0 }
 0x5fd   : > { %1425 = vadd.xlane.f32.xlu1 %v1424_v1  ;;  %v1421_v2 = vsel %vm808_vm4, %v7397_v0, 0.0  ;;  %v7399_v3 = vpop.eup %7398 }
 0x5fe   : > { %1422 = vadd.xlane.f32.xlu0 %v1421_v2  ;;  %v829_v4 = vmul.f32 %v7399_v3, %v7389_v49  ;;  %v7401_v18 = vpop.eup %7400 }
 0x5ff   : > { %v830_v22 = vmul.f32 %v7401_v18, %v7812_v47  ;;  %v1782_v18 = vld [vmem:[%s8614_s12] sm:$0xff] }
 0x600   : > { %6450 = vmatprep.mubr.msk.f32.mxu0 %vm808_vm4, %v829_v4 }
 0x60e   : > { %7249 = vrot.lane.b32.xlu1 %v7727_v34, %s8630_s0  ;;  %s8675_s0 = smov 56  }
 0x612   : > { %7254 = vrot.lane.b32.xlu1 %v7727_v34, %s8620_s17  ;;  %s8676_s17 = smov 112  }
 0x614   : > { %7244 = vrot.lane.b32.xlu0 %v7727_v34, %s8640_s18  ;;  %v7403_v34 = vpop.eup %7402  ;;  %s8678_s18 = smov 104  }
 0x615   : > { %v7405_v23 = vpop.eup %7404  ;;  %v1029_v24 = vmul.f32 %v7403_v34, %v7393_v53  ;;  %v1783_v34 = vld [vmem:[%s8614_s12 + $0x8] sm:$0xff] }
 0x616   : > { %v1030_v29 = vmul.f32 %v7405_v23, %v7817_v51  ;;  %v1786_v23 = vld [vmem:[%s8614_s12 + $0x20] sm:$0xff] }
 0x68a   : > { %v1426_v8 = vpop.xlane.xlu1 %1425 }
 0x68b   : > { %v1423_v9 = vpop.xlane.xlu0 %1422 }
 0x68c   : > { %7406 = vrcp.f32 %v1423_v9 }
 0x68d   : > { %7408 = vrcp.f32 %v1426_v8 }
 0x68e   : > { %v7250_v10 = vpop.permute.xlu1 %7249 }
 0x68f   : > { %v7245_v11 = vpop.permute.xlu0 %7244  ;;  %v7252_v12 = vunpack.i.h.bf16 %v7250_v10  ;;  %v7251_v13 = vunpack.i.l.bf16 %v7250_v10 }
 0x690   : > { %v7247_v14 = vunpack.i.h.bf16 %v7245_v11  ;;  %v7246_v15 = vunpack.i.l.bf16 %v7245_v11 }
 0x691   : > { %v6900_v21 = vpack.c.bf16 %v7252_v12, %v7251_v13  ;;  %v1689_v13 = vld [vmem:[%s8612_s10 + $0x8] sm:$0xff] }
 0x692   : > { %v7255_v16 = vpop.permute.xlu1 %7254  ;;  %v6890_v17 = vpack.c.bf16 %v7247_v14, %v7246_v15  ;;  %v1690_v14 = vld [vmem:[%s8612_s10 + $0x10] sm:$0xff] }
 0x693   : > { %v7257_v19 = vunpack.i.h.bf16 %v7255_v16  ;;  %v7256_v20 = vunpack.i.l.bf16 %v7255_v16  ;;  %v1691_v16 = vld [vmem:[%s8612_s10 + $0x18] sm:$0xff] }
 0x694   : > { %6891 = vmatprep.subr.bf16.mxu0 %v6890_v17 }
 0x695   : > { %6893 = vmatpush3.bf16.msra.mxu0 %v6890_v17  ;;  %v6920_v26 = vpack.c.bf16 %v7257_v19, %v7256_v20  ;;  %v6936_v17 = vpack.c.bf16 %v1691_v16, %v1690_v14  ;;  %v1784_v19 = vld [vmem:[%s8614_s12 + $0x10] sm:$0xff]  ;;  %v6940_v20 = vpack.c.bf16 %v1783_v34, %v1782_v18 }
 0x696   : > { %6901 = vmatprep.subr.bf16.mxu0 %v6900_v21  ;;  %v7407_v25 = vpop.eup %7406 }
 0x697   : > { %v7409_v30 = vpop.eup %7408  ;;  %v1429_v31 = vmul.f32 %v7407_v25, %v7397_v0 }
 0x698   : > { %6451 = vmatmul.mubr.msk.f32.vlgmr.msra.gmra.mrb[2].mxu0 %vm808_vm4, %v830_v22  ;;  %v1430_v32 = vmul.f32 %v7409_v30, %v7395_v63 }
 0x699   : > { %6903 = vmatpush3.bf16.msra.mxu0 %v6900_v21  ;;  %6464 = vmatprep.mubr.msk.f32.mxu0 %vm808_vm4, %v1029_v24  ;;  %v1785_v21 = vld [vmem:[%s8614_s12 + $0x18] sm:$0xff]  ;;  %v1787_v24 = vld [vmem:[%s8614_s12 + $0x28] sm:$0xff] }
 0x69a   : > { %6921 = vmatprep.subr.bf16.mxu0 %v6920_v26  ;;  %v6944_v22 = vpack.c.bf16 %v1785_v21, %v1784_v19  ;;  %v6948_v25 = vpack.c.bf16 %v1787_v24, %v1786_v23  ;;  %v5949_v21 = vld [vmem:[%s8616_s14] ss:$0 sm:$0xff] }
 0x69c   : > { %6465 = vmatmul.mubr.msk.f32.vlgmr.msra.gmra.mrb[4].mxu0 %vm808_vm4, %v1030_v29 }
 0x69d   : > { %6923 = vmatpush3.bf16.msra.mxu0 %v6920_v26  ;;  %6492 = vmatprep.mubr.msk.f32.mxu0 %vm808_vm4, %v1429_v31 }
 0x69e   : > { %6925 = vmatprep.subr.bf16.mxu0 %v6924_v36 }
 0x6a0   : > { %6493 = vmatmul.mubr.msk.f32.vlgmr.msra.gmra.mrb[6].mxu0 %vm808_vm4, %v1430_v32 }
 0x6a1   : > { %6927 = vmatpush3.bf16.msra.mxu0 %v6924_v36  ;;  %v5941_v36 = vld [vmem:[%s8610_s8] ss:$0 sm:$0xff] }
 0x6a2   : > { %6929 = vmatprep.subr.bf16.mxu0 %v6928_v42 }
 0x6a5   : > { %6931 = vmatpush3.bf16.msra.mxu0 %v6928_v42 }
 0x6a6   : > { %6941 = vmatprep.subr.bf16.mxu0 %v6940_v20 }
 0x76b   : > { %v6452_v43 = vpop.f32.mrb[2].mxu0 }
 0x76c   : > { %v909_v44 = vpop.f32.mrb[3].mxu0 }
 0x76f   : > { %v6466_v45 = vpop.f32.mrb[4].mxu0 }
 0x770   : > { %1522 = vrot.lane.b32.xlu1 %v6466_v45, %s8636_s26  ;;  %v1109_v46 = vpop.f32.mrb[5].mxu0 }
 0x771   : > { %1520 = vrot.lane.b32.xlu0 %v1109_v46, %s8636_s26  ;;  %s8673_s26 = smov 64  }
 0x773   : > { %v6494_v47 = vpop.f32.mrb[6].mxu0 }
 0x774   : > { %1530 = vrot.lane.b32.xlu1 %v7807_v40, %s8634_s30  ;;  %v1509_v48 = vpop.f32.mrb[7].mxu0 }
 0x775   : > { %1528 = vrot.lane.b32.xlu0 %v7809_v41, %s8634_s30  ;;  %s8674_s30 = smov 80  }
 0x778   : > { %1538 = vrot.lane.b32.xlu1 %v6494_v47, %s8632_s27 }
 0x779   : > { %1536 = vrot.lane.b32.xlu0 %v1509_v48, %s8632_s27  ;;  %v1788_v48 = vld [vmem:[%s8614_s12 + $0x30] sm:$0xff]  ;;  %s8681_s27 = smov 40  }
 0x7e2   : > { %v1523_v49 = vpop.permute.xlu1 %1522 }
 0x7e3   : > { %v1521_v50 = vpop.permute.xlu0 %1520  ;;  %v1543_v55 = vsel %vm724_vm2, %v6452_v43, %v1523_v49  ;;  %v1789_v49 = vld [vmem:[%s8614_s12 + $0x38] sm:$0xff] }
 0x7e4   : > { %v1542_v53 = vsel %vm724_vm2, %v909_v44, %v1521_v50  ;;  %v6952_v50 = vpack.c.bf16 %v1789_v49, %v1788_v48 }
 0x7e6   : > { %v1531_v51 = vpop.permute.xlu1 %1530 }
 0x7e7   : > { %v1529_v52 = vpop.permute.xlu0 %1528  ;;  %v1545_v41 = vsel %vm808_vm4, %v1543_v55, %v1531_v51  ;;  %v5943_v51 = vld [vmem:[%s8613_s11] ss:$0 sm:$0xff] }
 0x7e8   : > { %v1544_v40 = vsel %vm808_vm4, %v1542_v53, %v1529_v52 }
 0x7ea   : > { %v1539_v54 = vpop.permute.xlu1 %1538 }
 0x7eb   : > { %v1537_v56 = vpop.permute.xlu0 %1536  ;;  %v1548_v58 = vsel %vm1546_vm5, %v1545_v41, %v1539_v54  ;;  %v5946_v41 = vld [vmem:[%s8615_s13] ss:$0 sm:$0xff] }
 0x7ec   : > { %v1547_v57 = vsel %vm1546_vm5, %v1544_v40, %v1537_v56 }
 0x7ed   : > { %6503 = vmatprep.mubr.msk.f32.mxu0 %vm636_vm1, %v1547_v57 }
 0x7ee   : > { %6504 = vmatmul.mubr.msk.f32.vlgmr.msra.gmra.mrb[8].mxu0 %vm636_vm1, %v1548_v58 }
 0x7ef   : > { %6943 = vmatpush3.bf16.msra.mxu0 %v6940_v20 }
 0x7f0   : > { %6945 = vmatprep.subr.bf16.mxu0 %v6944_v22 }
 0x7f3   : > { %6947 = vmatpush3.bf16.msra.mxu0 %v6944_v22 }
 0x7f4   : > { %6949 = vmatprep.subr.bf16.mxu0 %v6948_v25 }
 0x7f7   : > { %6951 = vmatpush3.bf16.msra.mxu0 %v6948_v25  ;;  %v5950_v25 = vld [vmem:[%s8617_s15] ss:$0 sm:$0xff] }
 0x7f8   : > { %6953 = vmatprep.subr.bf16.mxu0 %v6952_v50 }
 0x7fb   : > { %6955 = vmatpush3.bf16.msra.mxu0 %v6952_v50 }
 0x8c1   : > { %v6505_v60 = vpop.f32.mrb[8].mxu0 }
 0x8c2   : > { %v1638_v61 = vadd.f32 %v6505_v60, %v5938_v59  ;;  %v1632_v62 = vpop.f32.mrb[9].mxu0 }
 0x8c3   : > { %v1633_v63 = vadd.f32 %v5938_v59, %v1632_v62 }
 0x8c4   : > { %v1642_v0 = vadd.f32 %v1638_v61, %v7710_v28 }
 0x8c5   : > { %v1641_v1 = vadd.f32 %v1633_v63, %v7708_v27  ;;  %v1688_v27 = vld [vmem:[%s8612_s10] sm:$0xff] }
 0x8c6   : > { %v1648_v2 = vsel %vm636_vm1, %v1642_v0, 0.0  ;;  %v6932_v15 = vpack.c.bf16 %v1689_v13, %v1688_v27  ;;  %v5954_v13 = vld [vmem:[%s8606_s4 + $0x38] sm:$0xff] }
 0x8c7   : > { %1649 = vadd.xlane.f32.xlu1 %v1648_v2  ;;  %v1645_v3 = vsel %vm636_vm1, %v1641_v1, 0.0 }
 0x8c8   : > { %1646 = vadd.xlane.f32.xlu0 %v1645_v3  ;;  %6933 = vmatprep.subr.bf16.mxu1 %v6932_v15 }
 0x8c9   : > { %6935 = vmatpush3.bf16.msra.mxu1 %v6932_v15 }
 0x8ca   : > { %6937 = vmatprep.subr.bf16.mxu1 %v6936_v17 }
 0x8cd   : > { %6939 = vmatpush3.bf16.msra.mxu1 %v6936_v17 }
 0x954   : > { %v1650_v4 = vpop.xlane.xlu1 %1649 }
 0x955   : > { %v1653_v5 = vmul.f32 0.03125, %v1650_v4  ;;  %v1647_v6 = vpop.xlane.xlu0 %1646 }
 0x956   : > { %v1652_v7 = vmul.f32 0.03125, %v1647_v6 }
 0x957   : > { %v1655_v8 = vsub.f32 %v1642_v0, %v1653_v5 }
 0x958   : > { %v1654_v9 = vsub.f32 %v1641_v1, %v1652_v7 }
 0x959   : > { %v1657_v12 = vmul.f32 %v1655_v8, %v1655_v8 }
 0x95a   : > { %v1656_v10 = vmul.f32 %v1654_v9, %v1654_v9 }
 0x95b   : > { %v1661_v28 = vsel %vm636_vm1, %v1657_v12, 0.0  ;;  %v5952_v12 = vld [vmem:[%s8606_s4 + $0x28] sm:$0xff] }
 0x95c   : > { %v1658_v11 = vsel %vm636_vm1, %v1656_v10, 0.0 }
 0x95d   : > { %1659 = vadd.xlane.f32.xlu0 %v1658_v11  ;;  %v5951_v11 = vld [vmem:[%s8606_s4 + $0x20] sm:$0xff] }
 0x95e   : > { %v6956_v27 = vpack.c.bf16 %v5952_v12, %v5951_v11 }
 0x960   : > { %6957 = vmatprep.subr.bf16.mxu1 %v6956_v27 }
 0x961   : > { %1662 = vadd.xlane.f32.xlu0 %v1661_v28  ;;  %v5953_v28 = vld [vmem:[%s8606_s4 + $0x30] sm:$0xff] }
 0x962   : > { %v6960_v14 = vpack.c.bf16 %v5954_v13, %v5953_v28 }
 0x9ea   : > { %v1660_v26 = vpop.xlane.xlu0 %1659 }
 0x9eb   : > { %v1664_v29 = vmul.f32 0.03125, %v1660_v26 }
 0x9ed   : > { %v1666_v30 = vadd.f32 1e-05, %v1664_v29 }
 0x9ee   : > { %v1663_v31 = vpop.xlane.xlu0 %1662 }
 0x9ef   : > { %7410 = vrsqrt.f32 %v1666_v30  ;;  %v1665_v32 = vmul.f32 0.03125, %v1663_v31 }
 0x9f1   : > { %v1667_v33 = vadd.f32 1e-05, %v1665_v32  ;;  %v5956_v32 = vld [vmem:[%s8607_s5 + $0x1] ss:$0 sm:$0xff] }
 0x9f3   : > { %7412 = vrsqrt.f32 %v1667_v33 }
 0x9f9   : > { %v7411_v35 = vpop.eup %7410 }
 0x9fa   : > { %v1670_v37 = vmul.f32 %v7411_v35, %v1654_v9 }
 0x9fc   : > { %v1678_v42 = vmul.f32 %v5941_v36, %v1670_v37 }
 0x9fd   : > { %v7413_v43 = vpop.eup %7412 }
 0x9fe   : > { %v1671_v44 = vmul.f32 %v7413_v43, %v1655_v8  ;;  %v1686_v45 = vadd.f32 %v5942_v39, %v1678_v42 }
 0xa00   : > { %v1679_v46 = vmul.f32 %v5941_v36, %v1671_v44  ;;  %6514 = vmatprep.mubr.msk.f32.mxu1 %vm636_vm1, %v1686_v45 }
 0xa02   : > { %v1687_v47 = vadd.f32 %v5942_v39, %v1679_v46 }
 0xa04   : > { %6515 = vmatmul.mubr.msk.f32.vlgmr.msra.gmra.mrb[12].mxu1 %vm636_vm1, %v1687_v47 }
 0xa05   : > { %6959 = vmatpush3.bf16.msra.mxu1 %v6956_v27 }
 0xa06   : > { %6961 = vmatprep.subr.bf16.mxu1 %v6960_v14 }
 0xa09   : > { %6963 = vmatpush3.bf16.msra.mxu1 %v6960_v14 }
 0xad7   : > { %v6516_v52 = vpop.f32.mrb[12].mxu1 }
 0xad8   : > { %v1777_v53 = vadd.f32 %v6516_v52, %v5943_v51  ;;  %v1771_v54 = vpop.f32.mrb[13].mxu1 }
 0xad9   : > { %v1772_v55 = vadd.f32 %v5943_v51, %v1771_v54 }
 0xada   : > { %v1781_v56 = vmax.f32 %v1777_v53, 0.0 }
 0xadb   : > { %v1780_v40 = vmax.f32 %v1772_v55, 0.0 }
 0xadd   : > { %6533 = vmatprep.mubr.msk.f32.mxu0 %vm539_vm0, %v1780_v40 }
 0xade   : > { %6534 = vmatmul.mubr.msk.f32.vlgmr.msra.gmra.mrb[10].mxu0 %vm539_vm0, %v1781_v56 }
 0xbb1   : > { %v6535_v57 = vpop.f32.mrb[10].mxu0 }
 0xbb2   : > { %v1875_v58 = vadd.f32 %v6535_v57, %v5946_v41  ;;  %v1869_v59 = vpop.f32.mrb[11].mxu0 }
 0xbb3   : > { %v1870_v60 = vadd.f32 %v5946_v41, %v1869_v59 }
 0xbb4   : > { %v1879_v61 = vadd.f32 %v1875_v58, %v1687_v47 }
 0xbb5   : > { %v1878_v62 = vadd.f32 %v1870_v60, %v1686_v45 }
 0xbb6   : > { %v1885_v63 = vsel %vm636_vm1, %v1879_v61, 0.0 }
 0xbb7   : > { %1886 = vadd.xlane.f32.xlu0 %v1885_v63  ;;  %v1882_v0 = vsel %vm636_vm1, %v1878_v62, 0.0 }
 0xbb8   : > { %1883 = vadd.xlane.f32.xlu1 %v1882_v0 }
 0xc44   : > { %v1887_v1 = vpop.xlane.xlu0 %1886 }
 0xc45   : > { %v1889_v2 = vmul.f32 0.03125, %v1887_v1  ;;  %v1884_v3 = vpop.xlane.xlu1 %1883 }
 0xc46   : > { %v1888_v4 = vmul.f32 0.03125, %v1884_v3 }
 0xc47   : > { %v1891_v5 = vsub.f32 %v1879_v61, %v1889_v2 }
 0xc48   : > { %v1890_v6 = vsub.f32 %v1878_v62, %v1888_v4 }
 0xc49   : > { %v1893_v7 = vmul.f32 %v1891_v5, %v1891_v5 }
 0xc4a   : > { %v1892_v8 = vmul.f32 %v1890_v6, %v1890_v6 }
 0xc4b   : > { %v1897_v9 = vsel %vm636_vm1, %v1893_v7, 0.0 }
 0xc4c   : > { %1898 = vadd.xlane.f32.xlu0 %v1897_v9  ;;  %v1894_v10 = vsel %vm636_vm1, %v1892_v8, 0.0 }
 0xc4d   : > { %1895 = vadd.xlane.f32.xlu1 %v1894_v10 }
 0xcd9   : > { %v1899_v15 = vpop.xlane.xlu0 %1898 }
 0xcda   : > { %v1901_v16 = vmul.f32 0.03125, %v1899_v15  ;;  %v1896_v17 = vpop.xlane.xlu1 %1895 }
 0xcdb   : > { %v1900_v18 = vmul.f32 0.03125, %v1896_v17 }
 0xcdc   : > { %v1903_v34 = vadd.f32 1e-05, %v1901_v16 }
 0xcdd   : > { %v1902_v19 = vadd.f32 1e-05, %v1900_v18 }
 0xcde   : > { %7414 = vrsqrt.f32 %v1903_v34 }
 0xcdf   : > { %7416 = vrsqrt.f32 %v1902_v19 }
 0xce8   : > { %v7415_v20 = vpop.eup %7414 }
 0xce9   : > { %v7417_v22 = vpop.eup %7416  ;;  %v1907_v23 = vmul.f32 %v7415_v20, %v1891_v5 }
 0xcea   : > { %v1906_v24 = vmul.f32 %v7417_v22, %v1890_v6 }
 0xceb   : > { %v1915_v26 = vmul.f32 %v5949_v21, %v1907_v23 }
 0xcec   : > { %v1914_v29 = vmul.f32 %v5949_v21, %v1906_v24 }
 0xced   : > { %v7952_v31 = vadd.f32 %v5950_v25, %v1915_v26 }
 0xcee   : > { %v7950_v30 = vadd.f32 %v5950_v25, %v1914_v29 }
 0xcf0   : > { %6544 = vmatprep.mubr.msk.f32.mxu1 %vm636_vm1, %v7950_v30 }
 0xcf1   : > { %6545 = vmatmul.mubr.msk.f32.vlgmr.msra.gmra.mrb[14].mxu1 %vm636_vm1, %v7952_v31 }
 0xdc4   : > { %v6546_v33 = vpop.f32.mrb[14].mxu1 }
 0xdc5   : > { %v7961_v35 = vadd.f32 %v6546_v33, %v5956_v32  ;;  %v2009_v36 = vpop.f32.mrb[15].mxu1 }
 0xdc6   : > { %v7963_v37 = vadd.f32 %v5956_v32, %v2009_v36 }
 0xdc8   : > { %6551 = vmatprep.mubr.msk.f32.mxu1 %vm724_vm2, %v7963_v37  ;;  %v7969_v39 = vpack.i.bf16 %v7961_v35, %v7963_v37 }
 0xdca   : > { %7264 = vrot.lane.b32.xlu0 %v7969_v39, %s8646_s25  ;;  %7259 = vrot.lane.b32.xlu1 %v7969_v39, %s8644_s23  ;;  %s8683_s23 = smov 24  }
 0xdce   : > { %2216 = vrot.lane.b32.xlu1 %v7963_v37, %s8642_s24 }
 0xdd2   : > { %2218 = vrot.lane.b32.xlu1 %v7961_v35, %s8642_s24  ;;  %s8693_s24 = sld [smem:[#allocation9_spill]] }
 0xe3c   : > { %v7265_v42 = vpop.permute.xlu0 %7264  ;;  %v7260_v43 = vpop.permute.xlu1 %7259 }
 0xe3d   : > { %v7267_v44 = vunpack.i.h.bf16 %v7265_v42  ;;  %v7266_v45 = vunpack.i.l.bf16 %v7265_v42  ;;  %v7262_v46 = vunpack.i.h.bf16 %v7260_v43  ;;  %v7261_v47 = vunpack.i.l.bf16 %v7260_v43 }
 0xe3f   : > { %v6964_v48 = vpack.c.bf16 %v7262_v46, %v7261_v47  ;;  %v6974_v49 = vpack.c.bf16 %v7267_v44, %v7266_v45 }
 0xe40   : > { %v2217_v50 = vpop.permute.xlu1 %2216 }
 0xe41   : > { %6966 = vmatprep.subr.msk.bf16.mxu1 %vm7745_vm3, %v6964_v48 }
 0xe42   : > { %6969 = vmatpush3.bf16.xpose.msk.msra.mxu1 %vm7745_vm3, %v6964_v48 }
 0xe43   : > { %6976 = vmatprep.subr.msk.bf16.mxu1 %vm7745_vm3, %v6974_v49 }
 0xe44   : > { %v2219_v51 = vpop.permute.xlu1 %2218 }
 0xe49   : > { %6552 = vmatmul.mubr.msk.f32.vlgmr.msra.gmra.mrb[16].mxu1 %vm724_vm2, %v7961_v35 }
 0xe4a   : > { %6979 = vmatpush3.bf16.xpose.msk.msra.mxu1 %vm7745_vm3, %v6974_v49  ;;  %6565 = vmatprep.mubr.msk.f32.mxu1 %vm724_vm2, %v2217_v50 }
 0xe51   : > { %6566 = vmatmul.mubr.msk.f32.vlgmr.msra.gmra.mrb[18].mxu1 %vm724_vm2, %v2219_v51 }
 0xf1c   : > { %v6553_v52 = vpop.f32.mrb[16].mxu1 }
 0xf1d   : > { %v2098_v53 = vpop.f32.mrb[17].mxu1  ;;  %v2110_v54 = vsel %vm808_vm4, %v6553_v52, -inf }
 0xf1e   : > { %2111 = vmax.xlane.f32.xlu1 %v2110_v54  ;;  %v2107_v55 = vsel %vm808_vm4, %v2098_v53, -inf }
 0xf1f   : > { %2108 = vmax.xlane.f32.xlu0 %v2107_v55 }
 0xf24   : > { %v6567_v40 = vpop.f32.mrb[18].mxu1 }
 0xf25   : > { %v2298_v56 = vpop.f32.mrb[19].mxu1  ;;  %v2310_v57 = vsel %vm808_vm4, %v6567_v40, -inf }
 0xf26   : > { %v2307_v41 = vsel %vm808_vm4, %v2298_v56, -inf }
 0xf27   : > { %2308 = vmax.xlane.f32.xlu0 %v2307_v41 }
 0xf2b   : > { %2311 = vmax.xlane.f32.xlu0 %v2310_v57 }
 0xf2f   : > { %7269 = vrot.lane.b32.xlu1 %v7969_v39, %s8673_s26 }
 0xfab   : > { %v2112_v58 = vpop.xlane.xlu1 %2111 }
 0xfac   : > { %v2114_v59 = vsub.f32 %v6553_v52, %v2112_v58  ;;  %v2109_v60 = vpop.xlane.xlu0 %2108 }
 0xfad   : > { %v2113_v61 = vsub.f32 %v2098_v53, %v2109_v60 }
 0xfae   : > { %v2117_v62 = vmul.f32 1.442695, %v2114_v59 }
 0xfaf   : > { %v2115_v63 = vmul.f32 1.442695, %v2113_v61  ;;  %v7270_v0 = vpop.permute.xlu1 %7269 }
 0xfb0   : > { %7418 = vpow2.f32 %v2117_v62  ;;  %v7272_v1 = vunpack.i.h.bf16 %v7270_v0  ;;  %v7271_v2 = vunpack.i.l.bf16 %v7270_v0 }
 0xfb1   : > { %7420 = vpow2.f32 %v2115_v63 }
 0xfb2   : > { %v6970_v3 = vpack.c.bf16 %v7272_v1, %v7271_v2 }
 0xfb4   : > { %6971 = vmatprep.subr.bf16.mxu0 %v6970_v3  ;;  %v2309_v4 = vpop.xlane.xlu0 %2308 }
 0xfb5   : > { %6973 = vmatpush3.bf16.msra.mxu0 %v6970_v3  ;;  %v2313_v27 = vsub.f32 %v2298_v56, %v2309_v4 }
 0xfb7   : > { %v2315_v13 = vmul.f32 1.442695, %v2313_v27 }
 0xfb8   : > { %v2312_v5 = vpop.xlane.xlu0 %2311 }
 0xfb9   : > { %v2314_v6 = vsub.f32 %v6567_v40, %v2312_v5 }
 0xfba   : > { %v7419_v7 = vpop.eup %7418 }
 0xfbb   : > { %v7421_v8 = vpop.eup %7420  ;;  %v2317_v9 = vmul.f32 1.442695, %v2314_v6  ;;  %v2122_v10 = vsel %vm808_vm4, %v7419_v7, 0.0 }
 0xfbc   : > { %2123 = vadd.xlane.f32.xlu0 %v2122_v10  ;;  %v2119_v11 = vsel %vm808_vm4, %v7421_v8, 0.0 }
 0xfbd   : > { %7422 = vpow2.f32 %v2317_v9  ;;  %2120 = vadd.xlane.f32.xlu1 %v2119_v11 }
 0xfbe   : > { %7424 = vpow2.f32 %v2315_v13 }
 0xfc7   : > { %v7423_v12 = vpop.eup %7422 }
 0xfc8   : > { %v2322_v28 = vsel %vm808_vm4, %v7423_v12, 0.0  ;;  %v7425_v14 = vpop.eup %7424 }
 0xfc9   : > { %2323 = vadd.xlane.f32.xlu0 %v2322_v28  ;;  %v2319_v15 = vsel %vm808_vm4, %v7425_v14, 0.0 }
 0xfce   : > { %7279 = vrot.lane.b32.xlu1 %v7969_v39, %s8674_s30 }
 0xfdf   : > { %7274 = vrot.lane.b32.xlu0 %v7969_v39, %s8675_s0 }
 0xfe3   : > { %2418 = vrot.lane.b32.xlu0 %v7961_v35, %s8676_s17 }
 0xff2   : > { %2320 = vadd.xlane.f32.xlu1 %v2319_v15 }
0x1003   : > { %2416 = vrot.lane.b32.xlu1 %v7963_v37, %s8676_s17 }
0x1049   : > { %v2124_v16 = vpop.xlane.xlu0 %2123 }
0x104a   : > { %7426 = vrcp.f32 %v2124_v16  ;;  %v2121_v17 = vpop.xlane.xlu1 %2120 }
0x104b   : > { %7428 = vrcp.f32 %v2121_v17 }
0x104e   : > { %v7280_v22 = vpop.permute.xlu1 %7279 }
0x104f   : > { %v7282_v24 = vunpack.i.h.bf16 %v7280_v22  ;;  %v7281_v25 = vunpack.i.l.bf16 %v7280_v22 }
0x1051   : > { %v6984_v33 = vpack.c.bf16 %v7282_v24, %v7281_v25 }
0x1054   : > { %v7427_v18 = vpop.eup %7426 }
0x1055   : > { %v7429_v34 = vpop.eup %7428  ;;  %v2128_v21 = vmul.f32 %v7427_v18, %v7419_v7 }
0x1056   : > { %v2324_v19 = vpop.xlane.xlu0 %2323  ;;  %v2127_v20 = vmul.f32 %v7429_v34, %v7421_v8 }
0x1057   : > { %7430 = vrcp.f32 %v2324_v19 }
0x1058   : > { %6558 = vmatprep.mubr.msk.f32.mxu0 %vm808_vm4, %v2127_v20 }
0x1059   : > { %6559 = vmatmul.mubr.msk.f32.vlgmr.msra.gmra.mrb[12].mxu0 %vm808_vm4, %v2128_v21 }
0x105a   : > { %v7275_v23 = vpop.permute.xlu0 %7274 }
0x105b   : > { %v7277_v26 = vunpack.i.h.bf16 %v7275_v23  ;;  %v7276_v29 = vunpack.i.l.bf16 %v7275_v23 }
0x105d   : > { %v6980_v32 = vpack.c.bf16 %v7277_v26, %v7276_v29 }
0x105e   : > { %v2419_v47 = vpop.permute.xlu0 %2418 }
0x105f   : > { %6981 = vmatprep.subr.bf16.mxu0 %v6980_v32 }
0x1060   : > { %6983 = vmatpush3.bf16.msra.mxu0 %v6980_v32 }
0x1061   : > { %6986 = vmatprep.subr.msk.bf16.mxu0 %vm7745_vm3, %v6984_v33  ;;  %v7431_v42 = vpop.eup %7430 }
0x1062   : > { %v2328_v45 = vmul.f32 %v7431_v42, %v7423_v12 }
0x107f   : > { %v2321_v36 = vpop.xlane.xlu1 %2320 }
0x1080   : > { %7432 = vrcp.f32 %v2321_v36 }
0x1083   : > { %v2417_v46 = vpop.permute.xlu1 %2416 }
0x108a   : > { %v7433_v43 = vpop.eup %7432 }
0x108b   : > { %v2327_v44 = vmul.f32 %v7433_v43, %v7425_v14 }
0x108d   : > { %6572 = vmatprep.mubr.msk.f32.mxu0 %vm808_vm4, %v2327_v44 }
0x108e   : > { %6573 = vmatmul.mubr.msk.f32.vlgmr.msra.gmra.mrb[14].mxu0 %vm808_vm4, %v2328_v45 }
0x108f   : > { %6989 = vmatpush3.bf16.xpose.msk.msra.mxu0 %vm7745_vm3, %v6984_v33  ;;  %6579 = vmatprep.mubr.msk.f32.mxu0 %vm724_vm2, %v2417_v46 }
0x1096   : > { %6580 = vmatmul.mubr.msk.f32.vlgmr.msra.gmra.mrb[16].mxu0 %vm724_vm2, %v2419_v47 }
0x112c   : > { %v8019_v48 = vpop.f32.mrb[12].mxu0 }
0x112d   : > { %v8021_v49 = vpop.f32.mrb[13].mxu0 }
0x1161   : > { %v8023_v50 = vpop.f32.mrb[14].mxu0 }
0x1162   : > { %v8025_v51 = vpop.f32.mrb[15].mxu0 }
0x1169   : > { %v6581_v52 = vpop.f32.mrb[16].mxu0 }
0x116a   : > { %v2498_v53 = vpop.f32.mrb[17].mxu0  ;;  %v2510_v54 = vsel %vm808_vm4, %v6581_v52, -inf }
0x116b   : > { %2511 = vmax.xlane.f32.xlu0 %v2510_v54  ;;  %v2507_v55 = vsel %vm808_vm4, %v2498_v53, -inf }
0x116c   : > { %2508 = vmax.xlane.f32.xlu1 %v2507_v55 }
0x11f8   : > { %v2512_v40 = vpop.xlane.xlu0 %2511 }
0x11f9   : > { %v2514_v56 = vsub.f32 %v6581_v52, %v2512_v40  ;;  %v2509_v41 = vpop.xlane.xlu1 %2508 }
0x11fa   : > { %v2513_v57 = vsub.f32 %v2498_v53, %v2509_v41  ;;  %v5986_v53 = vld [vmem:[%s8671_s6 + $0x38] sm:$0xff] }
0x11fb   : > { %v2517_v58 = vmul.f32 1.442695, %v2514_v56 }
0x11fc   : > { %v2515_v59 = vmul.f32 1.442695, %v2513_v57 }
0x11fd   : > { %7434 = vpow2.f32 %v2517_v58 }
0x11fe   : > { %7436 = vpow2.f32 %v2515_v59 }
0x1207   : > { %v7435_v60 = vpop.eup %7434 }
0x1208   : > { %v7437_v61 = vpop.eup %7436  ;;  %v2522_v62 = vsel %vm808_vm4, %v7435_v60, 0.0 }
0x1209   : > { %2523 = vadd.xlane.f32.xlu1 %v2522_v62  ;;  %v2519_v63 = vsel %vm808_vm4, %v7437_v61, 0.0 }
0x120a   : > { %2520 = vadd.xlane.f32.xlu0 %v2519_v63 }
0x121a   : > { %7289 = vrot.lane.b32.xlu1 %v7969_v39, %s8677_s20 }
0x121e   : > { %2616 = vrot.lane.b32.xlu1 %v7963_v37, %s8678_s18 }
0x1220   : > { %7284 = vrot.lane.b32.xlu0 %v7969_v39, %s8679_s19 }
0x1224   : > { %2618 = vrot.lane.b32.xlu0 %v7961_v35, %s8678_s18 }
0x1296   : > { %v2524_v0 = vpop.xlane.xlu1 %2523 }
0x1297   : > { %7438 = vrcp.f32 %v2524_v0  ;;  %v2521_v1 = vpop.xlane.xlu0 %2520 }
0x1298   : > { %7440 = vrcp.f32 %v2521_v1 }
0x129a   : > { %v7290_v2 = vpop.permute.xlu1 %7289 }
0x129b   : > { %v7285_v3 = vpop.permute.xlu0 %7284  ;;  %v7292_v4 = vunpack.i.h.bf16 %v7290_v2  ;;  %v7291_v5 = vunpack.i.l.bf16 %v7290_v2 }
0x129c   : > { %v7287_v6 = vunpack.i.h.bf16 %v7285_v3  ;;  %v7286_v7 = vunpack.i.l.bf16 %v7285_v3 }
0x129d   : > { %v6994_v9 = vpack.c.bf16 %v7292_v4, %v7291_v5 }
0x129e   : > { %v6990_v8 = vpack.c.bf16 %v7287_v6, %v7286_v7  ;;  %v2617_v12 = vpop.permute.xlu1 %2616 }
0x129f   : > { %v2619_v28 = vpop.permute.xlu0 %2618 }
0x12a0   : > { %6991 = vmatprep.subr.bf16.mxu1 %v6990_v8 }
0x12a1   : > { %v7439_v37 = vpop.eup %7438  ;;  %6993 = vmatpush3.bf16.msra.mxu1 %v6990_v8 }
0x12a2   : > { %v7441_v10 = vpop.eup %7440  ;;  %6996 = vmatprep.subr.msk.bf16.mxu1 %vm7745_vm3, %v6994_v9  ;;  %v2528_v11 = vmul.f32 %v7439_v37, %v7435_v60 }
0x12a3   : > { %v2527_v35 = vmul.f32 %v7441_v10, %v7437_v61 }
0x12a5   : > { %6586 = vmatprep.mubr.msk.f32.mxu1 %vm808_vm4, %v2527_v35 }
0x12a6   : > { %6587 = vmatmul.mubr.msk.f32.vlgmr.msra.gmra.mrb[20].mxu1 %vm808_vm4, %v2528_v11 }
0x12a7   : > { %6593 = vmatprep.mubr.msk.f32.mxu1 %vm724_vm2, %v2617_v12 }
0x12aa   : > { %6999 = vmatpush3.bf16.xpose.msk.msra.mxu1 %vm7745_vm3, %v6994_v9 }
0x12b1   : > { %6594 = vmatmul.mubr.msk.f32.vlgmr.msra.gmra.mrb[22].mxu1 %vm724_vm2, %v2619_v28 }
0x1379   : > { %v6588_v27 = vpop.f32.mrb[20].mxu1 }
0x137a   : > { %v2607_v13 = vpop.f32.mrb[21].mxu1 }
0x1384   : > { %v6595_v14 = vpop.f32.mrb[22].mxu1 }
0x1385   : > { %v2698_v15 = vpop.f32.mrb[23].mxu1  ;;  %v2710_v16 = vsel %vm808_vm4, %v6595_v14, -inf }
0x1386   : > { %2711 = vmax.xlane.f32.xlu0 %v2710_v16  ;;  %v2707_v17 = vsel %vm808_vm4, %v2698_v15, -inf }
0x1387   : > { %2708 = vmax.xlane.f32.xlu1 %v2707_v17  ;;  %v5997_v17 = vld [vmem:[%s8612_s10 + $0x30] sm:$0xff] }
0x1413   : > { %v2712_v18 = vpop.xlane.xlu0 %2711 }
0x1414   : > { %v2714_v34 = vsub.f32 %v6595_v14, %v2712_v18  ;;  %v2709_v19 = vpop.xlane.xlu1 %2708  ;;  %v5998_v18 = vld [vmem:[%s8612_s10 + $0x38] sm:$0xff] }
0x1415   : > { %v2713_v20 = vsub.f32 %v2698_v15, %v2709_v19  ;;  %v5996_v15 = vld [vmem:[%s8612_s10 + $0x28] sm:$0xff]  ;;  %v6003_v19 = vld [vmem:[%s8614_s12 + $0x40] sm:$0xff] }
0x1416   : > { %v2717_v21 = vmul.f32 1.442695, %v2714_v34  ;;  %v7016_v34 = vpack.c.bf16 %v5998_v18, %v5997_v17 }
0x1417   : > { %v2715_v22 = vmul.f32 1.442695, %v2713_v20  ;;  %v6004_v20 = vld [vmem:[%s8614_s12 + $0x48] sm:$0xff] }
0x1418   : > { %7442 = vpow2.f32 %v2717_v21  ;;  %v6005_v21 = vld [vmem:[%s8614_s12 + $0x50] sm:$0xff] }
0x1419   : > { %7444 = vpow2.f32 %v2715_v22  ;;  %v7020_v22 = vpack.c.bf16 %v6004_v20, %v6003_v19 }
0x1422   : > { %v7443_v23 = vpop.eup %7442 }
0x1423   : > { %v7445_v24 = vpop.eup %7444  ;;  %v2722_v25 = vsel %vm808_vm4, %v7443_v23, 0.0 }
0x1424   : > { %2723 = vadd.xlane.f32.xlu1 %v2722_v25  ;;  %v2719_v26 = vsel %vm808_vm4, %v7445_v24, 0.0  ;;  %v6007_v25 = vld [vmem:[%s8614_s12 + $0x60] sm:$0xff] }
0x1425   : > { %2720 = vadd.xlane.f32.xlu0 %v2719_v26  ;;  %v6008_v26 = vld [vmem:[%s8614_s12 + $0x68] sm:$0xff] }
0x1435   : > { %2818 = vrot.lane.b32.xlu1 %v8025_v51, %s8680_s28  ;;  %v5985_v51 = vld [vmem:[%s8671_s6 + $0x30] sm:$0xff] }
0x1436   : > { %v7008_v54 = vpack.c.bf16 %v5986_v53, %v5985_v51 }
0x1439   : > { %2820 = vrot.lane.b32.xlu1 %v8023_v50, %s8680_s28  ;;  %v5984_v50 = vld [vmem:[%s8671_s6 + $0x28] sm:$0xff] }
0x143b   : > { %7294 = vrot.lane.b32.xlu0 %v7969_v39, %s8681_s27  ;;  %v5983_v39 = vld [vmem:[%s8671_s6 + $0x20] sm:$0xff] }
0x143c   : > { %v7004_v52 = vpack.c.bf16 %v5984_v50, %v5983_v39  ;;  %v5994_v39 = vld [vmem:[%s8611_s9 + $0x1] ss:$0 sm:$0xff] }
0x143d   : > { %2828 = vrot.lane.b32.xlu1 %v6588_v27, %s8682_s29 }
0x143f   : > { %2826 = vrot.lane.b32.xlu0 %v2607_v13, %s8682_s29 }
0x14b1   : > { %v2724_v29 = vpop.xlane.xlu1 %2723 }
0x14b2   : > { %7446 = vrcp.f32 %v2724_v29  ;;  %v2721_v32 = vpop.xlane.xlu0 %2720  ;;  %v7028_v29 = vpack.c.bf16 %v6008_v26, %v6007_v25 }
0x14b3   : > { %7448 = vrcp.f32 %v2721_v32 }
0x14b5   : > { %v2819_v56 = vpop.permute.xlu1 %2818 }
0x14b6   : > { %v7295_v33 = vpop.permute.xlu0 %7294  ;;  %v2840_v59 = vsel %vm724_vm2, %v8021_v49, %v2819_v56  ;;  %v5988_v49 = vld [vmem:[%s8672_s7 + $0x1] ss:$0 sm:$0xff]  ;;  %v6010_v56 = vld [vmem:[%s8614_s12 + $0x78] sm:$0xff] }
0x14b7   : > { %v7297_v36 = vunpack.i.h.bf16 %v7295_v33  ;;  %v7296_v42 = vunpack.i.l.bf16 %v7295_v33 }
0x14b9   : > { %v7000_v43 = vpack.c.bf16 %v7297_v36, %v7296_v42  ;;  %v2821_v41 = vpop.permute.xlu1 %2820 }
0x14ba   : > { %v2827_v58 = vpop.permute.xlu0 %2826  ;;  %v2841_v61 = vsel %vm724_vm2, %v8019_v48, %v2821_v41 }
0x14bb   : > { %7001 = vmatprep.subr.bf16.mxu0 %v7000_v43  ;;  %v2842_v62 = vsel %vm808_vm4, %v2840_v59, %v2827_v58 }
0x14bc   : > { %v7447_v44 = vpop.eup %7446  ;;  %7003 = vmatpush3.bf16.msra.mxu0 %v7000_v43 }
0x14bd   : > { %v7449_v45 = vpop.eup %7448  ;;  %v2728_v47 = vmul.f32 %v7447_v44, %v7443_v23  ;;  %7005 = vmatprep.subr.bf16.mxu0 %v7004_v52  ;;  %v2829_v57 = vpop.permute.xlu1 %2828  ;;  %v6006_v23 = vld [vmem:[%s8614_s12 + $0x58] sm:$0xff] }
0x14be   : > { %v2727_v46 = vmul.f32 %v7449_v45, %v7445_v24  ;;  %v2843_v0 = vsel %vm808_vm4, %v2841_v61, %v2829_v57  ;;  %v7024_v24 = vpack.c.bf16 %v6006_v23, %v6005_v21  ;;  %v6000_v57 = vld [vmem:[%s8613_s11 + $0x1] ss:$0 sm:$0xff] }
0x14bf   : > { %v6017_v23 = vld [vmem:[%s8616_s14 + $0x1] ss:$0 sm:$0xff] }
0x14c0   : > { %6600 = vmatprep.mubr.msk.f32.mxu0 %vm808_vm4, %v2727_v46  ;;  %v5993_v46 = vld [vmem:[%s8610_s8 + $0x1] ss:$0 sm:$0xff] }
0x14c1   : > { %6601 = vmatmul.mubr.msk.f32.vlgmr.msra.gmra.mrb[18].mxu0 %vm808_vm4, %v2728_v47 }
0x14c2   : > { %7007 = vmatpush3.bf16.msra.mxu0 %v7004_v52 }
0x14c3   : > { %7009 = vmatprep.subr.bf16.mxu0 %v7008_v54 }
0x14c6   : > { %7011 = vmatpush3.bf16.msra.mxu0 %v7008_v54 }
0x14c7   : > { %7021 = vmatprep.subr.bf16.mxu0 %v7020_v22 }
0x1594   : > { %v6602_v55 = vpop.f32.mrb[18].mxu0 }
0x1595   : > { %2836 = vrot.lane.b32.xlu1 %v6602_v55, %s8683_s23  ;;  %v2807_v40 = vpop.f32.mrb[19].mxu0 }
0x1596   : > { %2834 = vrot.lane.b32.xlu0 %v2807_v40, %s8683_s23  ;;  %v6009_v40 = vld [vmem:[%s8614_s12 + $0x70] sm:$0xff]  ;;  %s8688_s23 = sld [smem:[#allocation9_spill]] }
0x1597   : > { %v7032_v41 = vpack.c.bf16 %v6010_v56, %v6009_v40 }
0x1607   : > { %v2837_v60 = vpop.permute.xlu1 %2836 }
0x1608   : > { %v2835_v63 = vpop.permute.xlu0 %2834  ;;  %v2845_v2 = vsel %vm1546_vm5, %v2843_v0, %v2837_v60  ;;  %v6012_v0 = vld [vmem:[%s8615_s13 + $0x1] ss:$0 sm:$0xff] }
0x1609   : > { %v2844_v1 = vsel %vm1546_vm5, %v2842_v62, %v2835_v63 }
0x160a   : > { %6611 = vmatprep.mubr.msk.f32.mxu0 %vm636_vm1, %v2844_v1 }
0x160b   : > { %6612 = vmatmul.mubr.msk.f32.vlgmr.msra.gmra.mrb[20].mxu0 %vm636_vm1, %v2845_v2 }
0x160c   : > { %7023 = vmatpush3.bf16.msra.mxu0 %v7020_v22 }
0x160d   : > { %7025 = vmatprep.subr.bf16.mxu0 %v7024_v24 }
0x1610   : > { %7027 = vmatpush3.bf16.msra.mxu0 %v7024_v24 }
0x1611   : > { %7029 = vmatprep.subr.bf16.mxu0 %v7028_v29 }
0x1614   : > { %7031 = vmatpush3.bf16.msra.mxu0 %v7028_v29  ;;  %v6018_v29 = vld [vmem:[%s8617_s15 + $0x1] ss:$0 sm:$0xff] }
0x1615   : > { %7033 = vmatprep.subr.bf16.mxu0 %v7032_v41 }
0x1618   : > { %7035 = vmatpush3.bf16.msra.mxu0 %v7032_v41 }
0x16de   : > { %v6613_v3 = vpop.f32.mrb[20].mxu0 }
0x16df   : > { %v2937_v4 = vadd.f32 %v6613_v3, %v5988_v49  ;;  %v2931_v48 = vpop.f32.mrb[21].mxu0 }
0x16e0   : > { %v2932_v5 = vadd.f32 %v5988_v49, %v2931_v48 }
0x16e1   : > { %v2941_v6 = vadd.f32 %v2937_v4, %v7952_v31 }
0x16e2   : > { %v2940_v7 = vadd.f32 %v2932_v5, %v7950_v30  ;;  %v5995_v30 = vld [vmem:[%s8612_s10 + $0x20] sm:$0xff] }
0x16e3   : > { %v2949_v8 = vsel %vm636_vm1, %v2941_v6, 0.0  ;;  %v7012_v16 = vpack.c.bf16 %v5996_v15, %v5995_v30  ;;  %v6021_v30 = vld [vmem:[%s8606_s4 + $0x50] sm:$0xff]  ;;  %v6022_v15 = vld [vmem:[%s8606_s4 + $0x58] sm:$0xff] }
0x16e4   : > { %2950 = vadd.xlane.f32.xlu1 %v2949_v8  ;;  %v2946_v9 = vsel %vm636_vm1, %v2940_v7, 0.0 }
0x16e5   : > { %2947 = vadd.xlane.f32.xlu0 %v2946_v9  ;;  %7013 = vmatprep.subr.bf16.mxu1 %v7012_v16 }
0x16e6   : > { %7015 = vmatpush3.bf16.msra.mxu1 %v7012_v16  ;;  %v7040_v16 = vpack.c.bf16 %v6022_v15, %v6021_v30 }
0x16e7   : > { %7017 = vmatprep.subr.bf16.mxu1 %v7016_v34 }
0x16ea   : > { %7019 = vmatpush3.bf16.msra.mxu1 %v7016_v34 }
0x1771   : > { %v2951_v37 = vpop.xlane.xlu1 %2950 }
0x1772   : > { %v2953_v10 = vmul.f32 0.03125, %v2951_v37  ;;  %v2948_v35 = vpop.xlane.xlu0 %2947 }
0x1773   : > { %v2952_v11 = vmul.f32 0.03125, %v2948_v35 }
0x1774   : > { %v2955_v12 = vsub.f32 %v2941_v6, %v2953_v10 }
0x1775   : > { %v2954_v28 = vsub.f32 %v2940_v7, %v2952_v11 }
0x1776   : > { %v2957_v14 = vmul.f32 %v2955_v12, %v2955_v12 }
0x1777   : > { %v2956_v27 = vmul.f32 %v2954_v28, %v2954_v28 }
0x1778   : > { %v2961_v31 = vsel %vm636_vm1, %v2957_v14, 0.0  ;;  %v6020_v14 = vld [vmem:[%s8606_s4 + $0x48] sm:$0xff] }
0x1779   : > { %v2958_v13 = vsel %vm636_vm1, %v2956_v27, 0.0 }
0x177a   : > { %2959 = vadd.xlane.f32.xlu0 %v2958_v13  ;;  %v6019_v13 = vld [vmem:[%s8606_s4 + $0x40] sm:$0xff] }
0x177e   : > { %2962 = vadd.xlane.f32.xlu0 %v2961_v31  ;;  %v7036_v31 = vpack.c.bf16 %v6020_v14, %v6019_v13 }
0x1780   : > { %7037 = vmatprep.subr.bf16.mxu1 %v7036_v31 }
0x1807   : > { %v2960_v32 = vpop.xlane.xlu0 %2959 }
0x1808   : > { %v2964_v33 = vmul.f32 0.03125, %v2960_v32 }
0x180a   : > { %v2966_v36 = vadd.f32 1e-05, %v2964_v33 }
0x180b   : > { %v2963_v42 = vpop.xlane.xlu0 %2962 }
0x180c   : > { %7450 = vrsqrt.f32 %v2966_v36  ;;  %v2965_v43 = vmul.f32 0.03125, %v2963_v42 }
0x180e   : > { %v2967_v44 = vadd.f32 1e-05, %v2965_v43  ;;  %v6024_v43 = vld [vmem:[%s8607_s5 + $0x2] ss:$0 sm:$0xff] }
0x1810   : > { %7452 = vrsqrt.f32 %v2967_v44 }
0x1816   : > { %v7451_v45 = vpop.eup %7450 }
0x1817   : > { %v2970_v47 = vmul.f32 %v7451_v45, %v2954_v28 }
0x1819   : > { %v2978_v50 = vmul.f32 %v5993_v46, %v2970_v47 }
0x181a   : > { %v7453_v51 = vpop.eup %7452 }
0x181b   : > { %v2971_v52 = vmul.f32 %v7453_v51, %v2955_v12  ;;  %v2986_v53 = vadd.f32 %v5994_v39, %v2978_v50 }
0x181d   : > { %v2979_v54 = vmul.f32 %v5993_v46, %v2971_v52  ;;  %6622 = vmatprep.mubr.msk.f32.mxu1 %vm636_vm1, %v2986_v53 }
0x181f   : > { %v2987_v55 = vadd.f32 %v5994_v39, %v2979_v54 }
0x1821   : > { %6623 = vmatmul.mubr.msk.f32.vlgmr.msra.gmra.mrb[24].mxu1 %vm636_vm1, %v2987_v55 }
0x1822   : > { %7039 = vmatpush3.bf16.msra.mxu1 %v7036_v31 }
0x1823   : > { %7041 = vmatprep.subr.bf16.mxu1 %v7040_v16 }
0x1826   : > { %7043 = vmatpush3.bf16.msra.mxu1 %v7040_v16 }
0x18f4   : > { %v6624_v58 = vpop.f32.mrb[24].mxu1 }
0x18f5   : > { %v3079_v59 = vadd.f32 %v6624_v58, %v6000_v57  ;;  %v3073_v60 = vpop.f32.mrb[25].mxu1 }
0x18f6   : > { %v3074_v61 = vadd.f32 %v6000_v57, %v3073_v60 }
0x18f7   : > { %v3083_v63 = vmax.f32 %v3079_v59, 0.0 }
0x18f8   : > { %v3082_v62 = vmax.f32 %v3074_v61, 0.0 }
0x18fa   : > { %6641 = vmatprep.mubr.msk.f32.mxu0 %vm539_vm0, %v3082_v62 }
0x18fb   : > { %6642 = vmatmul.mubr.msk.f32.vlgmr.msra.gmra.mrb[22].mxu0 %vm539_vm0, %v3083_v63 }
0x19ce   : > { %v6643_v1 = vpop.f32.mrb[22].mxu0 }
0x19cf   : > { %v3179_v2 = vadd.f32 %v6643_v1, %v6012_v0  ;;  %v3173_v49 = vpop.f32.mrb[23].mxu0 }
0x19d0   : > { %v3174_v3 = vadd.f32 %v6012_v0, %v3173_v49 }
0x19d1   : > { %v3183_v4 = vadd.f32 %v3179_v2, %v2987_v55 }
0x19d2   : > { %v3182_v48 = vadd.f32 %v3174_v3, %v2986_v53 }
0x19d3   : > { %v3191_v5 = vsel %vm636_vm1, %v3183_v4, 0.0 }
0x19d4   : > { %3192 = vadd.xlane.f32.xlu0 %v3191_v5  ;;  %v3188_v6 = vsel %vm636_vm1, %v3182_v48, 0.0 }
0x19d5   : > { %3189 = vadd.xlane.f32.xlu1 %v3188_v6 }
0x1a61   : > { %v3193_v7 = vpop.xlane.xlu0 %3192 }
0x1a62   : > { %v3195_v8 = vmul.f32 0.03125, %v3193_v7  ;;  %v3190_v9 = vpop.xlane.xlu1 %3189 }
0x1a63   : > { %v3194_v37 = vmul.f32 0.03125, %v3190_v9 }
0x1a64   : > { %v3197_v10 = vsub.f32 %v3183_v4, %v3195_v8 }
0x1a65   : > { %v3196_v35 = vsub.f32 %v3182_v48, %v3194_v37 }
0x1a66   : > { %v3199_v11 = vmul.f32 %v3197_v10, %v3197_v10 }
0x1a67   : > { %v3198_v12 = vmul.f32 %v3196_v35, %v3196_v35 }
0x1a68   : > { %v3203_v28 = vsel %vm636_vm1, %v3199_v11, 0.0 }
0x1a69   : > { %3204 = vadd.xlane.f32.xlu0 %v3203_v28  ;;  %v3200_v27 = vsel %vm636_vm1, %v3198_v12, 0.0 }
0x1a6a   : > { %3201 = vadd.xlane.f32.xlu1 %v3200_v27 }
0x1af6   : > { %v3205_v17 = vpop.xlane.xlu0 %3204 }
0x1af7   : > { %v3207_v18 = vmul.f32 0.03125, %v3205_v17  ;;  %v3202_v34 = vpop.xlane.xlu1 %3201 }
0x1af8   : > { %v3206_v19 = vmul.f32 0.03125, %v3202_v34 }
0x1af9   : > { %v3209_v20 = vadd.f32 1e-05, %v3207_v18 }
0x1afa   : > { %v3208_v21 = vadd.f32 1e-05, %v3206_v19 }
0x1afb   : > { %7454 = vrsqrt.f32 %v3209_v20 }
0x1afc   : > { %7456 = vrsqrt.f32 %v3208_v21 }
0x1b05   : > { %v7455_v22 = vpop.eup %7454 }
0x1b06   : > { %v7457_v24 = vpop.eup %7456  ;;  %v3213_v25 = vmul.f32 %v7455_v22, %v3197_v10 }
0x1b07   : > { %v3212_v26 = vmul.f32 %v7457_v24, %v3196_v35 }
0x1b08   : > { %v3221_v32 = vmul.f32 %v6017_v23, %v3213_v25 }
0x1b09   : > { %v3220_v33 = vmul.f32 %v6017_v23, %v3212_v26 }
0x1b0a   : > { %v8170_v42 = vadd.f32 %v6018_v29, %v3221_v32 }
0x1b0b   : > { %v8168_v36 = vadd.f32 %v6018_v29, %v3220_v33 }
0x1b0d   : > { %6652 = vmatprep.mubr.msk.f32.mxu1 %vm636_vm1, %v8168_v36 }
0x1b0e   : > { %6653 = vmatmul.mubr.msk.f32.vlgmr.msra.gmra.mrb[26].mxu1 %vm636_vm1, %v8170_v42 }
0x1be1   : > { %v6654_v44 = vpop.f32.mrb[26].mxu1 }
0x1be2   : > { %v8179_v45 = vadd.f32 %v6654_v44, %v6024_v43  ;;  %v3315_v46 = vpop.f32.mrb[27].mxu1 }
0x1be3   : > { %v8181_v47 = vadd.f32 %v6024_v43, %v3315_v46 }
0x1be5   : > { %6659 = vmatprep.mubr.msk.f32.mxu1 %vm724_vm2, %v8181_v47  ;;  %v8187_v39 = vpack.i.bf16 %v8179_v45, %v8181_v47 }
0x1be7   : > { %7304 = vrot.lane.b32.xlu0 %v8187_v39, %s8684_s22  ;;  %7299 = vrot.lane.b32.xlu1 %v8187_v39, %s8685_s2 }
0x1beb   : > { %3522 = vrot.lane.b32.xlu1 %v8181_v47, %s8686_s3 }
0x1bef   : > { %3524 = vrot.lane.b32.xlu1 %v8179_v45, %s8686_s3 }
0x1c59   : > { %v7305_v50 = vpop.permute.xlu0 %7304  ;;  %v7300_v51 = vpop.permute.xlu1 %7299 }
0x1c5a   : > { %v7307_v52 = vunpack.i.h.bf16 %v7305_v50  ;;  %v7306_v53 = vunpack.i.l.bf16 %v7305_v50  ;;  %v7302_v54 = vunpack.i.h.bf16 %v7300_v51  ;;  %v7301_v55 = vunpack.i.l.bf16 %v7300_v51 }
0x1c5c   : > { %v7044_v40 = vpack.c.bf16 %v7302_v54, %v7301_v55  ;;  %v7054_v56 = vpack.c.bf16 %v7307_v52, %v7306_v53 }
0x1c5d   : > { %v3523_v41 = vpop.permute.xlu1 %3522 }
0x1c5e   : > { %7046 = vmatprep.subr.msk.bf16.mxu1 %vm7745_vm3, %v7044_v40 }
0x1c5f   : > { %7049 = vmatpush3.bf16.xpose.msk.msra.mxu1 %vm7745_vm3, %v7044_v40 }
0x1c60   : > { %7056 = vmatprep.subr.msk.bf16.mxu1 %vm7745_vm3, %v7054_v56 }
0x1c61   : > { %v3525_v57 = vpop.permute.xlu1 %3524 }
0x1c66   : > { %6660 = vmatmul.mubr.msk.f32.vlgmr.msra.gmra.mrb[28].mxu1 %vm724_vm2, %v8179_v45 }
0x1c67   : > { %7059 = vmatpush3.bf16.xpose.msk.msra.mxu1 %vm7745_vm3, %v7054_v56  ;;  %6673 = vmatprep.mubr.msk.f32.mxu1 %vm724_vm2, %v3523_v41 }
0x1c6e   : > { %6674 = vmatmul.mubr.msk.f32.vlgmr.msra.gmra.mrb[30].mxu1 %vm724_vm2, %v3525_v57 }
0x1d39   : > { %v6661_v58 = vpop.f32.mrb[28].mxu1 }
0x1d3a   : > { %v3404_v59 = vpop.f32.mrb[29].mxu1  ;;  %v3416_v60 = vsel %vm808_vm4, %v6661_v58, -inf }
0x1d3b   : > { %3417 = vmax.xlane.f32.xlu1 %v3416_v60  ;;  %v3413_v61 = vsel %vm808_vm4, %v3404_v59, -inf }
0x1d3c   : > { %3414 = vmax.xlane.f32.xlu0 %v3413_v61 }
0x1d41   : > { %v6675_v62 = vpop.f32.mrb[30].mxu1 }
0x1d42   : > { %v3604_v63 = vpop.f32.mrb[31].mxu1  ;;  %v3616_v1 = vsel %vm808_vm4, %v6675_v62, -inf }
0x1d43   : > { %v3613_v0 = vsel %vm808_vm4, %v3604_v63, -inf }
0x1d44   : > { %3614 = vmax.xlane.f32.xlu0 %v3613_v0 }
0x1d48   : > { %3617 = vmax.xlane.f32.xlu0 %v3616_v1 }
0x1d4c   : > { %7309 = vrot.lane.b32.xlu1 %v8187_v39, %s8673_s26 }
0x1dc8   : > { %v3418_v2 = vpop.xlane.xlu1 %3417 }
0x1dc9   : > { %v3420_v49 = vsub.f32 %v6661_v58, %v3418_v2  ;;  %v3415_v3 = vpop.xlane.xlu0 %3414 }
0x1dca   : > { %v3419_v4 = vsub.f32 %v3404_v59, %v3415_v3 }
0x1dcb   : > { %v3423_v48 = vmul.f32 1.442695, %v3420_v49 }
0x1dcc   : > { %v3421_v5 = vmul.f32 1.442695, %v3419_v4  ;;  %v7310_v6 = vpop.permute.xlu1 %7309 }
0x1dcd   : > { %7458 = vpow2.f32 %v3423_v48  ;;  %v7312_v7 = vunpack.i.h.bf16 %v7310_v6  ;;  %v7311_v8 = vunpack.i.l.bf16 %v7310_v6 }
0x1dce   : > { %7460 = vpow2.f32 %v3421_v5 }
0x1dcf   : > { %v7050_v9 = vpack.c.bf16 %v7312_v7, %v7311_v8 }
0x1dd1   : > { %7051 = vmatprep.subr.bf16.mxu0 %v7050_v9  ;;  %v3615_v37 = vpop.xlane.xlu0 %3614 }
0x1dd2   : > { %7053 = vmatpush3.bf16.msra.mxu0 %v7050_v9  ;;  %v3619_v30 = vsub.f32 %v3604_v63, %v3615_v37 }
0x1dd4   : > { %v3621_v15 = vmul.f32 1.442695, %v3619_v30 }
0x1dd5   : > { %v3618_v10 = vpop.xlane.xlu0 %3617 }
0x1dd6   : > { %v3620_v35 = vsub.f32 %v6675_v62, %v3618_v10 }
0x1dd7   : > { %v7459_v11 = vpop.eup %7458 }
0x1dd8   : > { %v7461_v12 = vpop.eup %7460  ;;  %v3623_v28 = vmul.f32 1.442695, %v3620_v35  ;;  %v3428_v27 = vsel %vm808_vm4, %v7459_v11, 0.0 }
0x1dd9   : > { %3429 = vadd.xlane.f32.xlu0 %v3428_v27  ;;  %v3425_v13 = vsel %vm808_vm4, %v7461_v12, 0.0 }
0x1dda   : > { %7462 = vpow2.f32 %v3623_v28  ;;  %3426 = vadd.xlane.f32.xlu1 %v3425_v13 }
0x1ddb   : > { %7464 = vpow2.f32 %v3621_v15 }
0x1de4   : > { %v7463_v14 = vpop.eup %7462 }
0x1de5   : > { %v3628_v31 = vsel %vm808_vm4, %v7463_v14, 0.0  ;;  %v7465_v16 = vpop.eup %7464 }
0x1de6   : > { %3629 = vadd.xlane.f32.xlu0 %v3628_v31  ;;  %v3625_v17 = vsel %vm808_vm4, %v7465_v16, 0.0 }
0x1deb   : > { %7319 = vrot.lane.b32.xlu1 %v8187_v39, %s8674_s30 }
0x1dfc   : > { %7314 = vrot.lane.b32.xlu0 %v8187_v39, %s8675_s0 }
0x1e00   : > { %3724 = vrot.lane.b32.xlu0 %v8179_v45, %s8676_s17 }
0x1e0f   : > { %3626 = vadd.xlane.f32.xlu1 %v3625_v17 }
0x1e20   : > { %3722 = vrot.lane.b32.xlu1 %v8181_v47, %s8676_s17 }
0x1e66   : > { %v3430_v18 = vpop.xlane.xlu0 %3429 }
0x1e67   : > { %7466 = vrcp.f32 %v3430_v18  ;;  %v3427_v34 = vpop.xlane.xlu1 %3426 }
0x1e68   : > { %7468 = vrcp.f32 %v3427_v34 }
0x1e6b   : > { %v7320_v24 = vpop.permute.xlu1 %7319 }
0x1e6c   : > { %v7322_v26 = vunpack.i.h.bf16 %v7320_v24  ;;  %v7321_v29 = vunpack.i.l.bf16 %v7320_v24 }
0x1e6e   : > { %v7064_v44 = vpack.c.bf16 %v7322_v26, %v7321_v29 }
0x1e71   : > { %v7467_v19 = vpop.eup %7466 }
0x1e72   : > { %v7469_v20 = vpop.eup %7468  ;;  %v3434_v23 = vmul.f32 %v7467_v19, %v7459_v11 }
0x1e73   : > { %v3630_v21 = vpop.xlane.xlu0 %3629  ;;  %v3433_v22 = vmul.f32 %v7469_v20, %v7461_v12 }
0x1e74   : > { %7470 = vrcp.f32 %v3630_v21 }
0x1e75   : > { %6666 = vmatprep.mubr.msk.f32.mxu0 %vm808_vm4, %v3433_v22 }
0x1e76   : > { %6667 = vmatmul.mubr.msk.f32.vlgmr.msra.gmra.mrb[24].mxu0 %vm808_vm4, %v3434_v23 }
0x1e77   : > { %v7315_v25 = vpop.permute.xlu0 %7314 }
0x1e78   : > { %v7317_v32 = vunpack.i.h.bf16 %v7315_v25  ;;  %v7316_v33 = vunpack.i.l.bf16 %v7315_v25 }
0x1e7a   : > { %v7060_v43 = vpack.c.bf16 %v7317_v32, %v7316_v33 }
0x1e7b   : > { %v3725_v55 = vpop.permute.xlu0 %3724 }
0x1e7c   : > { %7061 = vmatprep.subr.bf16.mxu0 %v7060_v43 }
0x1e7d   : > { %7063 = vmatpush3.bf16.msra.mxu0 %v7060_v43 }
0x1e7e   : > { %7066 = vmatprep.subr.msk.bf16.mxu0 %vm7745_vm3, %v7064_v44  ;;  %v7471_v50 = vpop.eup %7470 }
0x1e7f   : > { %v3634_v53 = vmul.f32 %v7471_v50, %v7463_v14 }
0x1e9c   : > { %v3627_v46 = vpop.xlane.xlu1 %3626 }
0x1e9d   : > { %7472 = vrcp.f32 %v3627_v46 }
0x1ea0   : > { %v3723_v54 = vpop.permute.xlu1 %3722 }
0x1ea7   : > { %v7473_v51 = vpop.eup %7472 }
0x1ea8   : > { %v3633_v52 = vmul.f32 %v7473_v51, %v7465_v16 }
0x1eaa   : > { %6680 = vmatprep.mubr.msk.f32.mxu0 %vm808_vm4, %v3633_v52 }
0x1eab   : > { %6681 = vmatmul.mubr.msk.f32.vlgmr.msra.gmra.mrb[26].mxu0 %vm808_vm4, %v3634_v53 }
0x1eac   : > { %7069 = vmatpush3.bf16.xpose.msk.msra.mxu0 %vm7745_vm3, %v7064_v44  ;;  %6687 = vmatprep.mubr.msk.f32.mxu0 %vm724_vm2, %v3723_v54 }
0x1eb3   : > { %6688 = vmatmul.mubr.msk.f32.vlgmr.msra.gmra.mrb[28].mxu0 %vm724_vm2, %v3725_v55 }
0x1f49   : > { %v8237_v40 = vpop.f32.mrb[24].mxu0 }
0x1f4a   : > { %v8239_v56 = vpop.f32.mrb[25].mxu0 }
0x1f7e   : > { %v8241_v41 = vpop.f32.mrb[26].mxu0 }
0x1f7f   : > { %v8243_v57 = vpop.f32.mrb[27].mxu0 }
0x1f86   : > { %v6689_v58 = vpop.f32.mrb[28].mxu0 }
0x1f87   : > { %v3804_v59 = vpop.f32.mrb[29].mxu0  ;;  %v3816_v60 = vsel %vm808_vm4, %v6689_v58, -inf }
0x1f88   : > { %3817 = vmax.xlane.f32.xlu0 %v3816_v60  ;;  %v3813_v61 = vsel %vm808_vm4, %v3804_v59, -inf }
0x1f89   : > { %3814 = vmax.xlane.f32.xlu1 %v3813_v61 }
0x2015   : > { %v3818_v62 = vpop.xlane.xlu0 %3817 }
0x2016   : > { %v3820_v63 = vsub.f32 %v6689_v58, %v3818_v62  ;;  %v3815_v0 = vpop.xlane.xlu1 %3814 }
0x2017   : > { %v3819_v1 = vsub.f32 %v3804_v59, %v3815_v0  ;;  %v6054_v59 = vld [vmem:[%s8671_s6 + $0x58] sm:$0xff] }
0x2018   : > { %v3823_v2 = vmul.f32 1.442695, %v3820_v63 }
0x2019   : > { %v3821_v49 = vmul.f32 1.442695, %v3819_v1 }
0x201a   : > { %7474 = vpow2.f32 %v3823_v2 }
0x201b   : > { %7476 = vpow2.f32 %v3821_v49 }
0x2024   : > { %v7475_v3 = vpop.eup %7474 }
0x2025   : > { %v7477_v4 = vpop.eup %7476  ;;  %v3828_v48 = vsel %vm808_vm4, %v7475_v3, 0.0 }
0x2026   : > { %3829 = vadd.xlane.f32.xlu1 %v3828_v48  ;;  %v3825_v5 = vsel %vm808_vm4, %v7477_v4, 0.0 }
0x2027   : > { %3826 = vadd.xlane.f32.xlu0 %v3825_v5 }
0x2037   : > { %7329 = vrot.lane.b32.xlu1 %v8187_v39, %s8677_s20 }
0x203b   : > { %3922 = vrot.lane.b32.xlu1 %v8181_v47, %s8678_s18 }
0x203d   : > { %7324 = vrot.lane.b32.xlu0 %v8187_v39, %s8679_s19 }
0x2041   : > { %3924 = vrot.lane.b32.xlu0 %v8179_v45, %s8678_s18 }
0x20b3   : > { %v3830_v6 = vpop.xlane.xlu1 %3829 }
0x20b4   : > { %7478 = vrcp.f32 %v3830_v6  ;;  %v3827_v7 = vpop.xlane.xlu0 %3826 }
0x20b5   : > { %7480 = vrcp.f32 %v3827_v7 }
0x20b7   : > { %v7330_v8 = vpop.permute.xlu1 %7329 }
0x20b8   : > { %v7325_v9 = vpop.permute.xlu0 %7324  ;;  %v7332_v37 = vunpack.i.h.bf16 %v7330_v8  ;;  %v7331_v10 = vunpack.i.l.bf16 %v7330_v8 }
0x20b9   : > { %v7327_v35 = vunpack.i.h.bf16 %v7325_v9  ;;  %v7326_v11 = vunpack.i.l.bf16 %v7325_v9 }
0x20ba   : > { %v7074_v28 = vpack.c.bf16 %v7332_v37, %v7331_v10 }
0x20bb   : > { %v7070_v12 = vpack.c.bf16 %v7327_v35, %v7326_v11  ;;  %v3923_v14 = vpop.permute.xlu1 %3922 }
0x20bc   : > { %v3925_v31 = vpop.permute.xlu0 %3924 }
0x20bd   : > { %7071 = vmatprep.subr.bf16.mxu1 %v7070_v12 }
0x20be   : > { %v7479_v47 = vpop.eup %7478  ;;  %7073 = vmatpush3.bf16.msra.mxu1 %v7070_v12 }
0x20bf   : > { %v7481_v27 = vpop.eup %7480  ;;  %7076 = vmatprep.subr.msk.bf16.mxu1 %vm7745_vm3, %v7074_v28  ;;  %v3834_v13 = vmul.f32 %v7479_v47, %v7475_v3 }
0x20c0   : > { %v3833_v45 = vmul.f32 %v7481_v27, %v7477_v4 }
0x20c2   : > { %6694 = vmatprep.mubr.msk.f32.mxu1 %vm808_vm4, %v3833_v45 }
0x20c3   : > { %6695 = vmatmul.mubr.msk.f32.vlgmr.msra.gmra.mrb[32].mxu1 %vm808_vm4, %v3834_v13 }
0x20c4   : > { %6701 = vmatprep.mubr.msk.f32.mxu1 %vm724_vm2, %v3923_v14 }
0x20c7   : > { %7079 = vmatpush3.bf16.xpose.msk.msra.mxu1 %vm7745_vm3, %v7074_v28 }
0x20ce   : > { %6702 = vmatmul.mubr.msk.f32.vlgmr.msra.gmra.mrb[34].mxu1 %vm724_vm2, %v3925_v31 }
0x2196   : > { %v6696_v30 = vpop.f32.mrb[32].mxu1 }
0x2197   : > { %v3913_v15 = vpop.f32.mrb[33].mxu1 }
0x21a1   : > { %v6703_v16 = vpop.f32.mrb[34].mxu1 }
0x21a2   : > { %v4004_v17 = vpop.f32.mrb[35].mxu1  ;;  %v4016_v18 = vsel %vm808_vm4, %v6703_v16, -inf }
0x21a3   : > { %4017 = vmax.xlane.f32.xlu0 %v4016_v18  ;;  %v4013_v34 = vsel %vm808_vm4, %v4004_v17, -inf }
0x21a4   : > { %4014 = vmax.xlane.f32.xlu1 %v4013_v34  ;;  %v6065_v34 = vld [vmem:[%s8612_s10 + $0x50] sm:$0xff] }
0x2230   : > { %v4018_v19 = vpop.xlane.xlu0 %4017 }
0x2231   : > { %v4020_v20 = vsub.f32 %v6703_v16, %v4018_v19  ;;  %v4015_v21 = vpop.xlane.xlu1 %4014  ;;  %v6066_v19 = vld [vmem:[%s8612_s10 + $0x58] sm:$0xff] }
0x2232   : > { %v4019_v22 = vsub.f32 %v4004_v17, %v4015_v21  ;;  %v6064_v17 = vld [vmem:[%s8612_s10 + $0x48] sm:$0xff]  ;;  %v6071_v21 = vld [vmem:[%s8614_s12 + $0x80] sm:$0xff] }
0x2233   : > { %v4023_v23 = vmul.f32 1.442695, %v4020_v20  ;;  %v7096_v20 = vpack.c.bf16 %v6066_v19, %v6065_v34 }
0x2234   : > { %v4021_v24 = vmul.f32 1.442695, %v4019_v22  ;;  %v6072_v22 = vld [vmem:[%s8614_s12 + $0x88] sm:$0xff] }
0x2235   : > { %7482 = vpow2.f32 %v4023_v23  ;;  %v6073_v23 = vld [vmem:[%s8614_s12 + $0x90] sm:$0xff] }
0x2236   : > { %7484 = vpow2.f32 %v4021_v24  ;;  %v7100_v24 = vpack.c.bf16 %v6072_v22, %v6071_v21 }
0x223f   : > { %v7483_v25 = vpop.eup %7482 }
0x2240   : > { %v7485_v26 = vpop.eup %7484  ;;  %v4028_v29 = vsel %vm808_vm4, %v7483_v25, 0.0 }
0x2241   : > { %4029 = vadd.xlane.f32.xlu1 %v4028_v29  ;;  %v4025_v32 = vsel %vm808_vm4, %v7485_v26, 0.0  ;;  %v6075_v29 = vld [vmem:[%s8614_s12 + $0xa0] sm:$0xff] }
0x2242   : > { %4026 = vadd.xlane.f32.xlu0 %v4025_v32  ;;  %v6076_v32 = vld [vmem:[%s8614_s12 + $0xa8] sm:$0xff] }
0x2252   : > { %4124 = vrot.lane.b32.xlu1 %v8243_v57, %s8680_s28  ;;  %v6053_v57 = vld [vmem:[%s8671_s6 + $0x50] sm:$0xff] }
0x2253   : > { %v7088_v60 = vpack.c.bf16 %v6054_v59, %v6053_v57 }
0x2256   : > { %4126 = vrot.lane.b32.xlu1 %v8241_v41, %s8680_s28  ;;  %v6052_v41 = vld [vmem:[%s8671_s6 + $0x48] sm:$0xff] }
0x2258   : > { %7334 = vrot.lane.b32.xlu0 %v8187_v39, %s8681_s27  ;;  %v6051_v39 = vld [vmem:[%s8671_s6 + $0x40] sm:$0xff] }
0x2259   : > { %v7084_v58 = vpack.c.bf16 %v6052_v41, %v6051_v39  ;;  %v6062_v39 = vld [vmem:[%s8611_s9 + $0x2] ss:$0 sm:$0xff] }
0x225a   : > { %4134 = vrot.lane.b32.xlu1 %v6696_v30, %s8682_s29 }
0x225c   : > { %4132 = vrot.lane.b32.xlu0 %v3913_v15, %s8682_s29 }
0x22ce   : > { %v4030_v33 = vpop.xlane.xlu1 %4029 }
0x22cf   : > { %7486 = vrcp.f32 %v4030_v33  ;;  %v4027_v43 = vpop.xlane.xlu0 %4026  ;;  %v7108_v33 = vpack.c.bf16 %v6076_v32, %v6075_v29 }
0x22d0   : > { %7488 = vrcp.f32 %v4027_v43 }
0x22d2   : > { %v4125_v63 = vpop.permute.xlu1 %4124 }
0x22d3   : > { %v7335_v44 = vpop.permute.xlu0 %7334  ;;  %v4146_v49 = vsel %vm724_vm2, %v8239_v56, %v4125_v63  ;;  %v6056_v56 = vld [vmem:[%s8688_s23 + $0x2] ss:$0 sm:$0xff]  ;;  %v6078_v63 = vld [vmem:[%s8614_s12 + $0xb8] sm:$0xff] }
0x22d4   : > { %v7337_v46 = vunpack.i.h.bf16 %v7335_v44  ;;  %v7336_v50 = vunpack.i.l.bf16 %v7335_v44 }
0x22d6   : > { %v7080_v51 = vpack.c.bf16 %v7337_v46, %v7336_v50  ;;  %v4127_v0 = vpop.permute.xlu1 %4126 }
0x22d7   : > { %v4133_v2 = vpop.permute.xlu0 %4132  ;;  %v4147_v4 = vsel %vm724_vm2, %v8237_v40, %v4127_v0 }
0x22d8   : > { %7081 = vmatprep.subr.bf16.mxu0 %v7080_v51  ;;  %v4148_v48 = vsel %vm808_vm4, %v4146_v49, %v4133_v2 }
0x22d9   : > { %v7487_v52 = vpop.eup %7486  ;;  %7083 = vmatpush3.bf16.msra.mxu0 %v7080_v51 }
0x22da   : > { %v7489_v53 = vpop.eup %7488  ;;  %v4034_v55 = vmul.f32 %v7487_v52, %v7483_v25  ;;  %7085 = vmatprep.subr.bf16.mxu0 %v7084_v58  ;;  %v4135_v1 = vpop.permute.xlu1 %4134  ;;  %v6074_v25 = vld [vmem:[%s8614_s12 + $0x98] sm:$0xff] }
0x22db   : > { %v4033_v54 = vmul.f32 %v7489_v53, %v7485_v26  ;;  %v4149_v6 = vsel %vm808_vm4, %v4147_v4, %v4135_v1  ;;  %v7104_v26 = vpack.c.bf16 %v6074_v25, %v6073_v23  ;;  %v6068_v1 = vld [vmem:[%s8613_s11 + $0x2] ss:$0 sm:$0xff] }
0x22dc   : > { %v6085_v25 = vld [vmem:[%s8616_s14 + $0x2] ss:$0 sm:$0xff] }
0x22dd   : > { %6708 = vmatprep.mubr.msk.f32.mxu0 %vm808_vm4, %v4033_v54  ;;  %v6061_v54 = vld [vmem:[%s8610_s8 + $0x2] ss:$0 sm:$0xff] }
0x22de   : > { %6709 = vmatmul.mubr.msk.f32.vlgmr.msra.gmra.mrb[30].mxu0 %vm808_vm4, %v4034_v55 }
0x22df   : > { %7087 = vmatpush3.bf16.msra.mxu0 %v7084_v58 }
0x22e0   : > { %7089 = vmatprep.subr.bf16.mxu0 %v7088_v60 }
0x22e3   : > { %7091 = vmatpush3.bf16.msra.mxu0 %v7088_v60 }
0x22e4   : > { %7101 = vmatprep.subr.bf16.mxu0 %v7100_v24 }
0x23b1   : > { %v6710_v61 = vpop.f32.mrb[30].mxu0 }
0x23b2   : > { %4142 = vrot.lane.b32.xlu1 %v6710_v61, %s8687_s16  ;;  %v4113_v62 = vpop.f32.mrb[31].mxu0 }
0x23b3   : > { %4140 = vrot.lane.b32.xlu0 %v4113_v62, %s8687_s16  ;;  %v6077_v62 = vld [vmem:[%s8614_s12 + $0xb0] sm:$0xff]  ;;  %s8692_s16 = smov 24  }
0x23b4   : > { %v7112_v0 = vpack.c.bf16 %v6078_v63, %v6077_v62 }
0x2424   : > { %v4143_v3 = vpop.permute.xlu1 %4142 }
0x2425   : > { %v4141_v5 = vpop.permute.xlu0 %4140  ;;  %v4151_v8 = vsel %vm1546_vm5, %v4149_v6, %v4143_v3  ;;  %v6080_v6 = vld [vmem:[%s8615_s13 + $0x2] ss:$0 sm:$0xff] }
0x2426   : > { %v4150_v7 = vsel %vm1546_vm5, %v4148_v48, %v4141_v5 }
0x2427   : > { %6719 = vmatprep.mubr.msk.f32.mxu0 %vm636_vm1, %v4150_v7 }
0x2428   : > { %6720 = vmatmul.mubr.msk.f32.vlgmr.msra.gmra.mrb[32].mxu0 %vm636_vm1, %v4151_v8 }
0x2429   : > { %7103 = vmatpush3.bf16.msra.mxu0 %v7100_v24 }
0x242a   : > { %7105 = vmatprep.subr.bf16.mxu0 %v7104_v26 }
0x242d   : > { %7107 = vmatpush3.bf16.msra.mxu0 %v7104_v26 }
0x242e   : > { %7109 = vmatprep.subr.bf16.mxu0 %v7108_v33 }
0x2431   : > { %7111 = vmatpush3.bf16.msra.mxu0 %v7108_v33  ;;  %v6086_v33 = vld [vmem:[%s8617_s15 + $0x2] ss:$0 sm:$0xff] }
0x2432   : > { %7113 = vmatprep.subr.bf16.mxu0 %v7112_v0 }
0x2435   : > { %7115 = vmatpush3.bf16.msra.mxu0 %v7112_v0 }
0x24fb   : > { %v6721_v9 = vpop.f32.mrb[32].mxu0 }
0x24fc   : > { %v4243_v37 = vadd.f32 %v6721_v9, %v6056_v56  ;;  %v4237_v40 = vpop.f32.mrb[33].mxu0 }
0x24fd   : > { %v4238_v10 = vadd.f32 %v6056_v56, %v4237_v40 }
0x24fe   : > { %v4247_v35 = vadd.f32 %v4243_v37, %v8170_v42 }
0x24ff   : > { %v4246_v11 = vadd.f32 %v4238_v10, %v8168_v36  ;;  %v6063_v36 = vld [vmem:[%s8612_s10 + $0x40] sm:$0xff] }
0x2500   : > { %v4255_v12 = vsel %vm636_vm1, %v4247_v35, 0.0  ;;  %v7092_v18 = vpack.c.bf16 %v6064_v17, %v6063_v36  ;;  %v6089_v36 = vld [vmem:[%s8606_s4 + $0x70] sm:$0xff]  ;;  %v6090_v17 = vld [vmem:[%s8606_s4 + $0x78] sm:$0xff] }
0x2501   : > { %4256 = vadd.xlane.f32.xlu1 %v4255_v12  ;;  %v4252_v28 = vsel %vm636_vm1, %v4246_v11, 0.0 }
0x2502   : > { %4253 = vadd.xlane.f32.xlu0 %v4252_v28  ;;  %7093 = vmatprep.subr.bf16.mxu1 %v7092_v18 }
0x2503   : > { %7095 = vmatpush3.bf16.msra.mxu1 %v7092_v18  ;;  %v7120_v18 = vpack.c.bf16 %v6090_v17, %v6089_v36 }
0x2504   : > { %7097 = vmatprep.subr.bf16.mxu1 %v7096_v20 }
0x2507   : > { %7099 = vmatpush3.bf16.msra.mxu1 %v7096_v20 }
0x258e   : > { %v4257_v47 = vpop.xlane.xlu1 %4256 }
0x258f   : > { %v4259_v27 = vmul.f32 0.03125, %v4257_v47  ;;  %v4254_v45 = vpop.xlane.xlu0 %4253 }
0x2590   : > { %v4258_v13 = vmul.f32 0.03125, %v4254_v45 }
0x2591   : > { %v4261_v14 = vsub.f32 %v4247_v35, %v4259_v27 }
0x2592   : > { %v4260_v31 = vsub.f32 %v4246_v11, %v4258_v13 }
0x2593   : > { %v4263_v16 = vmul.f32 %v4261_v14, %v4261_v14 }
0x2594   : > { %v4262_v30 = vmul.f32 %v4260_v31, %v4260_v31 }
0x2595   : > { %v4267_v42 = vsel %vm636_vm1, %v4263_v16, 0.0  ;;  %v6088_v16 = vld [vmem:[%s8606_s4 + $0x68] sm:$0xff] }
0x2596   : > { %v4264_v15 = vsel %vm636_vm1, %v4262_v30, 0.0 }
0x2597   : > { %4265 = vadd.xlane.f32.xlu0 %v4264_v15  ;;  %v6087_v15 = vld [vmem:[%s8606_s4 + $0x60] sm:$0xff] }
0x259b   : > { %4268 = vadd.xlane.f32.xlu0 %v4267_v42  ;;  %v7116_v42 = vpack.c.bf16 %v6088_v16, %v6087_v15 }
0x259d   : > { %7117 = vmatprep.subr.bf16.mxu1 %v7116_v42 }
0x2624   : > { %v4266_v43 = vpop.xlane.xlu0 %4265 }
0x2625   : > { %v4270_v44 = vmul.f32 0.03125, %v4266_v43 }
0x2627   : > { %v4272_v46 = vadd.f32 1e-05, %v4270_v44 }
0x2628   : > { %v4269_v50 = vpop.xlane.xlu0 %4268 }
0x2629   : > { %7490 = vrsqrt.f32 %v4272_v46  ;;  %v4271_v51 = vmul.f32 0.03125, %v4269_v50 }
0x262b   : > { %v4273_v52 = vadd.f32 1e-05, %v4271_v51  ;;  %v6092_v51 = vld [vmem:[%s8607_s5 + $0x3] ss:$0 sm:$0xff] }
0x262d   : > { %7492 = vrsqrt.f32 %v4273_v52 }
0x2633   : > { %v7491_v53 = vpop.eup %7490 }
0x2634   : > { %v4276_v55 = vmul.f32 %v7491_v53, %v4260_v31 }
0x2636   : > { %v4284_v41 = vmul.f32 %v6061_v54, %v4276_v55 }
0x2637   : > { %v7493_v57 = vpop.eup %7492 }
0x2638   : > { %v4277_v58 = vmul.f32 %v7493_v57, %v4261_v14  ;;  %v4292_v59 = vadd.f32 %v6062_v39, %v4284_v41 }
0x263a   : > { %v4285_v60 = vmul.f32 %v6061_v54, %v4277_v58  ;;  %6730 = vmatprep.mubr.msk.f32.mxu1 %vm636_vm1, %v4292_v59 }
0x263c   : > { %v4293_v61 = vadd.f32 %v6062_v39, %v4285_v60 }
0x263e   : > { %6731 = vmatmul.mubr.msk.f32.vlgmr.msra.gmra.mrb[36].mxu1 %vm636_vm1, %v4293_v61 }
0x263f   : > { %7119 = vmatpush3.bf16.msra.mxu1 %v7116_v42 }
0x2640   : > { %7121 = vmatprep.subr.bf16.mxu1 %v7120_v18 }
0x2643   : > { %7123 = vmatpush3.bf16.msra.mxu1 %v7120_v18 }
0x2711   : > { %v6732_v2 = vpop.f32.mrb[36].mxu1 }
0x2712   : > { %v4385_v49 = vadd.f32 %v6732_v2, %v6068_v1  ;;  %v4379_v3 = vpop.f32.mrb[37].mxu1 }
0x2713   : > { %v4380_v4 = vadd.f32 %v6068_v1, %v4379_v3 }
0x2714   : > { %v4389_v5 = vmax.f32 %v4385_v49, 0.0 }
0x2715   : > { %v4388_v48 = vmax.f32 %v4380_v4, 0.0 }
0x2717   : > { %6749 = vmatprep.mubr.msk.f32.mxu0 %vm539_vm0, %v4388_v48 }
0x2718   : > { %6750 = vmatmul.mubr.msk.f32.vlgmr.msra.gmra.mrb[34].mxu0 %vm539_vm0, %v4389_v5 }
0x27eb   : > { %v6751_v7 = vpop.f32.mrb[34].mxu0 }
0x27ec   : > { %v4485_v8 = vadd.f32 %v6751_v7, %v6080_v6  ;;  %v4479_v56 = vpop.f32.mrb[35].mxu0 }
0x27ed   : > { %v4480_v9 = vadd.f32 %v6080_v6, %v4479_v56 }
0x27ee   : > { %v4489_v37 = vadd.f32 %v4485_v8, %v4293_v61 }
0x27ef   : > { %v4488_v40 = vadd.f32 %v4480_v9, %v4292_v59 }
0x27f0   : > { %v4497_v10 = vsel %vm636_vm1, %v4489_v37, 0.0 }
0x27f1   : > { %4498 = vadd.xlane.f32.xlu0 %v4497_v10  ;;  %v4494_v35 = vsel %vm636_vm1, %v4488_v40, 0.0 }
0x27f2   : > { %4495 = vadd.xlane.f32.xlu1 %v4494_v35 }
0x287e   : > { %v4499_v11 = vpop.xlane.xlu0 %4498 }
0x287f   : > { %v4501_v12 = vmul.f32 0.03125, %v4499_v11  ;;  %v4496_v28 = vpop.xlane.xlu1 %4495 }
0x2880   : > { %v4500_v47 = vmul.f32 0.03125, %v4496_v28 }
0x2881   : > { %v4503_v27 = vsub.f32 %v4489_v37, %v4501_v12 }
0x2882   : > { %v4502_v45 = vsub.f32 %v4488_v40, %v4500_v47 }
0x2883   : > { %v4505_v13 = vmul.f32 %v4503_v27, %v4503_v27 }
0x2884   : > { %v4504_v14 = vmul.f32 %v4502_v45, %v4502_v45 }
0x2885   : > { %v4509_v31 = vsel %vm636_vm1, %v4505_v13, 0.0 }
0x2886   : > { %4510 = vadd.xlane.f32.xlu0 %v4509_v31  ;;  %v4506_v30 = vsel %vm636_vm1, %v4504_v14, 0.0 }
0x2887   : > { %4507 = vadd.xlane.f32.xlu1 %v4506_v30 }
0x2913   : > { %v4511_v34 = vpop.xlane.xlu0 %4510 }
0x2914   : > { %v4513_v19 = vmul.f32 0.03125, %v4511_v34  ;;  %v4508_v20 = vpop.xlane.xlu1 %4507 }
0x2915   : > { %v4512_v21 = vmul.f32 0.03125, %v4508_v20 }
0x2916   : > { %v4515_v22 = vadd.f32 1e-05, %v4513_v19 }
0x2917   : > { %v4514_v23 = vadd.f32 1e-05, %v4512_v21 }
0x2918   : > { %7494 = vrsqrt.f32 %v4515_v22 }
0x2919   : > { %7496 = vrsqrt.f32 %v4514_v23 }
0x2922   : > { %v7495_v24 = vpop.eup %7494 }
0x2923   : > { %v7497_v26 = vpop.eup %7496  ;;  %v4519_v29 = vmul.f32 %v7495_v24, %v4503_v27 }
0x2924   : > { %v4518_v32 = vmul.f32 %v7497_v26, %v4502_v45 }
0x2925   : > { %v4527_v43 = vmul.f32 %v6085_v25, %v4519_v29 }
0x2926   : > { %v4526_v44 = vmul.f32 %v6085_v25, %v4518_v32 }
0x2927   : > { %v8388_v50 = vadd.f32 %v6086_v33, %v4527_v43 }
0x2928   : > { %v8386_v46 = vadd.f32 %v6086_v33, %v4526_v44 }
0x292a   : > { %6760 = vmatprep.mubr.msk.f32.mxu1 %vm636_vm1, %v8386_v46 }
0x292b   : > { %6761 = vmatmul.mubr.msk.f32.vlgmr.msra.gmra.mrb[38].mxu1 %vm636_vm1, %v8388_v50 }
0x29fe   : > { %v6762_v52 = vpop.f32.mrb[38].mxu1 }
0x29ff   : > { %v8397_v53 = vadd.f32 %v6762_v52, %v6092_v51  ;;  %v4621_v54 = vpop.f32.mrb[39].mxu1 }
0x2a00   : > { %v8399_v55 = vadd.f32 %v6092_v51, %v4621_v54 }
0x2a02   : > { %6767 = vmatprep.mubr.msk.f32.mxu1 %vm724_vm2, %v8399_v55  ;;  %v8405_v39 = vpack.i.bf16 %v8397_v53, %v8399_v55 }
0x2a04   : > { %7344 = vrot.lane.b32.xlu0 %v8405_v39, %s8684_s22  ;;  %7339 = vrot.lane.b32.xlu1 %v8405_v39, %s8685_s2 }
0x2a08   : > { %4828 = vrot.lane.b32.xlu1 %v8399_v55, %s8686_s3 }
0x2a0c   : > { %4830 = vrot.lane.b32.xlu1 %v8397_v53, %s8686_s3 }
0x2a76   : > { %v7345_v41 = vpop.permute.xlu0 %7344  ;;  %v7340_v57 = vpop.permute.xlu1 %7339 }
0x2a77   : > { %v7347_v58 = vunpack.i.h.bf16 %v7345_v41  ;;  %v7346_v59 = vunpack.i.l.bf16 %v7345_v41  ;;  %v7342_v60 = vunpack.i.h.bf16 %v7340_v57  ;;  %v7341_v61 = vunpack.i.l.bf16 %v7340_v57 }
0x2a79   : > { %v7124_v62 = vpack.c.bf16 %v7342_v60, %v7341_v61  ;;  %v7134_v63 = vpack.c.bf16 %v7347_v58, %v7346_v59 }
0x2a7a   : > { %v4829_v0 = vpop.permute.xlu1 %4828 }
0x2a7b   : > { %7126 = vmatprep.subr.msk.bf16.mxu1 %vm7745_vm3, %v7124_v62 }
0x2a7c   : > { %7129 = vmatpush3.bf16.xpose.msk.msra.mxu1 %vm7745_vm3, %v7124_v62 }
0x2a7d   : > { %7136 = vmatprep.subr.msk.bf16.mxu1 %vm7745_vm3, %v7134_v63 }
0x2a7e   : > { %v4831_v1 = vpop.permute.xlu1 %4830 }
0x2a83   : > { %6768 = vmatmul.mubr.msk.f32.vlgmr.msra.gmra.mrb[40].mxu1 %vm724_vm2, %v8397_v53 }
0x2a84   : > { %7139 = vmatpush3.bf16.xpose.msk.msra.mxu1 %vm7745_vm3, %v7134_v63  ;;  %6781 = vmatprep.mubr.msk.f32.mxu1 %vm724_vm2, %v4829_v0 }
0x2a8b   : > { %6782 = vmatmul.mubr.msk.f32.vlgmr.msra.gmra.mrb[42].mxu1 %vm724_vm2, %v4831_v1 }
0x2b56   : > { %v6769_v2 = vpop.f32.mrb[40].mxu1 }
0x2b57   : > { %v4710_v49 = vpop.f32.mrb[41].mxu1  ;;  %v4722_v3 = vsel %vm808_vm4, %v6769_v2, -inf }
0x2b58   : > { %4723 = vmax.xlane.f32.xlu1 %v4722_v3  ;;  %v4719_v4 = vsel %vm808_vm4, %v4710_v49, -inf }
0x2b59   : > { %4720 = vmax.xlane.f32.xlu0 %v4719_v4 }
0x2b5e   : > { %v6783_v48 = vpop.f32.mrb[42].mxu1 }
0x2b5f   : > { %v4910_v5 = vpop.f32.mrb[43].mxu1  ;;  %v4922_v7 = vsel %vm808_vm4, %v6783_v48, -inf }
0x2b60   : > { %v4919_v6 = vsel %vm808_vm4, %v4910_v5, -inf }
0x2b61   : > { %4920 = vmax.xlane.f32.xlu0 %v4919_v6 }
0x2b65   : > { %4923 = vmax.xlane.f32.xlu0 %v4922_v7 }
0x2b69   : > { %7349 = vrot.lane.b32.xlu1 %v8405_v39, %s8673_s26  ;;  %s8689_s26 = smov 40  }
0x2be5   : > { %v4724_v8 = vpop.xlane.xlu1 %4723 }
0x2be6   : > { %v4726_v56 = vsub.f32 %v6769_v2, %v4724_v8  ;;  %v4721_v9 = vpop.xlane.xlu0 %4720 }
0x2be7   : > { %v4725_v37 = vsub.f32 %v4710_v49, %v4721_v9 }
0x2be8   : > { %v4729_v40 = vmul.f32 1.442695, %v4726_v56 }
0x2be9   : > { %v4727_v10 = vmul.f32 1.442695, %v4725_v37  ;;  %v7350_v35 = vpop.permute.xlu1 %7349 }
0x2bea   : > { %7498 = vpow2.f32 %v4729_v40  ;;  %v7352_v11 = vunpack.i.h.bf16 %v7350_v35  ;;  %v7351_v12 = vunpack.i.l.bf16 %v7350_v35 }
0x2beb   : > { %7500 = vpow2.f32 %v4727_v10 }
0x2bec   : > { %v7130_v28 = vpack.c.bf16 %v7352_v11, %v7351_v12 }
0x2bee   : > { %7131 = vmatprep.subr.bf16.mxu0 %v7130_v28  ;;  %v4921_v47 = vpop.xlane.xlu0 %4920 }
0x2bef   : > { %7133 = vmatpush3.bf16.msra.mxu0 %v7130_v28  ;;  %v4925_v36 = vsub.f32 %v4910_v5, %v4921_v47 }
0x2bf1   : > { %v4927_v17 = vmul.f32 1.442695, %v4925_v36 }
0x2bf2   : > { %v4924_v27 = vpop.xlane.xlu0 %4923 }
0x2bf3   : > { %v4926_v45 = vsub.f32 %v6783_v48, %v4924_v27 }
0x2bf4   : > { %v7499_v13 = vpop.eup %7498 }
0x2bf5   : > { %v7501_v14 = vpop.eup %7500  ;;  %v4929_v31 = vmul.f32 1.442695, %v4926_v45  ;;  %v4734_v30 = vsel %vm808_vm4, %v7499_v13, 0.0 }
0x2bf6   : > { %4735 = vadd.xlane.f32.xlu0 %v4734_v30  ;;  %v4731_v15 = vsel %vm808_vm4, %v7501_v14, 0.0 }
0x2bf7   : > { %7502 = vpow2.f32 %v4929_v31  ;;  %4732 = vadd.xlane.f32.xlu1 %v4731_v15 }
0x2bf8   : > { %7504 = vpow2.f32 %v4927_v17 }
0x2c01   : > { %v7503_v16 = vpop.eup %7502 }
0x2c02   : > { %v4934_v42 = vsel %vm808_vm4, %v7503_v16, 0.0  ;;  %v7505_v18 = vpop.eup %7504 }
0x2c03   : > { %4935 = vadd.xlane.f32.xlu0 %v4934_v42  ;;  %v4931_v34 = vsel %vm808_vm4, %v7505_v18, 0.0 }
0x2c08   : > { %7359 = vrot.lane.b32.xlu1 %v8405_v39, %s8674_s30  ;;  %s8690_s30 = smov 16  }
0x2c19   : > { %7354 = vrot.lane.b32.xlu0 %v8405_v39, %s8675_s0 }
0x2c1d   : > { %5030 = vrot.lane.b32.xlu0 %v8397_v53, %s8676_s17 }
0x2c2c   : > { %4932 = vadd.xlane.f32.xlu1 %v4931_v34 }
0x2c3d   : > { %5028 = vrot.lane.b32.xlu1 %v8399_v55, %s8676_s17 }
0x2c83   : > { %v4736_v19 = vpop.xlane.xlu0 %4735 }
0x2c84   : > { %7506 = vrcp.f32 %v4736_v19  ;;  %v4733_v20 = vpop.xlane.xlu1 %4732 }
0x2c85   : > { %7508 = vrcp.f32 %v4733_v20 }
0x2c88   : > { %v7360_v26 = vpop.permute.xlu1 %7359 }
0x2c89   : > { %v7362_v32 = vunpack.i.h.bf16 %v7360_v26  ;;  %v7361_v33 = vunpack.i.l.bf16 %v7360_v26 }
0x2c8b   : > { %v7144_v52 = vpack.c.bf16 %v7362_v32, %v7361_v33 }
0x2c8e   : > { %v7507_v21 = vpop.eup %7506 }
0x2c8f   : > { %v7509_v22 = vpop.eup %7508  ;;  %v4740_v25 = vmul.f32 %v7507_v21, %v7499_v13 }
0x2c90   : > { %v4936_v23 = vpop.xlane.xlu0 %4935  ;;  %v4739_v24 = vmul.f32 %v7509_v22, %v7501_v14 }
0x2c91   : > { %7510 = vrcp.f32 %v4936_v23 }
0x2c92   : > { %6774 = vmatprep.mubr.msk.f32.mxu0 %vm808_vm4, %v4739_v24 }
0x2c93   : > { %6775 = vmatmul.mubr.msk.f32.vlgmr.msra.gmra.mrb[36].mxu0 %vm808_vm4, %v4740_v25 }
0x2c94   : > { %v7355_v29 = vpop.permute.xlu0 %7354 }
0x2c95   : > { %v7357_v43 = vunpack.i.h.bf16 %v7355_v29  ;;  %v7356_v44 = vunpack.i.l.bf16 %v7355_v29 }
0x2c97   : > { %v7140_v51 = vpack.c.bf16 %v7357_v43, %v7356_v44 }
0x2c98   : > { %v5031_v61 = vpop.permute.xlu0 %5030 }
0x2c99   : > { %7141 = vmatprep.subr.bf16.mxu0 %v7140_v51 }
0x2c9a   : > { %7143 = vmatpush3.bf16.msra.mxu0 %v7140_v51 }
0x2c9b   : > { %7146 = vmatprep.subr.msk.bf16.mxu0 %vm7745_vm3, %v7144_v52  ;;  %v7511_v41 = vpop.eup %7510 }
0x2c9c   : > { %v4940_v59 = vmul.f32 %v7511_v41, %v7503_v16 }
0x2cb9   : > { %v4933_v54 = vpop.xlane.xlu1 %4932 }
0x2cba   : > { %7512 = vrcp.f32 %v4933_v54 }
0x2cbd   : > { %v5029_v60 = vpop.permute.xlu1 %5028 }
0x2cc4   : > { %v7513_v57 = vpop.eup %7512 }
0x2cc5   : > { %v4939_v58 = vmul.f32 %v7513_v57, %v7505_v18 }
0x2cc7   : > { %6788 = vmatprep.mubr.msk.f32.mxu0 %vm808_vm4, %v4939_v58 }
0x2cc8   : > { %6789 = vmatmul.mubr.msk.f32.vlgmr.msra.gmra.mrb[38].mxu0 %vm808_vm4, %v4940_v59 }
0x2cc9   : > { %7149 = vmatpush3.bf16.xpose.msk.msra.mxu0 %vm7745_vm3, %v7144_v52  ;;  %6795 = vmatprep.mubr.msk.f32.mxu0 %vm724_vm2, %v5029_v60 }
0x2cd0   : > { %6796 = vmatmul.mubr.msk.f32.vlgmr.msra.gmra.mrb[40].mxu0 %vm724_vm2, %v5031_v61 }
0x2d66   : > { %v8455_v62 = vpop.f32.mrb[36].mxu0 }
0x2d67   : > { %v8457_v63 = vpop.f32.mrb[37].mxu0 }
0x2d9b   : > { %v8459_v0 = vpop.f32.mrb[38].mxu0 }
0x2d9c   : > { %v8461_v1 = vpop.f32.mrb[39].mxu0 }
0x2da3   : > { %v6797_v2 = vpop.f32.mrb[40].mxu0 }
0x2da4   : > { %v5110_v49 = vpop.f32.mrb[41].mxu0  ;;  %v5122_v3 = vsel %vm808_vm4, %v6797_v2, -inf }
0x2da5   : > { %5123 = vmax.xlane.f32.xlu0 %v5122_v3  ;;  %v5119_v4 = vsel %vm808_vm4, %v5110_v49, -inf }
0x2da6   : > { %5120 = vmax.xlane.f32.xlu1 %v5119_v4 }
0x2e32   : > { %v5124_v48 = vpop.xlane.xlu0 %5123 }
0x2e33   : > { %v5126_v5 = vsub.f32 %v6797_v2, %v5124_v48  ;;  %v5121_v6 = vpop.xlane.xlu1 %5120 }
0x2e34   : > { %v5125_v7 = vsub.f32 %v5110_v49, %v5121_v6 }
0x2e35   : > { %v5129_v8 = vmul.f32 1.442695, %v5126_v5 }
0x2e36   : > { %v5127_v56 = vmul.f32 1.442695, %v5125_v7 }
0x2e37   : > { %7514 = vpow2.f32 %v5129_v8 }
0x2e38   : > { %7516 = vpow2.f32 %v5127_v56 }
0x2e41   : > { %v7515_v9 = vpop.eup %7514 }
0x2e42   : > { %v7517_v37 = vpop.eup %7516  ;;  %v5134_v40 = vsel %vm808_vm4, %v7515_v9, 0.0 }
0x2e43   : > { %5135 = vadd.xlane.f32.xlu1 %v5134_v40  ;;  %v5131_v10 = vsel %vm808_vm4, %v7517_v37, 0.0 }
0x2e44   : > { %5132 = vadd.xlane.f32.xlu0 %v5131_v10 }
0x2e54   : > { %7369 = vrot.lane.b32.xlu1 %v8405_v39, %s8677_s20  ;;  %s8691_s20 = sld [smem:[#allocation8_spill]] }
0x2e58   : > { %5228 = vrot.lane.b32.xlu1 %v8399_v55, %s8678_s18 }
0x2e5a   : > { %7364 = vrot.lane.b32.xlu0 %v8405_v39, %s8679_s19  ;;  %v6120_v61 = vld [vmem:[%s8691_s20 + $0x68] sm:$0xff]  ;;  %v6122_v2 = vld [vmem:[%s8691_s20 + $0x78] sm:$0xff] }
0x2e5e   : > { %5230 = vrot.lane.b32.xlu0 %v8397_v53, %s8678_s18  ;;  %s8694_s18 = sld [smem:[#allocation3_spill]] }
0x2e64   : > { %s8695_s3 = sshll.u32 %s8694_s18, 4 }
0x2ed0   : > { %v5136_v35 = vpop.xlane.xlu1 %5135 }
0x2ed1   : > { %7518 = vrcp.f32 %v5136_v35  ;;  %v5133_v11 = vpop.xlane.xlu0 %5132 }
0x2ed2   : > { %7520 = vrcp.f32 %v5133_v11 }
0x2ed4   : > { %v7370_v12 = vpop.permute.xlu1 %7369 }
0x2ed5   : > { %v7365_v28 = vpop.permute.xlu0 %7364  ;;  %v7372_v47 = vunpack.i.h.bf16 %v7370_v12  ;;  %v7371_v27 = vunpack.i.l.bf16 %v7370_v12 }
0x2ed6   : > { %v7367_v45 = vunpack.i.h.bf16 %v7365_v28  ;;  %v7366_v13 = vunpack.i.l.bf16 %v7365_v28 }
0x2ed7   : > { %v7154_v31 = vpack.c.bf16 %v7372_v47, %v7371_v27 }
0x2ed8   : > { %v7150_v14 = vpack.c.bf16 %v7367_v45, %v7366_v13  ;;  %v5229_v16 = vpop.permute.xlu1 %5228 }
0x2ed9   : > { %v5231_v42 = vpop.permute.xlu0 %5230 }
0x2eda   : > { %7151 = vmatprep.subr.bf16.mxu1 %v7150_v14 }
0x2edb   : > { %v7519_v55 = vpop.eup %7518  ;;  %7153 = vmatpush3.bf16.msra.mxu1 %v7150_v14 }
0x2edc   : > { %v7521_v30 = vpop.eup %7520  ;;  %7156 = vmatprep.subr.msk.bf16.mxu1 %vm7745_vm3, %v7154_v31  ;;  %v5140_v15 = vmul.f32 %v7519_v55, %v7515_v9 }
0x2edd   : > { %v5139_v53 = vmul.f32 %v7521_v30, %v7517_v37 }
0x2edf   : > { %6802 = vmatprep.mubr.msk.f32.mxu1 %vm808_vm4, %v5139_v53 }
0x2ee0   : > { %6803 = vmatmul.mubr.msk.f32.vlgmr.msra.gmra.mrb[44].mxu1 %vm808_vm4, %v5140_v15 }
0x2ee1   : > { %6809 = vmatprep.mubr.msk.f32.mxu1 %vm724_vm2, %v5229_v16 }
0x2ee4   : > { %7159 = vmatpush3.bf16.xpose.msk.msra.mxu1 %vm7745_vm3, %v7154_v31 }
0x2eeb   : > { %6810 = vmatmul.mubr.msk.f32.vlgmr.msra.gmra.mrb[46].mxu1 %vm724_vm2, %v5231_v42 }
0x2fb3   : > { %v6804_v36 = vpop.f32.mrb[44].mxu1 }
0x2fb4   : > { %v5219_v17 = vpop.f32.mrb[45].mxu1 }
0x2fbe   : > { %v6811_v18 = vpop.f32.mrb[46].mxu1 }
0x2fbf   : > { %v5310_v34 = vpop.f32.mrb[47].mxu1  ;;  %v5322_v19 = vsel %vm808_vm4, %v6811_v18, -inf }
0x2fc0   : > { %5323 = vmax.xlane.f32.xlu0 %v5322_v19  ;;  %v5319_v20 = vsel %vm808_vm4, %v5310_v34, -inf  ;;  %v6133_v19 = vld [vmem:[%s8612_s10 + $0x70] sm:$0xff] }
0x2fc1   : > { %5320 = vmax.xlane.f32.xlu1 %v5319_v20  ;;  %v6134_v20 = vld [vmem:[%s8612_s10 + $0x78] sm:$0xff] }
0x304d   : > { %v5324_v21 = vpop.xlane.xlu0 %5323 }
0x304e   : > { %v5326_v22 = vsub.f32 %v6811_v18, %v5324_v21  ;;  %v5321_v23 = vpop.xlane.xlu1 %5320  ;;  %v6132_v18 = vld [vmem:[%s8612_s10 + $0x68] sm:$0xff]  ;;  %v7176_v21 = vpack.c.bf16 %v6134_v20, %v6133_v19  ;;  %v6153_v19 = vld [vmem:[%s8616_s14 + $0x3] ss:$0 sm:$0xff] }
0x304f   : > { %v5325_v24 = vsub.f32 %v5310_v34, %v5321_v23  ;;  %v6140_v23 = vld [vmem:[%s8614_s12 + $0xc8] sm:$0xff] }
0x3050   : > { %v5329_v25 = vmul.f32 1.442695, %v5326_v22  ;;  %v6139_v22 = vld [vmem:[%s8614_s12 + $0xc0] sm:$0xff] }
0x3051   : > { %v5327_v38 = vmul.f32 1.442695, %v5325_v24  ;;  %v6141_v24 = vld [vmem:[%s8614_s12 + $0xd0] sm:$0xff] }
0x3052   : > { %7522 = vpow2.f32 %v5329_v25  ;;  %v7180_v25 = vpack.c.bf16 %v6140_v23, %v6139_v22  ;;  %v6154_v22 = vld [vmem:[%s8617_s15 + $0x3] ss:$0 sm:$0xff] }
0x3053   : > { %7524 = vpow2.f32 %v5327_v38  ;;  %v6142_v38 = vld [vmem:[%s8614_s12 + $0xd8] sm:$0xff] }
0x305c   : > { %v7523_v26 = vpop.eup %7522 }
0x305d   : > { %v7525_v29 = vpop.eup %7524  ;;  %v5334_v32 = vsel %vm808_vm4, %v7523_v26, 0.0 }
0x305e   : > { %5335 = vadd.xlane.f32.xlu1 %v5334_v32  ;;  %v5331_v33 = vsel %vm808_vm4, %v7525_v29, 0.0  ;;  %v6144_v32 = vld [vmem:[%s8614_s12 + $0xe8] sm:$0xff] }
0x305f   : > { %5332 = vadd.xlane.f32.xlu0 %v5331_v33 }
0x306f   : > { %5430 = vrot.lane.b32.xlu1 %v8461_v1, %s8680_s28 }
0x3073   : > { %5432 = vrot.lane.b32.xlu1 %v8459_v0, %s8680_s28  ;;  %v6121_v0 = vld [vmem:[%s8691_s20 + $0x70] sm:$0xff] }
0x3074   : > { %v7168_v49 = vpack.c.bf16 %v6122_v2, %v6121_v0 }
0x3075   : > { %7374 = vrot.lane.b32.xlu0 %v8405_v39, %s8689_s26  ;;  %v6119_v39 = vld [vmem:[%s8691_s20 + $0x60] sm:$0xff] }
0x3076   : > { %v7164_v1 = vpack.c.bf16 %v6120_v61, %v6119_v39 }
0x3077   : > { %5440 = vrot.lane.b32.xlu1 %v6804_v36, %s8690_s30 }
0x3079   : > { %5438 = vrot.lane.b32.xlu0 %v5219_v17, %s8690_s30 }
0x30eb   : > { %v5336_v43 = vpop.xlane.xlu1 %5335 }
0x30ec   : > { %7526 = vrcp.f32 %v5336_v43  ;;  %v5333_v44 = vpop.xlane.xlu0 %5332 }
0x30ed   : > { %7528 = vrcp.f32 %v5333_v44 }
0x30ef   : > { %v5431_v48 = vpop.permute.xlu1 %5430 }
0x30f0   : > { %v7375_v51 = vpop.permute.xlu0 %7374  ;;  %v5452_v8 = vsel %vm724_vm2, %v8457_v63, %v5431_v48  ;;  %v6124_v63 = vld [vmem:[%s8693_s24 + $0x3] ss:$0 sm:$0xff]  ;;  %s521_s24 = scalar_lea.vmem %s8696_s21, %s8695_s3 }
0x30f1   : > { %v7377_v52 = vunpack.i.h.bf16 %v7375_v51  ;;  %v7376_v54 = vunpack.i.l.bf16 %v7375_v51 }
0x30f3   : > { %v7160_v41 = vpack.c.bf16 %v7377_v52, %v7376_v54  ;;  %v5433_v5 = vpop.permute.xlu1 %5432 }
0x30f4   : > { %v5439_v7 = vpop.permute.xlu0 %5438  ;;  %v5453_v9 = vsel %vm724_vm2, %v8455_v62, %v5433_v5  ;;  %v6136_v5 = vld [vmem:[%s8613_s11 + $0x3] ss:$0 sm:$0xff] }
0x30f5   : > { %7161 = vmatprep.subr.bf16.mxu0 %v7160_v41  ;;  %v5454_v37 = vsel %vm808_vm4, %v5452_v8, %v5439_v7 }
0x30f6   : > { %v7527_v57 = vpop.eup %7526  ;;  %7163 = vmatpush3.bf16.msra.mxu0 %v7160_v41 }
0x30f7   : > { %v7529_v58 = vpop.eup %7528  ;;  %v5340_v60 = vmul.f32 %v7527_v57, %v7523_v26  ;;  %7165 = vmatprep.subr.bf16.mxu0 %v7164_v1  ;;  %v5441_v6 = vpop.permute.xlu1 %5440  ;;  %v7184_v26 = vpack.c.bf16 %v6142_v38, %v6141_v24 }
0x30f8   : > { %v5339_v59 = vmul.f32 %v7529_v58, %v7525_v29  ;;  %v5455_v10 = vsel %vm808_vm4, %v5453_v9, %v5441_v6  ;;  %v6143_v29 = vld [vmem:[%s8614_s12 + $0xe0] sm:$0xff] }
0x30f9   : > { %v7188_v33 = vpack.c.bf16 %v6144_v32, %v6143_v29  ;;  %v6129_v58 = vld [vmem:[%s8610_s8 + $0x3] ss:$0 sm:$0xff] }
0x30fa   : > { %6816 = vmatprep.mubr.msk.f32.mxu0 %vm808_vm4, %v5339_v59 }
0x30fb   : > { %6817 = vmatmul.mubr.msk.f32.vlgmr.msra.gmra.mrb[42].mxu0 %vm808_vm4, %v5340_v60  ;;  %v6130_v60 = vld [vmem:[%s8611_s9 + $0x3] ss:$0 sm:$0xff] }
0x30fc   : > { %7167 = vmatpush3.bf16.msra.mxu0 %v7164_v1 }
0x30fd   : > { %7169 = vmatprep.subr.bf16.mxu0 %v7168_v49 }
0x3100   : > { %7171 = vmatpush3.bf16.msra.mxu0 %v7168_v49 }
0x3101   : > { %7181 = vmatprep.subr.bf16.mxu0 %v7180_v25 }
0x31ce   : > { %v6818_v3 = vpop.f32.mrb[42].mxu0 }
0x31cf   : > { %5448 = vrot.lane.b32.xlu1 %v6818_v3, %s8692_s16  ;;  %v5419_v4 = vpop.f32.mrb[43].mxu0  ;;  %v6145_v3 = vld [vmem:[%s8614_s12 + $0xf0] sm:$0xff] }
0x31d0   : > { %5446 = vrot.lane.b32.xlu0 %v5419_v4, %s8692_s16  ;;  %v6146_v4 = vld [vmem:[%s8614_s12 + $0xf8] sm:$0xff] }
0x31d1   : > { %v7192_v48 = vpack.c.bf16 %v6146_v4, %v6145_v3 }
0x3241   : > { %v5449_v56 = vpop.permute.xlu1 %5448 }
0x3242   : > { %v5447_v40 = vpop.permute.xlu0 %5446  ;;  %v5457_v11 = vsel %vm1546_vm5, %v5455_v10, %v5449_v56 }
0x3243   : > { %v5456_v35 = vsel %vm1546_vm5, %v5454_v37, %v5447_v40  ;;  %v6148_v40 = vld [vmem:[%s8615_s13 + $0x3] ss:$0 sm:$0xff] }
0x3244   : > { %6827 = vmatprep.mubr.msk.f32.mxu0 %vm636_vm1, %v5456_v35 }
0x3245   : > { %6828 = vmatmul.mubr.msk.f32.vlgmr.msra.gmra.mrb[44].mxu0 %vm636_vm1, %v5457_v11 }
0x3246   : > { %7183 = vmatpush3.bf16.msra.mxu0 %v7180_v25 }
0x3247   : > { %7185 = vmatprep.subr.bf16.mxu0 %v7184_v26 }
0x324a   : > { %7187 = vmatpush3.bf16.msra.mxu0 %v7184_v26 }
0x324b   : > { %7189 = vmatprep.subr.bf16.mxu0 %v7188_v33 }
0x324e   : > { %7191 = vmatpush3.bf16.msra.mxu0 %v7188_v33 }
0x324f   : > { %7193 = vmatprep.subr.bf16.mxu0 %v7192_v48 }
0x3252   : > { %7195 = vmatpush3.bf16.msra.mxu0 %v7192_v48 }
0x3318   : > { %v6829_v12 = vpop.f32.mrb[44].mxu0 }
0x3319   : > { %v5549_v28 = vadd.f32 %v6829_v12, %v6124_v63  ;;  %v5543_v62 = vpop.f32.mrb[45].mxu0 }
0x331a   : > { %v5544_v47 = vadd.f32 %v6124_v63, %v5543_v62 }
0x331b   : > { %v5553_v27 = vadd.f32 %v5549_v28, %v8388_v50 }
0x331c   : > { %v5552_v45 = vadd.f32 %v5544_v47, %v8386_v46  ;;  %v6131_v46 = vld [vmem:[%s8612_s10 + $0x60] sm:$0xff] }
0x331d   : > { %v5561_v13 = vsel %vm636_vm1, %v5553_v27, 0.0  ;;  %v7172_v34 = vpack.c.bf16 %v6132_v18, %v6131_v46 }
0x331e   : > { %5562 = vadd.xlane.f32.xlu1 %v5561_v13  ;;  %v5558_v14 = vsel %vm636_vm1, %v5552_v45, 0.0 }
0x331f   : > { %5559 = vadd.xlane.f32.xlu0 %v5558_v14  ;;  %7173 = vmatprep.subr.bf16.mxu1 %v7172_v34 }
0x3320   : > { %7175 = vmatpush3.bf16.msra.mxu1 %v7172_v34 }
0x3321   : > { %7177 = vmatprep.subr.bf16.mxu1 %v7176_v21 }
0x3324   : > { %7179 = vmatpush3.bf16.msra.mxu1 %v7176_v21 }
0x33ab   : > { %v5563_v31 = vpop.xlane.xlu1 %5562 }
0x33ac   : > { %v5565_v55 = vmul.f32 0.03125, %v5563_v31  ;;  %v5560_v30 = vpop.xlane.xlu0 %5559 }
0x33ad   : > { %v5564_v53 = vmul.f32 0.03125, %v5560_v30 }
0x33ae   : > { %v5567_v15 = vsub.f32 %v5553_v27, %v5565_v55 }
0x33af   : > { %v5566_v16 = vsub.f32 %v5552_v45, %v5564_v53 }
0x33b0   : > { %v5569_v17 = vmul.f32 %v5567_v15, %v5567_v15 }
0x33b1   : > { %v5568_v42 = vmul.f32 %v5566_v16, %v5566_v16 }
0x33b2   : > { %v5573_v50 = vsel %vm636_vm1, %v5569_v17, 0.0 }
0x33b3   : > { %v5570_v36 = vsel %vm636_vm1, %v5568_v42, 0.0 }
0x33b4   : > { %5571 = vadd.xlane.f32.xlu0 %v5570_v36 }
0x33b8   : > { %5574 = vadd.xlane.f32.xlu0 %v5573_v50 }
0x3441   : > { %v5572_v43 = vpop.xlane.xlu0 %5571 }
0x3442   : > { %v5576_v44 = vmul.f32 0.03125, %v5572_v43 }
0x3444   : > { %v5578_v51 = vadd.f32 1e-05, %v5576_v44 }
0x3445   : > { %v5575_v52 = vpop.xlane.xlu0 %5574 }
0x3446   : > { %7530 = vrsqrt.f32 %v5578_v51  ;;  %v5577_v54 = vmul.f32 0.03125, %v5575_v52 }
0x3448   : > { %v5579_v41 = vadd.f32 1e-05, %v5577_v54 }
0x344a   : > { %7532 = vrsqrt.f32 %v5579_v41 }
0x3450   : > { %v7531_v57 = vpop.eup %7530 }
0x3451   : > { %v5582_v59 = vmul.f32 %v7531_v57, %v5566_v16 }
0x3453   : > { %v5590_v39 = vmul.f32 %v6129_v58, %v5582_v59 }
0x3454   : > { %v7533_v61 = vpop.eup %7532 }
0x3455   : > { %v5583_v0 = vmul.f32 %v7533_v61, %v5567_v15  ;;  %v5598_v1 = vadd.f32 %v6130_v60, %v5590_v39 }
0x3457   : > { %v5591_v2 = vmul.f32 %v6129_v58, %v5583_v0  ;;  %6838 = vmatprep.mubr.msk.f32.mxu1 %vm636_vm1, %v5598_v1 }
0x3459   : > { %v5599_v49 = vadd.f32 %v6130_v60, %v5591_v2 }
0x345b   : > { %6839 = vmatmul.mubr.msk.f32.vlgmr.msra.gmra.mrb[48].mxu1 %vm636_vm1, %v5599_v49 }
0x352e   : > { %v6840_v6 = vpop.f32.mrb[48].mxu1 }
0x352f   : > { %v5691_v7 = vadd.f32 %v6840_v6, %v6136_v5  ;;  %v5685_v8 = vpop.f32.mrb[49].mxu1 }
0x3530   : > { %v5686_v56 = vadd.f32 %v6136_v5, %v5685_v8 }
0x3531   : > { %v5695_v37 = vmax.f32 %v5691_v7, 0.0 }
0x3532   : > { %v5694_v9 = vmax.f32 %v5686_v56, 0.0 }
0x3534   : > { %6857 = vmatprep.mubr.msk.f32.mxu0 %vm539_vm0, %v5694_v9 }
0x3535   : > { %6858 = vmatmul.mubr.msk.f32.vlgmr.msra.gmra.mrb[46].mxu0 %vm539_vm0, %v5695_v37 }
0x3608   : > { %v6859_v10 = vpop.f32.mrb[46].mxu0 }
0x3609   : > { %v5791_v35 = vadd.f32 %v6859_v10, %v6148_v40  ;;  %v5785_v11 = vpop.f32.mrb[47].mxu0 }
0x360a   : > { %v5786_v63 = vadd.f32 %v6148_v40, %v5785_v11 }
0x360b   : > { %v5795_v12 = vadd.f32 %v5791_v35, %v5599_v49 }
0x360c   : > { %v5794_v28 = vadd.f32 %v5786_v63, %v5598_v1 }
0x360d   : > { %v5803_v62 = vsel %vm636_vm1, %v5795_v12, 0.0 }
0x360e   : > { %5804 = vadd.xlane.f32.xlu0 %v5803_v62  ;;  %v5800_v47 = vsel %vm636_vm1, %v5794_v28, 0.0 }
0x360f   : > { %5801 = vadd.xlane.f32.xlu1 %v5800_v47 }
0x369b   : > { %v5805_v27 = vpop.xlane.xlu0 %5804 }
0x369c   : > { %v5807_v45 = vmul.f32 0.03125, %v5805_v27  ;;  %v5802_v13 = vpop.xlane.xlu1 %5801 }
0x369d   : > { %v5806_v14 = vmul.f32 0.03125, %v5802_v13 }
0x369e   : > { %v5809_v31 = vsub.f32 %v5795_v12, %v5807_v45 }
0x369f   : > { %v5808_v55 = vsub.f32 %v5794_v28, %v5806_v14 }
0x36a0   : > { %v5811_v30 = vmul.f32 %v5809_v31, %v5809_v31 }
0x36a1   : > { %v5810_v53 = vmul.f32 %v5808_v55, %v5808_v55 }
0x36a2   : > { %v5815_v15 = vsel %vm636_vm1, %v5811_v30, 0.0 }
0x36a3   : > { %5816 = vadd.xlane.f32.xlu0 %v5815_v15  ;;  %v5812_v16 = vsel %vm636_vm1, %v5810_v53, 0.0 }
0x36a4   : > { %5813 = vadd.xlane.f32.xlu1 %v5812_v16 }
0x3730   : > { %v5817_v42 = vpop.xlane.xlu0 %5816 }
0x3731   : > { %v5819_v36 = vmul.f32 0.03125, %v5817_v42  ;;  %v5814_v17 = vpop.xlane.xlu1 %5813 }
0x3732   : > { %v5818_v50 = vmul.f32 0.03125, %v5814_v17 }
0x3733   : > { %v5821_v46 = vadd.f32 1e-05, %v5819_v36 }
0x3734   : > { %v5820_v18 = vadd.f32 1e-05, %v5818_v50 }
0x3735   : > { %7534 = vrsqrt.f32 %v5821_v46 }
0x3736   : > { %7536 = vrsqrt.f32 %v5820_v18 }
0x373f   : > { %v7535_v34 = vpop.eup %7534 }
0x3740   : > { %v7537_v20 = vpop.eup %7536  ;;  %v5825_v21 = vmul.f32 %v7535_v34, %v5809_v31 }
0x3741   : > { %v5824_v23 = vmul.f32 %v7537_v20, %v5808_v55 }
0x3742   : > { %v5833_v24 = vmul.f32 %v6153_v19, %v5825_v21 }
0x3743   : > { %v5832_v25 = vmul.f32 %v6153_v19, %v5824_v23 }
0x3744   : > { %v5841_v38 = vadd.f32 %v6154_v22, %v5833_v24 }
0x3745   : > { %v5840_v26 = vadd.f32 %v6154_v22, %v5832_v25 }
0x3746   : > { %5843 = vst.msk [vmem:[%s521_s24 + $0x8] sm:$0xff] %vm636_vm1, %v5841_v38 }
0x3747   : > { %5842 = vst.msk [vmem:[%s521_s24] sm:$0xff] %vm636_vm1, %v5840_v26 }
0x3748 PF: > { %s8697_s6 = sld [smem:[#allocation2_spill]] }
0x374e   : > { %s26_s21 = sadd.s32 1, %s8697_s6  }
0x374f   : > { %p23_p4 = scmp.ge.s32.totalorder %s26_s21, 4  }
0x3751   :  { %25 = sbr.rel (!%p23_p4) target bundleno = 8 (0x8), region = 150 }

</bundles_post_ra>
